<compile_context>
chip_gen: v7x
topology: tpu7x:2x2x1
jax: 0.10.0
libtpu: 0.0.40
codegen_flags: <defaults>
</compile_context>

<pallas_src>
import jax
import jax.numpy as jnp
from jax.experimental import pallas as pl
from jax.experimental.pallas import tpu as pltpu

EPS_BN = 1e-5
EPS_L2 = 1e-12
_EPS_L2_SQ = EPS_L2 * EPS_L2


# --------------------------------------------------------------------------------------
# Kernel 1: per-sample gated NetVLAD descriptor, (C, F) layout, bt samples per grid step.
# --------------------------------------------------------------------------------------
def _vlad_kernel(x_ref,                               # (bt, M, F) bf16
                 s1_ref, t1_ref,                      # folded BN1 scale/shift, (1, F) f32
                 wc_ref,                              # cluster weights (F, C), bf16
                 sc_ref, tc_ref,                      # folded BN-over-clusters, (1, C) f32
                 gate_ref,                            # sigmoid(gate), (C, F) f32 (precomputed)
                 out_ref):                            # (bt, C, F) bf16
    bt, m, f = x_ref.shape
    c = wc_ref.shape[1]

    # Layout-preserving collapse of leading dims (requires M % 16 == 0 for bf16 sublanes).
    x = x_ref[...].reshape(bt * m, f)

    # BatchNorm1d(feature_size), inference mode, folded to a single FMA (f32 math via promotion).
    xbn = x * s1_ref[...] + t1_ref[...]
    xbn16 = xbn.astype(jnp.bfloat16)                  # bf16 MXU operands, f32 accumulation

    # soft cluster assignment
    act = jnp.dot(xbn16, wc_ref[...], preferred_element_type=jnp.float32)   # (bt*m, C)
    act = act * sc_ref[...] + tc_ref[...]
    act = jnp.exp(act - jnp.max(act, axis=-1, keepdims=True))
    denom_inv = pl.reciprocal(jnp.sum(act, axis=-1, keepdims=True), approx=True)
    assign = (act * denom_inv).astype(jnp.bfloat16)   # softmax over clusters

    # gated VLAD aggregation in (C, F) layout: v[b, c, f] = sum_m assign[b, m, c] * xbn[b, m, f]
    v = jnp.einsum('bmc,bmf->bcf',
                   assign.reshape(bt, m, c),
                   xbn16.reshape(bt, m, f),
                   preferred_element_type=jnp.float32)                       # (bt, C, F) f32
    v = v * gate_ref[...]                             # gating (sigmoid hoisted to wrapper)

    # intra-normalization: L2 over the feature (lane) axis, per cluster row.
    row_sq = jnp.sum(v * v, axis=-1, keepdims=True)                          # (bt, C, 1)
    inv_col = jax.lax.rsqrt(jnp.maximum(row_sq, _EPS_L2_SQ))
    # global L2 norm reuses the per-row squared sums: sum_c row_sq[c] * inv_col[c]^2
    glob_sq = jnp.sum(row_sq * (inv_col * inv_col), axis=1, keepdims=True)   # (bt, 1, 1)
    inv_g = jax.lax.rsqrt(jnp.maximum(glob_sq, _EPS_L2_SQ))

    out_ref[...] = (v * (inv_col * inv_g)).astype(out_ref.dtype)


# --------------------------------------------------------------------------------------
# Kernel 2: hidden FC tiled over K = C*F (reduction, arbitrary, last) and H (parallel),
# streaming wh in bf16 and accumulating directly into the resident f32 output block;
# folded BN2 + ReLU6 applied in place on the final K step.
# --------------------------------------------------------------------------------------
def _hidden_fc_kernel(vflat_ref, wh_ref,
                      s2_ref, t2_ref,                 # folded BN2 scale/shift slice, (1, th)
                      act_ref):                       # (B, th) f32, resident accumulator
    k = pl.program_id(1)

    @pl.when(k == 0)
    def _():
        act_ref[...] = jnp.zeros_like(act_ref)

    act_ref[...] += jnp.dot(vflat_ref[...], wh_ref[...],
                            preferred_element_type=jnp.float32)

    @pl.when(k == pl.num_programs(1) - 1)
    def _():
        h = act_ref[...] * s2_ref[...] + t2_ref[...]
        act_ref[...] = jnp.clip(h, 0.0, 6.0)            # ReLU6


# --------------------------------------------------------------------------------------
# Helpers
# --------------------------------------------------------------------------------------
def _device_kind():
    try:
        return jax.devices()[0].device_kind.lower()
    except Exception:
        return ""


def _is_v7(kind):
    return ("v7" in kind) or ("7x" in kind)


def _largest_divisor_leq(n, target):
    t = max(1, min(n, target))
    while n % t:
        t -= 1
    return t


def _pick_tile(dim, target, unit=128):
    """Largest multiple of `unit` that divides `dim` and is <= target, else the full dim."""
    if dim <= target:
        return dim
    t = (min(target, dim) // unit) * unit
    while t >= unit:
        if dim % t == 0:
            return t
        t -= unit
    return dim


def _fold_bn(g, b, m, v):
    """BatchNorm (inference) folded to a single scale/shift pair."""
    scale = g * jax.lax.rsqrt(v + EPS_BN)
    return scale, b - m * scale


# --------------------------------------------------------------------------------------
# Forward
# --------------------------------------------------------------------------------------
def netvlad_forward(x, params, *, bt=None, tk=None, th=None):
    B, M, F = x.shape
    C = params["wc"].shape[1]
    K = C * F
    H = params["wh"].shape[1]

    assert M % 16 == 0, "max_frames must be a multiple of 16 (bf16 sublane tile) for layout-preserving reshape"
    # TODO(synk): for ragged / non-multiple max_frames, pad M and mask padded frames out of the
    # softmax assignment instead of relying on this assert.

    kind = _device_kind()
    v7 = _is_v7(kind)
    # v7x: 64 MiB VMEM per TensorCore -> cap scoped VMEM at ~48 MiB; v5e/v6e: 128 MiB physical.
    vmem_limit = (48 if v7 else 96) * 1024 * 1024

    # Kernel-1 batch tile: as big as the VMEM budget allows; on v7x keep >= 2 grid steps so both
    # TensorCores (and both HBM ports) are used.
    if bt is None:
        bt = 8 if v7 else 16
    bt_cap = max(1, B // 2) if v7 else B
    bt = _largest_divisor_leq(B, min(bt, bt_cap))

    # Kernel-2 tiles: th >= 512 keeps each row segment of the row-major (K, H) weight tile
    # >= 1 KiB contiguous (big streaming DMAs); on v7x cap th <= H/2 so the parallel H axis
    # spans both TensorCores and the double-buffered wh tile stays well under 64 MiB.
    # (For even larger DMAs, pre-block wh once at load time to (H/th, K/tk, tk, th).)
    if tk is None:
        tk = 8192
    if th is None:
        th = 512
    th_cap = max(128, H // 2) if v7 else H
    tk_eff = _pick_tile(K, tk)
    th_eff = _pick_tile(H, min(th, th_cap))

    # Grid-invariant parameter prep (wrapper-side, param-sized only; not input pre-scaling).
    s1, t1 = _fold_bn(params["bn1_g"], params["bn1_b"], params["bn1_m"], params["bn1_v"])
    sc, tc = _fold_bn(params["bnc_g"], params["bnc_b"], params["bnc_m"], params["bnc_v"])
    s2, t2 = _fold_bn(params["bn2_g"], params["bn2_b"], params["bn2_m"], params["bn2_v"])
    gate_sig = jax.nn.sigmoid(params["gate_cf"].astype(jnp.float32))          # (C, F)
    x16 = x.astype(jnp.bfloat16)                                              # halve x HBM read

    # ---- kernel 1: per-sample gated NetVLAD descriptor (B, C, F), bf16 ----
    vlad = pl.pallas_call(
        _vlad_kernel,
        out_shape=jax.ShapeDtypeStruct((B, C, F), jnp.bfloat16),
        grid=(B // bt,),
        in_specs=[
            pl.BlockSpec((bt, M, F), lambda b: (b, 0, 0)),
            pl.BlockSpec((1, F), lambda b: (0, 0)),
            pl.BlockSpec((1, F), lambda b: (0, 0)),
            pl.BlockSpec((F, C), lambda b: (0, 0)),
            pl.BlockSpec((1, C), lambda b: (0, 0)),
            pl.BlockSpec((1, C), lambda b: (0, 0)),
            pl.BlockSpec((C, F), lambda b: (0, 0)),
        ],
        out_specs=pl.BlockSpec((bt, C, F), lambda b: (b, 0, 0)),
        compiler_params=pltpu.CompilerParams(
            dimension_semantics=("parallel",),
            vmem_limit_bytes=vmem_limit),
    )(x16, s1, t1, params["wc"], sc, tc, gate_sig)

    # glue: flatten (B, C, F) -> (B, C*F); c-major flatten matches wh row ordering. bf16.
    vflat = vlad.reshape(B, K)

    # ---- kernel 2: hidden FC (K-tiled reduction, H-parallel) + BN2 + ReLU6 ----
    act = pl.pallas_call(
        _hidden_fc_kernel,
        out_shape=jax.ShapeDtypeStruct((B, H), jnp.float32),
        grid=(H // th_eff, K // tk_eff),
        in_specs=[
            pl.BlockSpec((B, tk_eff), lambda h, k: (0, k)),
            pl.BlockSpec((tk_eff, th_eff), lambda h, k: (k, h)),
            pl.BlockSpec((1, th_eff), lambda h, k: (0, h)),
            pl.BlockSpec((1, th_eff), lambda h, k: (0, h)),
        ],
        out_specs=pl.BlockSpec((B, th_eff), lambda h, k: (0, h)),
        compiler_params=pltpu.CompilerParams(
            dimension_semantics=("parallel", "arbitrary"),
            vmem_limit_bytes=vmem_limit),
    )(vflat, params["wh"], s2, t2)

    # ---- classifier: tiny (B x H x NC) GEMM + sigmoid, left to XLA (fused under jit) ----
    logits = jnp.dot(act, params["wp"], preferred_element_type=jnp.float32) + params["bp"]
    pred = jax.nn.sigmoid(logits)
    return pred, logits


def init_params(key, F, C, H, NC):
    K = C * F
    ks = jax.random.split(key, 16)
    p = {}
    # bn1: BatchNorm1d(feature_size)
    p["bn1_g"] = 1.0 + 0.1 * jax.random.normal(ks[0], (1, F), jnp.float32)
    p["bn1_b"] = 0.1 * jax.random.normal(ks[1], (1, F), jnp.float32)
    p["bn1_m"] = 0.1 * jax.random.normal(ks[2], (1, F), jnp.float32)
    p["bn1_v"] = 1.0 + 0.1 * jax.random.uniform(ks[3], (1, F), jnp.float32)
    # NetVLAGD cluster weights (streamed as bf16), BN over cluster activations, gate (C, F)
    p["wc"] = (jax.random.normal(ks[4], (F, C), jnp.float32) / jnp.sqrt(F)).astype(jnp.bfloat16)
    p["bnc_g"] = 1.0 + 0.1 * jax.random.normal(ks[5], (1, C), jnp.float32)
    p["bnc_b"] = 0.1 * jax.random.normal(ks[6], (1, C), jnp.float32)
    p["bnc_m"] = 0.1 * jax.random.normal(ks[7], (1, C), jnp.float32)
    p["bnc_v"] = 1.0 + 0.1 * jax.random.uniform(ks[8], (1, C), jnp.float32)
    p["gate_cf"] = jax.random.normal(ks[9], (C, F), jnp.float32)
    # hidden_fc: Linear(C*F, H, bias=False); rows ordered c-major (c*F + f), stored bf16
    p["wh"] = (jax.random.normal(ks[10], (K, H), jnp.float32) / jnp.sqrt(K)).astype(jnp.bfloat16)
    # bn2: BatchNorm1d(hidden_size)
    p["bn2_g"] = 1.0 + 0.1 * jax.random.normal(ks[11], (1, H), jnp.float32)
    p["bn2_b"] = 0.1 * jax.random.normal(ks[12], (1, H), jnp.float32)
    p["bn2_m"] = 0.1 * jax.random.normal(ks[13], (1, H), jnp.float32)
    p["bn2_v"] = 1.0 + 0.1 * jax.random.uniform(ks[14], (1, H), jnp.float32)
    # pred_fc: Linear(H, NC) with bias (small; kept f32)
    p["wp"] = jax.random.normal(ks[15], (H, NC), jnp.float32) / jnp.sqrt(H)
    p["bp"] = jnp.zeros((1, NC), jnp.float32)
    return p


if __name__ == "__main__":
    # small shapes consistent with the module: (batch, max_frames, feature_dim)
    B, M, F, C, H, NC = 4, 16, 256, 32, 256, 64
    key = jax.random.PRNGKey(0)
    kx, kp = jax.random.split(key)
    x = jax.random.normal(kx, (B, M, F), jnp.float32)
    params = init_params(kp, F, C, H, NC)

    fwd = jax.jit(netvlad_forward)
    pred, logits = fwd(x, params)
    jax.block_until_ready((pred, logits))
    assert pred.shape == (B, NC) and logits.shape == (B, NC)
    assert bool(jnp.all(jnp.isfinite(pred))) and bool(jnp.all(jnp.isfinite(logits)))
    print("KERNEL_OK")
</pallas_src>

<mosaic_0001>
module attributes {stable_mosaic.version = 11 : i64} {
  func.func @_vlad_kernel(%arg0: i32, %arg1: memref<4x16x256xbf16, #tpu.memory_space<vmem>>, %arg2: memref<1x256xf32, #tpu.memory_space<vmem>>, %arg3: memref<1x256xf32, #tpu.memory_space<vmem>>, %arg4: memref<256x32xbf16, #tpu.memory_space<vmem>>, %arg5: memref<1x32xf32, #tpu.memory_space<vmem>>, %arg6: memref<1x32xf32, #tpu.memory_space<vmem>>, %arg7: memref<32x256xf32, #tpu.memory_space<vmem>>, %arg8: memref<4x32x256xbf16, #tpu.memory_space<vmem>>) attributes {dimension_semantics = [#tpu.dimension_semantics<parallel>], iteration_bounds = array<i64: 1>, scalar_prefetch = 0 : i64, scratch_operands = 0 : i64, tpu.core_type = #tpu.core_type<tc>, window_params = [{transform_indices = @transform_0, window_bounds = array<i64: 4, 16, 256>}, {pipeline_mode = #tpu.pipeline_mode<synchronous>, transform_indices = @transform_1, window_bounds = array<i64: 1, 256>}, {pipeline_mode = #tpu.pipeline_mode<synchronous>, transform_indices = @transform_2, window_bounds = array<i64: 1, 256>}, {pipeline_mode = #tpu.pipeline_mode<synchronous>, transform_indices = @transform_3, window_bounds = array<i64: 256, 32>}, {pipeline_mode = #tpu.pipeline_mode<synchronous>, transform_indices = @transform_4, window_bounds = array<i64: 1, 32>}, {pipeline_mode = #tpu.pipeline_mode<synchronous>, transform_indices = @transform_5, window_bounds = array<i64: 1, 32>}, {pipeline_mode = #tpu.pipeline_mode<synchronous>, transform_indices = @transform_6, window_bounds = array<i64: 32, 256>}, {transform_indices = @transform_7, window_bounds = array<i64: 4, 32, 256>}]} {
    %c0 = arith.constant 0 : index
    %c0_0 = arith.constant 0 : index
    %c0_1 = arith.constant 0 : index
    %0 = vector.load %arg1[%c0, %c0_0, %c0_1] : memref<4x16x256xbf16, #tpu.memory_space<vmem>>, vector<4x16x256xbf16>
    %1 = vector.shape_cast %0 : vector<4x16x256xbf16> to vector<64x256xbf16>
    %c0_2 = arith.constant 0 : index
    %c0_3 = arith.constant 0 : index
    %2 = vector.load %arg2[%c0_2, %c0_3] : memref<1x256xf32, #tpu.memory_space<vmem>>, vector<1x256xf32>
    %3 = arith.extf %1 : vector<64x256xbf16> to vector<64x256xf32>
    %4 = vector.broadcast %2 : vector<1x256xf32> to vector<64x256xf32>
    %5 = arith.mulf %3, %4 : vector<64x256xf32>
    %c0_4 = arith.constant 0 : index
    %c0_5 = arith.constant 0 : index
    %6 = vector.load %arg3[%c0_4, %c0_5] : memref<1x256xf32, #tpu.memory_space<vmem>>, vector<1x256xf32>
    %7 = vector.broadcast %6 : vector<1x256xf32> to vector<64x256xf32>
    %8 = arith.addf %5, %7 : vector<64x256xf32>
    %9 = arith.truncf %8 : vector<64x256xf32> to vector<64x256xbf16>
    %c0_6 = arith.constant 0 : index
    %c0_7 = arith.constant 0 : index
    %10 = vector.load %arg4[%c0_6, %c0_7] : memref<256x32xbf16, #tpu.memory_space<vmem>>, vector<256x32xbf16>
    %cst = arith.constant dense<0.000000e+00> : vector<64x32xf32>
    %11 = tpu.matmul %9, %10, %cst {dimension_numbers = #tpu.dot_dimension_numbers<[1], [0], [0], [1], [0, 0, 1, 1], [], []>} : vector<64x256xbf16>, vector<256x32xbf16>, vector<64x32xf32> -> vector<64x32xf32>
    %c0_8 = arith.constant 0 : index
    %c0_9 = arith.constant 0 : index
    %12 = vector.load %arg5[%c0_8, %c0_9] : memref<1x32xf32, #tpu.memory_space<vmem>>, vector<1x32xf32>
    %13 = vector.broadcast %12 : vector<1x32xf32> to vector<64x32xf32>
    %14 = arith.mulf %11, %13 : vector<64x32xf32>
    %c0_10 = arith.constant 0 : index
    %c0_11 = arith.constant 0 : index
    %15 = vector.load %arg6[%c0_10, %c0_11] : memref<1x32xf32, #tpu.memory_space<vmem>>, vector<1x32xf32>
    %16 = vector.broadcast %15 : vector<1x32xf32> to vector<64x32xf32>
    %17 = arith.addf %14, %16 : vector<64x32xf32>
    %cst_12 = arith.constant dense<0xFF800000> : vector<64xf32>
    %18 = vector.multi_reduction <maximumf>, %17, %cst_12 [1] : vector<64x32xf32> to vector<64xf32>
    %19 = vector.shape_cast %18 : vector<64xf32> to vector<64x1xf32>
    %20 = vector.broadcast %19 : vector<64x1xf32> to vector<64x32xf32>
    %21 = arith.subf %17, %20 : vector<64x32xf32>
    %22 = math.exp %21 : vector<64x32xf32>
    %cst_13 = arith.constant dense<0.000000e+00> : vector<64xf32>
    %23 = vector.multi_reduction <add>, %22, %cst_13 [1] : vector<64x32xf32> to vector<64xf32>
    %24 = vector.shape_cast %23 : vector<64xf32> to vector<64x1xf32>
    %25 = tpu.reciprocal %24 {approx = true} : vector<64x1xf32> -> vector<64x1xf32>
    %26 = vector.broadcast %25 : vector<64x1xf32> to vector<64x32xf32>
    %27 = arith.mulf %22, %26 : vector<64x32xf32>
    %28 = arith.truncf %27 : vector<64x32xf32> to vector<64x32xbf16>
    %29 = vector.shape_cast %28 : vector<64x32xbf16> to vector<4x16x32xbf16>
    %30 = vector.shape_cast %9 : vector<64x256xbf16> to vector<4x16x256xbf16>
    "tpu.trace_start"() <{level = 10 : i32, message = "bmc,bmf->bcf"}> : () -> ()
    %cst_14 = arith.constant dense<0.000000e+00> : vector<4x32x256xf32>
    %31 = tpu.matmul %29, %30, %cst_14 {dimension_numbers = #tpu.dot_dimension_numbers<[1], [1], [2], [2], [0, 0, 0, 2, 1, 2], [0], [0]>} : vector<4x16x32xbf16>, vector<4x16x256xbf16>, vector<4x32x256xf32> -> vector<4x32x256xf32>
    "tpu.trace_stop"() : () -> ()
    %c0_15 = arith.constant 0 : index
    %c0_16 = arith.constant 0 : index
    %32 = vector.load %arg7[%c0_15, %c0_16] : memref<32x256xf32, #tpu.memory_space<vmem>>, vector<32x256xf32>
    %33 = vector.shape_cast %32 : vector<32x256xf32> to vector<1x32x256xf32>
    %34 = vector.broadcast %33 : vector<1x32x256xf32> to vector<4x32x256xf32>
    %35 = arith.mulf %31, %34 : vector<4x32x256xf32>
    %36 = arith.mulf %35, %35 : vector<4x32x256xf32>
    %cst_17 = arith.constant dense<0.000000e+00> : vector<4x32xf32>
    %37 = vector.multi_reduction <add>, %36, %cst_17 [2] : vector<4x32x256xf32> to vector<4x32xf32>
    %38 = vector.shape_cast %37 : vector<4x32xf32> to vector<4x32x1xf32>
    %cst_18 = arith.constant 1.000000e-24 : f32
    %39 = vector.broadcast %cst_18 : f32 to vector<4x32x1xf32>
    %40 = arith.maximumf %38, %39 : vector<4x32x1xf32>
    %41 = math.rsqrt %40 : vector<4x32x1xf32>
    %42 = arith.mulf %41, %41 : vector<4x32x1xf32>
    %43 = arith.mulf %38, %42 : vector<4x32x1xf32>
    %cst_19 = arith.constant dense<0.000000e+00> : vector<4x1xf32>
    %44 = vector.multi_reduction <add>, %43, %cst_19 [1] : vector<4x32x1xf32> to vector<4x1xf32>
    %45 = vector.shape_cast %44 : vector<4x1xf32> to vector<4x1x1xf32>
    %cst_20 = arith.constant 1.000000e-24 : f32
    %46 = vector.broadcast %cst_20 : f32 to vector<4x1x1xf32>
    %47 = arith.maximumf %45, %46 : vector<4x1x1xf32>
    %48 = math.rsqrt %47 : vector<4x1x1xf32>
    %49 = vector.broadcast %48 : vector<4x1x1xf32> to vector<4x32x1xf32>
    %50 = arith.mulf %41, %49 : vector<4x32x1xf32>
    %51 = vector.broadcast %50 : vector<4x32x1xf32> to vector<4x32x256xf32>
    %52 = arith.mulf %35, %51 : vector<4x32x256xf32>
    %53 = arith.truncf %52 : vector<4x32x256xf32> to vector<4x32x256xbf16>
    %c0_21 = arith.constant 0 : index
    %c0_22 = arith.constant 0 : index
    %c0_23 = arith.constant 0 : index
    %54 = vector.load %arg8[%c0_21, %c0_22, %c0_23] : memref<4x32x256xbf16, #tpu.memory_space<vmem>>, vector<4x32x256xbf16>
    tpu.vector_store %arg8[%c0_21, %c0_22, %c0_23], %53 {strides = array<i32>} : memref<4x32x256xbf16, #tpu.memory_space<vmem>>, vector<4x32x256xbf16>,
    return
  }
  func.func @transform_0(%arg0: i32) -> (i32, i32, i32) {
    %c0_i32 = arith.constant 0 : i32
    %c0_i32_0 = arith.constant 0 : i32
    %c0_i32_1 = arith.constant 0 : i32
    return %arg0, %c0_i32, %c0_i32_0 : i32, i32, i32
  }
  func.func @transform_1(%arg0: i32) -> (i32, i32) {
    %c0_i32 = arith.constant 0 : i32
    %c0_i32_0 = arith.constant 0 : i32
    %c0_i32_1 = arith.constant 0 : i32
    return %c0_i32, %c0_i32_0 : i32, i32
  }
  func.func @transform_2(%arg0: i32) -> (i32, i32) {
    %c0_i32 = arith.constant 0 : i32
    %c0_i32_0 = arith.constant 0 : i32
    %c0_i32_1 = arith.constant 0 : i32
    return %c0_i32, %c0_i32_0 : i32, i32
  }
  func.func @transform_3(%arg0: i32) -> (i32, i32) {
    %c0_i32 = arith.constant 0 : i32
    %c0_i32_0 = arith.constant 0 : i32
    %c0_i32_1 = arith.constant 0 : i32
    return %c0_i32, %c0_i32_0 : i32, i32
  }
  func.func @transform_4(%arg0: i32) -> (i32, i32) {
    %c0_i32 = arith.constant 0 : i32
    %c0_i32_0 = arith.constant 0 : i32
    %c0_i32_1 = arith.constant 0 : i32
    return %c0_i32, %c0_i32_0 : i32, i32
  }
  func.func @transform_5(%arg0: i32) -> (i32, i32) {
    %c0_i32 = arith.constant 0 : i32
    %c0_i32_0 = arith.constant 0 : i32
    %c0_i32_1 = arith.constant 0 : i32
    return %c0_i32, %c0_i32_0 : i32, i32
  }
  func.func @transform_6(%arg0: i32) -> (i32, i32) {
    %c0_i32 = arith.constant 0 : i32
    %c0_i32_0 = arith.constant 0 : i32
    %c0_i32_1 = arith.constant 0 : i32
    return %c0_i32, %c0_i32_0 : i32, i32
  }
  func.func @transform_7(%arg0: i32) -> (i32, i32, i32) {
    %c0_i32 = arith.constant 0 : i32
    %c0_i32_0 = arith.constant 0 : i32
    %c0_i32_1 = arith.constant 0 : i32
    return %arg0, %c0_i32, %c0_i32_0 : i32, i32, i32
  }
}

module attributes {stable_mosaic.version = 11 : i64} {
  func.func @_hidden_fc_kernel(%arg0: i32, %arg1: i32, %arg2: memref<4x8192xbf16, #tpu.memory_space<vmem>>, %arg3: memref<8192x256xbf16, #tpu.memory_space<vmem>>, %arg4: memref<1x256xf32, #tpu.memory_space<vmem>>, %arg5: memref<1x256xf32, #tpu.memory_space<vmem>>, %arg6: memref<4x256xf32, #tpu.memory_space<vmem>>) attributes {dimension_semantics = [#tpu.dimension_semantics<parallel>, #tpu.dimension_semantics<arbitrary>], iteration_bounds = array<i64: 1, 1>, scalar_prefetch = 0 : i64, scratch_operands = 0 : i64, tpu.core_type = #tpu.core_type<tc>, window_params = [{transform_indices = @transform_0, window_bounds = array<i64: 4, 8192>}, {transform_indices = @transform_1, window_bounds = array<i64: 8192, 256>}, {transform_indices = @transform_2, window_bounds = array<i64: 1, 256>}, {transform_indices = @transform_3, window_bounds = array<i64: 1, 256>}, {transform_indices = @transform_4, window_bounds = array<i64: 4, 256>}]} {
    %c0_i32 = arith.constant 0 : i32
    %0 = arith.cmpi eq, %arg1, %c0_i32 : i32
    %1 = arith.extui %0 : i1 to i32
    %c0_i32_0 = arith.constant 0 : i32
    %2 = arith.cmpi ne, %1, %c0_i32_0 : i32
    scf.if %2 {
      %cst_10 = arith.constant 0.000000e+00 : f32
      %12 = vector.broadcast %cst_10 : f32 to vector<4x256xf32>
      %c0_11 = arith.constant 0 : index
      %c0_12 = arith.constant 0 : index
      %13 = vector.load %arg6[%c0_11, %c0_12] : memref<4x256xf32, #tpu.memory_space<vmem>>, vector<4x256xf32>
      tpu.vector_store %arg6[%c0_11, %c0_12], %12 {strides = array<i32>} : memref<4x256xf32, #tpu.memory_space<vmem>>, vector<4x256xf32>,
    } else {
    }
    %c0 = arith.constant 0 : index
    %c0_1 = arith.constant 0 : index
    %3 = vector.load %arg6[%c0, %c0_1] : memref<4x256xf32, #tpu.memory_space<vmem>>, vector<4x256xf32>
    %c0_2 = arith.constant 0 : index
    %c0_3 = arith.constant 0 : index
    %4 = vector.load %arg2[%c0_2, %c0_3] : memref<4x8192xbf16, #tpu.memory_space<vmem>>, vector<4x8192xbf16>
    %c0_4 = arith.constant 0 : index
    %c0_5 = arith.constant 0 : index
    %5 = vector.load %arg3[%c0_4, %c0_5] : memref<8192x256xbf16, #tpu.memory_space<vmem>>, vector<8192x256xbf16>
    %cst = arith.constant dense<0.000000e+00> : vector<4x256xf32>
    %6 = tpu.matmul %4, %5, %cst {dimension_numbers = #tpu.dot_dimension_numbers<[1], [0], [0], [1], [0, 0, 1, 1], [], []>} : vector<4x8192xbf16>, vector<8192x256xbf16>, vector<4x256xf32> -> vector<4x256xf32>
    %7 = arith.addf %3, %6 : vector<4x256xf32>
    %c0_6 = arith.constant 0 : index
    %c0_7 = arith.constant 0 : index
    %8 = vector.load %arg6[%c0_6, %c0_7] : memref<4x256xf32, #tpu.memory_space<vmem>>, vector<4x256xf32>
    tpu.vector_store %arg6[%c0_6, %c0_7], %7 {strides = array<i32>} : memref<4x256xf32, #tpu.memory_space<vmem>>, vector<4x256xf32>,
    %c0_i32_8 = arith.constant 0 : i32
    %9 = arith.cmpi eq, %arg1, %c0_i32_8 : i32
    %10 = arith.extui %9 : i1 to i32
    %c0_i32_9 = arith.constant 0 : i32
    %11 = arith.cmpi ne, %10, %c0_i32_9 : i32
    scf.if %11 {
      %c0_10 = arith.constant 0 : index
      %c0_11 = arith.constant 0 : index
      %12 = vector.load %arg6[%c0_10, %c0_11] : memref<4x256xf32, #tpu.memory_space<vmem>>, vector<4x256xf32>
      %c0_12 = arith.constant 0 : index
      %c0_13 = arith.constant 0 : index
      %13 = vector.load %arg4[%c0_12, %c0_13] : memref<1x256xf32, #tpu.memory_space<vmem>>, vector<1x256xf32>
      %14 = vector.broadcast %13 : vector<1x256xf32> to vector<4x256xf32>
      %15 = arith.mulf %12, %14 : vector<4x256xf32>
      %c0_14 = arith.constant 0 : index
      %c0_15 = arith.constant 0 : index
      %16 = vector.load %arg5[%c0_14, %c0_15] : memref<1x256xf32, #tpu.memory_space<vmem>>, vector<1x256xf32>
      %17 = vector.broadcast %16 : vector<1x256xf32> to vector<4x256xf32>
      %18 = arith.addf %15, %17 : vector<4x256xf32>
      %cst_16 = arith.constant 0.000000e+00 : f32
      %cst_17 = arith.constant 6.000000e+00 : f32
      %19 = vector.broadcast %cst_16 : f32 to vector<4x256xf32>
      %20 = arith.maximumf %19, %18 : vector<4x256xf32>
      %21 = vector.broadcast %cst_17 : f32 to vector<4x256xf32>
      %22 = arith.minimumf %21, %20 : vector<4x256xf32>
      %c0_18 = arith.constant 0 : index
      %c0_19 = arith.constant 0 : index
      %23 = vector.load %arg6[%c0_18, %c0_19] : memref<4x256xf32, #tpu.memory_space<vmem>>, vector<4x256xf32>
      tpu.vector_store %arg6[%c0_18, %c0_19], %22 {strides = array<i32>} : memref<4x256xf32, #tpu.memory_space<vmem>>, vector<4x256xf32>,
    } else {
    }
    return
  }
  func.func @transform_0(%arg0: i32, %arg1: i32) -> (i32, i32) {
    %c0_i32 = arith.constant 0 : i32
    %c0_i32_0 = arith.constant 0 : i32
    return %c0_i32, %arg1 : i32, i32
  }
  func.func @transform_1(%arg0: i32, %arg1: i32) -> (i32, i32) {
    %c0_i32 = arith.constant 0 : i32
    return %arg1, %arg0 : i32, i32
  }
  func.func @transform_2(%arg0: i32, %arg1: i32) -> (i32, i32) {
    %c0_i32 = arith.constant 0 : i32
    %c0_i32_0 = arith.constant 0 : i32
    return %c0_i32, %arg0 : i32, i32
  }
  func.func @transform_3(%arg0: i32, %arg1: i32) -> (i32, i32) {
    %c0_i32 = arith.constant 0 : i32
    %c0_i32_0 = arith.constant 0 : i32
    return %c0_i32, %arg0 : i32, i32
  }
  func.func @transform_4(%arg0: i32, %arg1: i32) -> (i32, i32) {
    %c0_i32 = arith.constant 0 : i32
    %c0_i32_0 = arith.constant 0 : i32
    return %c0_i32, %arg0 : i32, i32
  }
}

</mosaic_0001>

<bundles_post_ra>
// kernel: netvlad_forward.2
= control target key start
LH: loop header
LB: loop body
LE: loop exit
PB: predicated region body
PF: predicated region fallthrough
CT: control target
= control target key end

     0   :  { %12 = vsyncpa [#allocation3], 0  ;;  %s2177_s0 = inlined_call_operand.hbm [shape: bf16[4,16,256], index: 0, kind: input, shape index: {}]   ;;  %s2178_s1 = inlined_call_operand.hbm [shape: f32[1,256], index: 1, kind: input, shape index: {}]   ;;  %s2179_s2 = inlined_call_operand.hbm [shape: f32[1,256], index: 2, kind: input, shape index: {}]   ;;  %s2180_s3 = inlined_call_operand.hbm [shape: bf16[256,32], index: 3, kind: input, shape index: {}]   ;;  %s2181_s4 = inlined_call_operand.hbm [shape: f32[1,32], index: 4, kind: input, shape index: {}]   ;;  %s2182_s5 = inlined_call_operand.hbm [shape: f32[1,32], index: 5, kind: input, shape index: {}]   ;;  %s2183_s6 = inlined_call_operand.hbm [shape: f32[32,256], index: 6, kind: input, shape index: {}]   ;;  %s2184_s7 = inlined_call_operand.hbm [shape: bf16[4,32,256], index: 7, kind: output, shape index: {}]  }
   0x1   :  { %13 = vsyncpa [#allocation6], 0 }
   0x2   :  { %14 = vsyncpa [#allocation9], 0 }
   0x3   :  { %15 = vsyncpa [#allocation12], 0 }
   0x4   :  { %16 = vsyncpa [#allocation4], 0  ;;  %s1615_s24 = smov [#allocation5]   ;;  %s1616_s26 = smov [#allocation8]  }
   0x5   :  { %s35_s25 = sshll.u32 %s1615_s24, 4  ;;  %s54_s27 = sshll.u32 %s1616_s26, 4  ;;  %s36_s25 = int_to_ptr.vmem [resolvable:$true] %s35_s25  ;;  %s1670_s27 = int_to_ptr.vmem [resolvable:$true] %s54_s27 }
   0x6   :  { %s1429_s30 = scalar_lea.hbm %s2178_s1, 32 }
   0x7   :  { %p1430_p0 = scmp.ne.s32.totalorder %s2178_s1, %s1429_s30  ;;  %p1433_p1 = scmp.lt.u32.totalorder %s1429_s30, %s2178_s1 }
   0x9   :  { %p1435_p2 = pnand %p1433_p1, %p1430_p0 }
   0xb   :  { %1438 = shalt.err (!%p1435_p2)
}
   0xc   :  { %s1439_s12 = scalar_lea.vmem %s36_s25, 32  ;;  %p1444_p4 = scmp.lt.s32.totalorder %s36_s25, %s36_s25 }
   0xd   :  { %p1440_p3 = scmp.ne.s32.totalorder %s36_s25, %s1439_s12  ;;  %p1445_p5 = scmp.lt.s32.totalorder %s1439_s12, %s1439_s12 }
   0xf   :  { %p1446_p6 = por %p1445_p5, %p1444_p4 }
  0x11   :  { %p1447_p7 = pnand %p1446_p6, %p1440_p3 }
  0x13   :  { %1450 = shalt.err (!%p1447_p7)
}
  0x14   :  { %38 = dma.hbm_to_vmem [thread:$0]  %s2178_s1, 32, %s36_s25, [#allocation6]  }
  0x15   :  { %s1451_s17 = scalar_lea.hbm %s2180_s3, 2048 }
  0x16   :  { %p1452_p8 = scmp.ne.s32.totalorder %s2180_s3, %s1451_s17  ;;  %p1455_p9 = scmp.lt.u32.totalorder %s1451_s17, %s2180_s3 }
  0x18   :  { %p1457_p10 = pnand %p1455_p9, %p1452_p8 }
  0x1a   :  { %1460 = shalt.err (!%p1457_p10)
}
  0x1b   :  { %s1461_s22 = scalar_lea.vmem %s1670_s27, 2048  ;;  %p1466_p12 = scmp.lt.s32.totalorder %s1670_s27, %s1670_s27 }
  0x1c   :  { %p1462_p11 = scmp.ne.s32.totalorder %s1670_s27, %s1461_s22  ;;  %p1467_p13 = scmp.lt.s32.totalorder %s1461_s22, %s1461_s22 }
  0x1e   :  { %p1468_p0 = por %p1467_p13, %p1466_p12 }
  0x20   :  { %p1469_p1 = pnand %p1468_p0, %p1462_p11 }
  0x22   :  { %1472 = shalt.err (!%p1469_p1)
}
  0x23   :  { %s1617_s1 = smov 64   ;;  %s1618_s23 = smov 4  }
  0x24   :  { %60 = dma.hbm_to_vmem [thread:$0]  %s2180_s3, 2048, %s1670_s27, [#allocation9], %s1617_s1, %s1617_s1, %s1618_s23  }
  0x25   :  { %s1619_s26 = smov [#allocation11]   ;;  %s1620_s29 = smov [#allocation2]  }
  0x26   :  { %s77_s28 = sshll.u32 %s1619_s26, 4  ;;  %s22_s30 = sshll.u32 %s1620_s29, 4  ;;  %s78_s28 = int_to_ptr.vmem [resolvable:$true] %s77_s28  ;;  %s1701_s30 = int_to_ptr.vmem [resolvable:$true] %s22_s30 }
  0x27   :  { %s1473_s10 = scalar_lea.hbm %s2182_s5, 16 }
  0x28   :  { %p1474_p2 = scmp.ne.s32.totalorder %s2182_s5, %s1473_s10  ;;  %p1477_p3 = scmp.lt.u32.totalorder %s1473_s10, %s2182_s5 }
  0x2a   :  { %p1479_p4 = pnand %p1477_p3, %p1474_p2 }
  0x2c   :  { %1482 = shalt.err (!%p1479_p4)
}
  0x2d   :  { %s1483_s3 = scalar_lea.vmem %s78_s28, 16  ;;  %s1487_s27 = scalar_lea.vmem %s78_s28, 32 }
  0x2e   :  { %p1484_p5 = scmp.ne.s32.totalorder %s78_s28, %s1483_s3  ;;  %p1488_p6 = scmp.lt.s32.totalorder %s78_s28, %s78_s28 }
  0x2f   :  { %p1489_p7 = scmp.lt.s32.totalorder %s1487_s27, %s1483_s3 }
  0x31   :  { %p1490_p8 = por %p1489_p7, %p1488_p6 }
  0x33   :  { %p1491_p9 = pnand %p1490_p8, %p1484_p5 }
  0x35   :  { %1494 = shalt.err (!%p1491_p9)
}
  0x36   :  { %80 = dma.hbm_to_vmem [thread:$0]  %s2182_s5, 16, %s78_s28, [#allocation12]  }
  0x37   :  { %s1495_s19 = scalar_lea.hbm %s2177_s0, 1024 }
  0x38   :  { %p1496_p10 = scmp.ne.s32.totalorder %s2177_s0, %s1495_s19  ;;  %p1499_p11 = scmp.lt.u32.totalorder %s1495_s19, %s2177_s0 }
  0x3a   :  { %p1501_p12 = pnand %p1499_p11, %p1496_p10 }
  0x3c   :  { %1504 = shalt.err (!%p1501_p12)
}
  0x3d   :  { %s1505_s23 = scalar_lea.vmem %s1701_s30, 1024  ;;  %p1510_p0 = scmp.lt.s32.totalorder %s1701_s30, %s1701_s30 }
  0x3e   :  { %p1506_p13 = scmp.ne.s32.totalorder %s1701_s30, %s1505_s23  ;;  %p1511_p1 = scmp.lt.s32.totalorder %s1505_s23, %s1505_s23 }
  0x40   :  { %p1512_p2 = por %p1511_p1, %p1510_p0 }
  0x42   :  { %p1513_p3 = pnand %p1512_p2, %p1506_p13 }
  0x44   :  { %1516 = shalt.err (!%p1513_p3)
}
  0x45   :  { %s1621_s5 = smov 128   ;;  %s1622_s24 = smov 8  }
  0x46   :  { %28 = dma.hbm_to_vmem [thread:$0]  %s2177_s0, 1024, %s1701_s30, [#allocation3], %s1621_s5, %s1621_s5, %s1622_s24  }
  0x47   :  { %s1623_s28 = smov [#allocation7]   ;;  %s1624_s8 = smov [#allocation10]  }
  0x48   :  { %s45_s29 = sshll.u32 %s1623_s28, 4  ;;  %s67_s9 = sshll.u32 %s1624_s8, 4  ;;  %s46_s29 = int_to_ptr.vmem [resolvable:$true] %s45_s29  ;;  %s68_s9 = int_to_ptr.vmem [resolvable:$true] %s67_s9 }
  0x49   :  { %s1517_s12 = scalar_lea.hbm %s2179_s2, 32 }
  0x4a   :  { %p1518_p4 = scmp.ne.s32.totalorder %s2179_s2, %s1517_s12  ;;  %p1521_p5 = scmp.lt.u32.totalorder %s1517_s12, %s2179_s2 }
  0x4c   :  { %p1523_p6 = pnand %p1521_p5, %p1518_p4 }
  0x4e   :  { %1526 = shalt.err (!%p1523_p6)
}
  0x4f   :  { %s1527_s0 = scalar_lea.vmem %s46_s29, 32  ;;  %p1532_p8 = scmp.lt.s32.totalorder %s46_s29, %s46_s29 }
  0x50   :  { %p1528_p7 = scmp.ne.s32.totalorder %s46_s29, %s1527_s0  ;;  %p1533_p9 = scmp.lt.s32.totalorder %s1527_s0, %s1527_s0 }
  0x52   :  { %p1534_p10 = por %p1533_p9, %p1532_p8 }
  0x54   :  { %p1535_p11 = pnand %p1534_p10, %p1528_p7 }
  0x56   :  { %1538 = shalt.err (!%p1535_p11)
}
  0x57   :  { %48 = dma.hbm_to_vmem [thread:$0]  %s2179_s2, 32, %s46_s29, [#allocation6]  }
  0x58   :  { %s1539_s18 = scalar_lea.hbm %s2181_s4, 16 }
  0x59   :  { %p1540_p12 = scmp.ne.s32.totalorder %s2181_s4, %s1539_s18  ;;  %p1543_p13 = scmp.lt.u32.totalorder %s1539_s18, %s2181_s4 }
  0x5b   :  { %p1545_p0 = pnand %p1543_p13, %p1540_p12 }
  0x5d   :  { %1548 = shalt.err (!%p1545_p0)
}
  0x5e   :  { %s1549_s1 = scalar_lea.vmem %s68_s9, 16  ;;  %s1553_s23 = scalar_lea.vmem %s68_s9, 32 }
  0x5f   :  { %p1550_p1 = scmp.ne.s32.totalorder %s68_s9, %s1549_s1  ;;  %p1554_p2 = scmp.lt.s32.totalorder %s68_s9, %s68_s9 }
  0x60   :  { %p1555_p3 = scmp.lt.s32.totalorder %s1553_s23, %s1549_s1 }
  0x62   :  { %p1556_p4 = por %p1555_p3, %p1554_p2 }
  0x64   :  { %p1557_p5 = pnand %p1556_p4, %p1550_p1 }
  0x66   :  { %1560 = shalt.err (!%p1557_p5)
}
  0x67   :  { %70 = dma.hbm_to_vmem [thread:$0]  %s2181_s4, 16, %s68_s9, [#allocation9]  }
  0x68   :  { %s1625_s26 = smov [#allocation13]   ;;  %s1561_s10 = scalar_lea.hbm %s2183_s6, 1024 }
  0x69   :  { %s86_s28 = sshll.u32 %s1625_s26, 4  ;;  %p1562_p6 = scmp.ne.s32.totalorder %s2183_s6, %s1561_s10  ;;  %s87_s28 = int_to_ptr.vmem [resolvable:$true] %s86_s28 }
  0x6a   :  { %p1565_p7 = scmp.lt.u32.totalorder %s1561_s10, %s2183_s6 }
  0x6c   :  { %p1567_p8 = pnand %p1565_p7, %p1562_p6 }
  0x6e   :  { %1570 = shalt.err (!%p1567_p8)
}
  0x6f   :  { %s1571_s3 = scalar_lea.vmem %s87_s28, 1024  ;;  %p1576_p10 = scmp.lt.s32.totalorder %s87_s28, %s87_s28 }
  0x70   :  { %p1572_p9 = scmp.ne.s32.totalorder %s87_s28, %s1571_s3  ;;  %p1577_p11 = scmp.lt.s32.totalorder %s1571_s3, %s1571_s3 }
  0x72   :  { %p1578_p12 = por %p1577_p11, %p1576_p10 }
  0x74   :  { %p1579_p13 = pnand %p1578_p12, %p1572_p9 }
  0x76   :  { %1582 = shalt.err (!%p1579_p13)
}
  0x77   :  { %s1626_s4 = smov 256   ;;  %s1627_s9 = smov 16  }
  0x78   :  { %92 = dma.hbm_to_vmem [thread:$0]  %s2183_s6, 1024, %s87_s28, [#allocation12], %s1626_s4, %s1626_s4, %s1627_s9  }
  0x79   :  { %1605 = dma.done.wait [#allocation3], 1024  }
  0x7a   :  { %1606 = vsyncadd [#allocation3], 4294966272 }
  0x7b   :  { %1607 = dma.done.wait [#allocation6], 64  }
  0x7c   :  { %1608 = vsyncadd [#allocation6], 4294967232 }
  0x7d   :  { %1609 = dma.done.wait [#allocation9], 2064  }
  0x7e   :  { %1610 = vsyncadd [#allocation9], 4294965232 }
  0x7f   :  { %1611 = dma.done.wait [#allocation12], 1040  }
  0x80   :  { %1612 = vsyncadd [#allocation12], 4294966256  ;;  %v1341_v0 = vld [vmem:[#allocation8 + $0x40] sm:$0xff]   ;;  %v1343_v2 = vld [vmem:[#allocation8 + $0x48] sm:$0xff]   ;;  %v141_v5 = vlaneseq  ;;  %vm426_vm0 = vcmask 261120   ;;  %vm535_vm1 = vcmask 130048  }
  0x81   :  { %v1342_v1 = vld [vmem:[#allocation8] sm:$0xff]   ;;  %1286 = vmatprep.subr.bf16.mxu0 %v1341_v0  ;;  %v1344_v3 = vld [vmem:[#allocation8 + $0x8] sm:$0xff]   ;;  %v1345_v4 = vld [vmem:[#allocation8 + $0x50] sm:$0xff]   ;;  %s1629_s6 = smov [#allocation14]  }
  0x82   :  { %1287 = vmatpush3.bf16.msra.mxu0 %v1342_v1  ;;  %v1346_v6 = vld [vmem:[#allocation8 + $0x10] sm:$0xff]   ;;  %v1347_v7 = vld [vmem:[#allocation8 + $0x58] sm:$0xff]   ;;  %v142_v8 = vshrl.u32 %v141_v5, 7  ;;  %v1349_v10 = vld [vmem:[#allocation8 + $0x60] sm:$0xff]   ;;  %s1213_s30 = sshll.u32 %s1629_s6, 4  ;;  %s1214_s30 = int_to_ptr.vmem [resolvable:$true] %s1213_s30 }
  0x83   :  { %1288 = vmatprep.subr.bf16.mxu0 %v1343_v2  ;;  %v1348_v9 = vld [vmem:[#allocation8 + $0x18] sm:$0xff]   ;;  %v1350_v12 = vld [vmem:[#allocation8 + $0x20] sm:$0xff]   ;;  %v1351_v14 = vld [vmem:[#allocation8 + $0x68] sm:$0xff]   ;;  %s1583_s15 = scalar_lea.vmem %s1214_s30, 2048  ;;  %p1588_p1 = scmp.lt.s32.totalorder %s1214_s30, %s1214_s30 }
  0x84   :  { %v143_v11 = vsub.s32 0, %v142_v8  ;;  %v147_v13 = vsub.s32 1, %v142_v8  ;;  %v115_v15 = vld [vmem:[#allocation2] sm:$0xff]  ;;  %v116_v16 = vld [vmem:[#allocation2 + $0x8] sm:$0xff]  ;;  %v117_v23 = vld [vmem:[#allocation2 + $0x10] sm:$0xff]  ;;  %p1584_p0 = scmp.ne.s32.totalorder %s1214_s30, %s1583_s15  ;;  %p1589_p2 = scmp.lt.s32.totalorder %s1583_s15, %s1583_s15 }
  0x85   :  { %v123_v17 = vld [vmem:[#allocation5] sm:$0x3]  ;;  %v124_v18 = vunpack.c.l.bf16 %v115_v15  ;;  %v125_v19 = vunpack.c.h.bf16 %v115_v15  ;;  %v126_v20 = vunpack.c.l.bf16 %v116_v16  ;;  %v127_v21 = vunpack.c.h.bf16 %v116_v16  ;;  %v167_v22 = vld [vmem:[#allocation7] sm:$0x3]  ;;  %v118_v24 = vld [vmem:[#allocation2 + $0x18] sm:$0xff] }
  0x86   :  { %1289 = vmatpush3.bf16.msra.mxu0 %v1344_v3  ;;  %v1771_v25 = vrot.slane %v123_v17, %v143_v11  ;;  %v1773_v26 = vrot.slane %v123_v17, %v147_v13  ;;  %v1775_v27 = vrot.slane %v167_v22, %v143_v11  ;;  %v1777_v28 = vrot.slane %v167_v22, %v147_v13  ;;  %v1352_v29 = vld [vmem:[#allocation8 + $0x28] sm:$0xff]   ;;  %v1353_v32 = vld [vmem:[#allocation8 + $0x70] sm:$0xff]   ;;  %v1355_v46 = vld [vmem:[#allocation8 + $0x78] sm:$0xff]   ;;  %p1590_p3 = por %p1589_p2, %p1588_p1 }
  0x87   :  { %1290 = vmatprep.subr.bf16.mxu0 %v1345_v4  ;;  %v129_v30 = vunpack.c.h.bf16 %v117_v23  ;;  %v131_v31 = vunpack.c.h.bf16 %v118_v24  ;;  %v1354_v43 = vld [vmem:[#allocation8 + $0x30] sm:$0xff]   ;;  %v119_v48 = vld [vmem:[#allocation2 + $0x20] sm:$0xff]  ;;  %v120_v49 = vld [vmem:[#allocation2 + $0x28] sm:$0xff]  ;;  %v128_v51 = vunpack.c.l.bf16 %v117_v23  ;;  %v130_v52 = vunpack.c.l.bf16 %v118_v24 }
  0x88   :  { %v152_v33 = vmul.f32 %v1773_v26, %v125_v19  ;;  %v154_v34 = vmul.f32 %v1773_v26, %v127_v21  ;;  %v151_v35 = vmul.f32 %v1771_v25, %v124_v18  ;;  %v153_v36 = vmul.f32 %v1771_v25, %v126_v20  ;;  %v1356_v53 = vld [vmem:[#allocation8 + $0x38] sm:$0xff]   ;;  %v121_v61 = vld [vmem:[#allocation2 + $0x30] sm:$0xff]  ;;  %p1591_p4 = pnand %p1590_p3, %p1584_p0 }
  0x89   :  { %v156_v37 = vmul.f32 %v1773_v26, %v129_v30  ;;  %v158_v38 = vmul.f32 %v1773_v26, %v131_v31  ;;  %v133_v55 = vunpack.c.h.bf16 %v119_v48  ;;  %v135_v56 = vunpack.c.h.bf16 %v120_v49  ;;  %v122_v62 = vld [vmem:[#allocation2 + $0x38] sm:$0xff]  ;;  %v1244_v30 = vld [vmem:[#allocation10] ss:$0 sm:$0xff] }
  0x8a   :  { %1291 = vmatpush3.bf16.msra.mxu0 %v1346_v6  ;;  %v180_v39 = vadd.f32 %v1777_v28, %v152_v33  ;;  %v182_v40 = vadd.f32 %v1777_v28, %v154_v34  ;;  %v179_v41 = vadd.f32 %v1775_v27, %v151_v35  ;;  %v181_v42 = vadd.f32 %v1775_v27, %v153_v36  ;;  %v1245_v33 = vld [vmem:[#allocation11] ss:$0 sm:$0xff] }
  0x8b   :  { %1292 = vmatprep.subr.bf16.mxu0 %v1347_v7  ;;  %v184_v44 = vadd.f32 %v1777_v28, %v156_v37  ;;  %v186_v45 = vadd.f32 %v1777_v28, %v158_v38  ;;  %v155_v57 = vmul.f32 %v1771_v25, %v128_v51  ;;  %v157_v58 = vmul.f32 %v1771_v25, %v130_v52 }
  0x8c   :  { %v196_v47 = vpack.c.bf16 %v182_v40, %v180_v39  ;;  %v195_v50 = vpack.c.bf16 %v181_v42, %v179_v41  ;;  %v160_v59 = vmul.f32 %v1773_v26, %v133_v55  ;;  %v162_v60 = vmul.f32 %v1773_v26, %v135_v56 }
  0x8d   :  { %v198_v54 = vpack.c.bf16 %v186_v45, %v184_v44  ;;  %v183_v63 = vadd.f32 %v1775_v27, %v155_v57  ;;  %v185_v0 = vadd.f32 %v1775_v27, %v157_v58  ;;  %v132_v1 = vunpack.c.l.bf16 %v119_v48 }
  0x8e   :  { %1293 = vmatpush3.bf16.msra.mxu0 %v1348_v9  ;;  %363 = vmatprep.mubr.bf16.mxu0 %v196_v47  ;;  %v134_v2 = vunpack.c.l.bf16 %v120_v49  ;;  %v188_v3 = vadd.f32 %v1777_v28, %v160_v59  ;;  %v190_v4 = vadd.f32 %v1777_v28, %v162_v60  ;;  %v137_v5 = vunpack.c.h.bf16 %v121_v61 }
  0x8f   :  { %1294 = vmatprep.subr.bf16.mxu0 %v1349_v10  ;;  %542 = vmatprep.subr.bf16.mxu1 %v196_v47  ;;  %v139_v6 = vunpack.c.h.bf16 %v122_v62  ;;  %v1799_v7 = vpack.c.bf16 %v185_v0, %v183_v63  ;;  %v159_v8 = vmul.f32 %v1771_v25, %v132_v1  ;;  %v136_v15 = vunpack.c.l.bf16 %v121_v61 }
  0x90   :  { %543 = vmatpush1.bf16.msra.mxu1 %v195_v50  ;;  %v161_v9 = vmul.f32 %v1771_v25, %v134_v2  ;;  %v1803_v10 = vpack.c.bf16 %v190_v4, %v188_v3  ;;  %v164_v11 = vmul.f32 %v1773_v26, %v137_v5  ;;  %v138_v16 = vunpack.c.l.bf16 %v122_v62 }
  0x91   :  { %617 = vmatprep.subr.bf16.mxu1 %v198_v54  ;;  %v187_v13 = vadd.f32 %v1775_v27, %v159_v8  ;;  %v163_v20 = vmul.f32 %v1771_v25, %v136_v15 }
  0x92   :  { %1295 = vmatpush3.bf16.msra.mxu0 %v1350_v12  ;;  %v166_v12 = vmul.f32 %v1773_v26, %v139_v6  ;;  %v192_v17 = vadd.f32 %v1777_v28, %v164_v11  ;;  %v165_v21 = vmul.f32 %v1771_v25, %v138_v16 }
  0x93   :  { %1296 = vmatprep.subr.bf16.mxu0 %v1351_v14  ;;  %v189_v14 = vadd.f32 %v1775_v27, %v161_v9  ;;  %v191_v23 = vadd.f32 %v1775_v27, %v163_v20 }
  0x94   :  { %v194_v18 = vadd.f32 %v1777_v28, %v166_v12  ;;  %v193_v24 = vadd.f32 %v1775_v27, %v165_v21 }
  0x95   :  { %v1813_v19 = vpack.c.bf16 %v189_v14, %v187_v13 }
  0x96   :  { %1297 = vmatpush3.bf16.msra.mxu0 %v1352_v29  ;;  %v1817_v22 = vpack.c.bf16 %v194_v18, %v192_v17  ;;  %v1823_v26 = vpack.c.bf16 %v193_v24, %v191_v23 }
  0x97   :  { %1298 = vmatprep.subr.bf16.mxu0 %v1353_v32 }
  0x9a   :  { %1299 = vmatpush3.bf16.msra.mxu0 %v1354_v43 }
  0x9b   :  { %1300 = vmatprep.subr.bf16.mxu0 %v1355_v46 }
  0x9e   :  { %1301 = vmatpush3.bf16.msra.mxu0 %v1356_v53 }
  0xa1   :  { %364 = vmatmul.mubr.bf16.vlgmr.msra.gmra.mrb[0].mxu0 %v195_v50 }
  0xa2   :  { %371 = vmatprep.mubr.bf16.mxu0 %v198_v54 }
  0xa9   :  { %372 = vmatmul.mubr.bf16.gmra.mrb[4].mxu0 %v1799_v7 }
  0xaa   :  { %379 = vmatprep.mubr.bf16.mxu0 %v1803_v10 }
  0xb1   :  { %380 = vmatmul.mubr.bf16.gmra.mrb[8].mxu0 %v1813_v19 }
  0xb2   :  { %387 = vmatprep.mubr.bf16.mxu0 %v1817_v22 }
  0xb9   :  { %388 = vmatmul.mubr.bf16.gmra.mrb[12].mxu0 %v1823_v26 }
 0x174   :  { %v1302_v28 = vpop.f32.mrb[0].mxu0 }
 0x175   :  { %v1303_v29 = vpop.f32.mrb[1].mxu0 }
 0x176   :  { %v1304_v31 = vadd.f32 %v1303_v29, %v1302_v28  ;;  %v1305_v32 = vpop.f32.mrb[2].mxu0 }
 0x177   :  { %v1306_v25 = vpop.f32.mrb[3].mxu0 }
 0x178   :  { %v403_v34 = vmul.f32 %v1304_v31, %v1244_v30  ;;  %v1307_v35 = vadd.f32 %v1306_v25, %v1305_v32 }
 0x17a   :  { %v404_v36 = vmul.f32 %v1307_v35, %v1244_v30  ;;  %v418_v37 = vadd.f32 %v1245_v33, %v403_v34 }
 0x17c   :  { %v1308_v38 = vpop.f32.mrb[4].mxu0  ;;  %v427_v27 = vsel %vm426_vm0, %v418_v37, -inf  ;;  %v419_v39 = vadd.f32 %v1245_v33, %v404_v36 }
 0x17d   :  { %v1309_v40 = vpop.f32.mrb[5].mxu0  ;;  %428 = vmax.xlane.f32.xlu0 %v427_v27 }
 0x17e   :  { %v1310_v41 = vadd.f32 %v1309_v40, %v1308_v38  ;;  %v1311_v42 = vpop.f32.mrb[6].mxu0  ;;  %v430_v46 = vsel %vm426_vm0, %v419_v39, -inf }
 0x17f   :  { %v1312_v43 = vpop.f32.mrb[7].mxu0 }
 0x180   :  { %v405_v44 = vmul.f32 %v1310_v41, %v1244_v30  ;;  %v1313_v45 = vadd.f32 %v1312_v43, %v1311_v42 }
 0x181   :  { %431 = vmax.xlane.f32.xlu0 %v430_v46 }
 0x182   :  { %v406_v47 = vmul.f32 %v1313_v45, %v1244_v30  ;;  %v420_v48 = vadd.f32 %v1245_v33, %v405_v44 }
 0x184   :  { %v1314_v49 = vpop.f32.mrb[8].mxu0  ;;  %v433_v50 = vsel %vm426_vm0, %v420_v48, -inf  ;;  %v421_v51 = vadd.f32 %v1245_v33, %v406_v47 }
 0x185   :  { %v1315_v52 = vpop.f32.mrb[9].mxu0  ;;  %434 = vmax.xlane.f32.xlu1 %v433_v50 }
 0x186   :  { %v1316_v53 = vadd.f32 %v1315_v52, %v1314_v49  ;;  %v1317_v54 = vpop.f32.mrb[10].mxu0  ;;  %v436_v55 = vsel %vm426_vm0, %v421_v51, -inf }
 0x187   :  { %v1318_v56 = vpop.f32.mrb[11].mxu0 }
 0x188   :  { %v407_v57 = vmul.f32 %v1316_v53, %v1244_v30  ;;  %v1319_v58 = vadd.f32 %v1318_v56, %v1317_v54 }
 0x189   :  { %437 = vmax.xlane.f32.xlu1 %v436_v55 }
 0x18a   :  { %v408_v59 = vmul.f32 %v1319_v58, %v1244_v30  ;;  %v422_v60 = vadd.f32 %v1245_v33, %v407_v57  ;;  %v1628_v57 = vmov 0  }
 0x18b   :  { %574 = vmatprep.mubr.bf16.mxu1 %v1628_v57 }
 0x18c   :  { %v1320_v61 = vpop.f32.mrb[12].mxu0  ;;  %v439_v62 = vsel %vm426_vm0, %v422_v60, -inf  ;;  %v423_v63 = vadd.f32 %v1245_v33, %v408_v59 }
 0x18d   :  { %v1321_v0 = vpop.f32.mrb[13].mxu0  ;;  %440 = vmax.xlane.f32.xlu0 %v439_v62 }
 0x18e   :  { %v1322_v1 = vadd.f32 %v1321_v0, %v1320_v61  ;;  %v1323_v2 = vpop.f32.mrb[14].mxu0  ;;  %v442_v3 = vsel %vm426_vm0, %v423_v63, -inf }
 0x18f   :  { %v1324_v4 = vpop.f32.mrb[15].mxu0  ;;  %443 = vmax.xlane.f32.xlu1 %v442_v3 }
 0x190   :  { %v409_v5 = vmul.f32 %v1322_v1, %v1244_v30  ;;  %v1325_v6 = vadd.f32 %v1324_v4, %v1323_v2 }
 0x192   :  { %v410_v8 = vmul.f32 %v1325_v6, %v1244_v30  ;;  %v424_v9 = vadd.f32 %v1245_v33, %v409_v5 }
 0x194   :  { %v445_v11 = vsel %vm426_vm0, %v424_v9, -inf  ;;  %v425_v12 = vadd.f32 %v1245_v33, %v410_v8 }
 0x195   :  { %446 = vmax.xlane.f32.xlu0 %v445_v11 }
 0x196   :  { %v448_v13 = vsel %vm426_vm0, %v425_v12, -inf }
 0x197   :  { %449 = vmax.xlane.f32.xlu1 %v448_v13 }
 0x20a   :  { %v429_v14 = vpop.xlane.xlu0 %428 }
 0x20b   :  { %v451_v15 = vsub.f32 %v418_v37, %v429_v14 }
 0x20d   :  { %v459_v16 = vmul.f32 1.442695, %v451_v15 }
 0x20e   :  { %v432_v17 = vpop.xlane.xlu0 %431 }
 0x20f   :  { %1357 = vpow2.f32 %v459_v16  ;;  %v452_v18 = vsub.f32 %v419_v39, %v432_v17 }
 0x211   :  { %v461_v20 = vmul.f32 1.442695, %v452_v18 }
 0x212   :  { %v435_v21 = vpop.xlane.xlu1 %434 }
 0x213   :  { %1359 = vpow2.f32 %v461_v20  ;;  %v453_v23 = vsub.f32 %v420_v48, %v435_v21 }
 0x215   :  { %v463_v24 = vmul.f32 1.442695, %v453_v23 }
 0x216   :  { %v438_v28 = vpop.xlane.xlu1 %437 }
 0x217   :  { %1361 = vpow2.f32 %v463_v24  ;;  %v454_v29 = vsub.f32 %v421_v51, %v438_v28 }
 0x219   :  { %v1358_v30 = vpop.eup %1357  ;;  %v465_v31 = vmul.f32 1.442695, %v454_v29 }
 0x21a   :  { %v441_v32 = vpop.xlane.xlu0 %440  ;;  %v475_v25 = vsel %vm426_vm0, %v1358_v30, 0.0 }
 0x21b   :  { %1363 = vpow2.f32 %v465_v31  ;;  %v455_v33 = vsub.f32 %v422_v60, %v441_v32  ;;  %476 = vadd.xlane.f32.xlu0 %v475_v25  ;;  %v1863_v25 = vld [vmem:[#allocation13] sm:$0xff] }
 0x21c   :  { %v444_v34 = vpop.xlane.xlu1 %443 }
 0x21d   :  { %v1360_v35 = vpop.eup %1359  ;;  %v467_v36 = vmul.f32 1.442695, %v455_v33  ;;  %v456_v37 = vsub.f32 %v423_v63, %v444_v34  ;;  %v1865_v33 = vld [vmem:[#allocation13 + $0x8] sm:$0xff]  ;;  %v1867_v34 = vld [vmem:[#allocation13 + $0x10] sm:$0xff] }
 0x21e   :  { %v478_v38 = vsel %vm426_vm0, %v1360_v35, 0.0 }
 0x21f   :  { %1365 = vpow2.f32 %v467_v36  ;;  %v469_v27 = vmul.f32 1.442695, %v456_v37  ;;  %479 = vadd.xlane.f32.xlu1 %v478_v38  ;;  %v1872_v37 = vld [vmem:[#allocation13 + $0x18] sm:$0xff] }
 0x221   :  { %v1362_v39 = vpop.eup %1361  ;;  %1367 = vpow2.f32 %v469_v27 }
 0x222   :  { %v447_v40 = vpop.xlane.xlu0 %446  ;;  %v481_v41 = vsel %vm426_vm0, %v1362_v39, 0.0 }
 0x223   :  { %v457_v42 = vsub.f32 %v424_v9, %v447_v40  ;;  %482 = vadd.xlane.f32.xlu0 %v481_v41 }
 0x224   :  { %v450_v43 = vpop.xlane.xlu1 %449 }
 0x225   :  { %v1364_v44 = vpop.eup %1363  ;;  %v471_v45 = vmul.f32 1.442695, %v457_v42  ;;  %v458_v46 = vsub.f32 %v425_v12, %v450_v43 }
 0x226   :  { %v484_v47 = vsel %vm426_vm0, %v1364_v44, 0.0 }
 0x227   :  { %1369 = vpow2.f32 %v471_v45  ;;  %v473_v48 = vmul.f32 1.442695, %v458_v46  ;;  %485 = vadd.xlane.f32.xlu1 %v484_v47  ;;  %v1891_v47 = vld [vmem:[#allocation13 + $0x20] sm:$0xff] }
 0x229   :  { %v1366_v49 = vpop.eup %1365  ;;  %1371 = vpow2.f32 %v473_v48  ;;  %v1893_v48 = vld [vmem:[#allocation13 + $0x28] sm:$0xff] }
 0x22a   :  { %v487_v50 = vsel %vm426_vm0, %v1366_v49, 0.0 }
 0x22b   :  { %v1368_v51 = vpop.eup %1367  ;;  %488 = vadd.xlane.f32.xlu0 %v487_v50 }
 0x22c   :  { %v490_v52 = vsel %vm426_vm0, %v1368_v51, 0.0 }
 0x22d   :  { %491 = vadd.xlane.f32.xlu1 %v490_v52 }
 0x231   :  { %v1370_v53 = vpop.eup %1369 }
 0x232   :  { %v493_v54 = vsel %vm426_vm0, %v1370_v53, 0.0 }
 0x233   :  { %v1372_v55 = vpop.eup %1371  ;;  %494 = vadd.xlane.f32.xlu0 %v493_v54  ;;  %v1900_v54 = vld [vmem:[#allocation13 + $0x38] sm:$0xff] }
 0x234   :  { %v496_v56 = vsel %vm426_vm0, %v1372_v55, 0.0 }
 0x235   :  { %497 = vadd.xlane.f32.xlu1 %v496_v56 }
 0x2a8   :  { %v477_v58 = vpop.xlane.xlu0 %476 }
 0x2a9   :  { %1373 = vrcp.f32 %v477_v58 }
 0x2ac   :  { %v480_v59 = vpop.xlane.xlu1 %479 }
 0x2ad   :  { %1375 = vrcp.f32 %v480_v59 }
 0x2b0   :  { %v483_v60 = vpop.xlane.xlu0 %482 }
 0x2b1   :  { %1377 = vrcp.f32 %v483_v60 }
 0x2b3   :  { %v1374_v62 = vpop.eup %1373 }
 0x2b4   :  { %v486_v61 = vpop.xlane.xlu1 %485  ;;  %v507_v1 = vmul.f32 %v1374_v62, %v1358_v30 }
 0x2b5   :  { %1379 = vrcp.f32 %v486_v61 }
 0x2b7   :  { %v1376_v63 = vpop.eup %1375 }
 0x2b8   :  { %v489_v0 = vpop.xlane.xlu0 %488  ;;  %v508_v2 = vmul.f32 %v1376_v63, %v1360_v35 }
 0x2b9   :  { %1381 = vrcp.f32 %v489_v0 }
 0x2ba   :  { %v492_v3 = vpop.xlane.xlu1 %491  ;;  %v515_v4 = vpack.c.bf16 %v508_v2, %v507_v1 }
 0x2bb   :  { %1383 = vrcp.f32 %v492_v3  ;;  %v1378_v5 = vpop.eup %1377 }
 0x2bc   :  { %519 = vxpose.xlu0.c.b16.start.end [1/1] (short) (narrow) %v515_v4, 32  ;;  %v509_v9 = vmul.f32 %v1378_v5, %v1362_v39 }
 0x2bf   :  { %v1380_v6 = vpop.eup %1379 }
 0x2c0   :  { %v495_v8 = vpop.xlane.xlu0 %494  ;;  %v510_v11 = vmul.f32 %v1380_v6, %v1364_v44 }
 0x2c1   :  { %1385 = vrcp.f32 %v495_v8 }
 0x2c2   :  { %v498_v12 = vpop.xlane.xlu1 %497  ;;  %v516_v13 = vpack.c.bf16 %v510_v11, %v509_v9 }
 0x2c3   :  { %v1382_v14 = vpop.eup %1381  ;;  %1387 = vrcp.f32 %v498_v12 }
 0x2c4   :  { %595 = vxpose.xlu1.c.b16.start.end [1/1] (short) (narrow) %v516_v13, 32  ;;  %v511_v16 = vmul.f32 %v1382_v14, %v1366_v49 }
 0x2c5   :  { %v1384_v15 = vpop.eup %1383 }
 0x2c6   :  { %v512_v17 = vmul.f32 %v1384_v15, %v1368_v51  ;;  %v1895_v51 = vld [vmem:[#allocation13 + $0x30] sm:$0xff] }
 0x2c8   :  { %v517_v18 = vpack.c.bf16 %v512_v17, %v511_v16 }
 0x2ca   :  { %670 = vxpose.xlu0.c.b16.start.end [1/1] (short) (narrow) %v517_v18, 32 }
 0x2cb   :  { %v1386_v20 = vpop.eup %1385 }
 0x2cc   :  { %v513_v23 = vmul.f32 %v1386_v20, %v1370_v53 }
 0x2cd   :  { %v1388_v21 = vpop.eup %1387 }
 0x2ce   :  { %v514_v24 = vmul.f32 %v1388_v21, %v1372_v55 }
 0x2d0   :  { %v518_v28 = vpack.c.bf16 %v514_v24, %v513_v23 }
 0x2d2   :  { %745 = vxpose.xlu1.c.b16.start.end [1/1] (short) (narrow) %v518_v28, 32 }
 0x322   :  { %v527_v29 = vpop.trf.xlu0 }
 0x323   :  { %1246 = vmatmul.mubr.msk.bf16.vlgmr.msra.gmra.mrb[0].mxu1 %vm535_vm1, %v527_v29 }
 0x324   :  { %618 = vmatpush1.bf16.msra.mxu1 %v1799_v7  ;;  %584 = vmatprep.mubr.bf16.mxu1 %v1628_v57 }
 0x325   :  { %692 = vmatprep.subr.bf16.mxu1 %v1803_v10 }
 0x326   :  { %v528_v30 = vpop.trf.xlu0 }
 0x32a   :  { %v603_v31 = vpop.trf.xlu1 }
 0x32b   :  { %1247 = vmatmul.mubr.msk.bf16.gmra.mrb[4].mxu1 %vm535_vm1, %v528_v30 }
 0x32c   :  { %649 = vmatprep.mubr.bf16.mxu1 %v1628_v57 }
 0x32e   :  { %v604_v32 = vpop.trf.xlu1 }
 0x330   :  { %v678_v7 = vpop.trf.xlu0 }
 0x333   :  { %1248 = vmatmul.mubr.msk.bf16.vlgmr.msra.gmra.mrb[8].mxu1 %vm535_vm1, %v603_v31 }
 0x334   :  { %693 = vmatpush1.bf16.msra.mxu1 %v1813_v19  ;;  %659 = vmatprep.mubr.bf16.mxu1 %v1628_v57  ;;  %v679_v10 = vpop.trf.xlu0 }
 0x335   :  { %767 = vmatprep.subr.bf16.mxu1 %v1817_v22 }
 0x338   :  { %v753_v19 = vpop.trf.xlu1 }
 0x33b   :  { %1249 = vmatmul.mubr.msk.bf16.gmra.mrb[12].mxu1 %vm535_vm1, %v604_v32 }
 0x33c   :  { %724 = vmatprep.mubr.bf16.mxu1 %v1628_v57  ;;  %v754_v22 = vpop.trf.xlu1 }
 0x343   :  { %1250 = vmatmul.mubr.msk.bf16.vlgmr.msra.gmra.mrb[16].mxu1 %vm535_vm1, %v678_v7 }
 0x344   :  { %768 = vmatpush1.bf16.msra.mxu1 %v1823_v26  ;;  %734 = vmatprep.mubr.bf16.mxu1 %v1628_v57 }
 0x34b   :  { %1251 = vmatmul.mubr.msk.bf16.gmra.mrb[20].mxu1 %vm535_vm1, %v679_v10 }
 0x34c   :  { %799 = vmatprep.mubr.bf16.mxu1 %v1628_v57 }
 0x353   :  { %1252 = vmatmul.mubr.msk.bf16.vlgmr.msra.gmra.mrb[24].mxu1 %vm535_vm1, %v753_v19 }
 0x354   :  { %809 = vmatprep.mubr.bf16.mxu1 %v1628_v57 }
 0x35b   :  { %1253 = vmatmul.mubr.msk.bf16.gmra.mrb[28].mxu1 %vm535_vm1, %v754_v22 }
 0x3f6   :  { %v576_v26 = vpop.f32.mrb[0].mxu1 }
 0x3f7   :  { %v1870_v35 = vmul.f32 %v1863_v25, %v576_v26  ;;  %v578_v36 = vpop.f32.mrb[1].mxu1 }
 0x3f8   :  { %v1875_v38 = vmul.f32 %v1865_v33, %v578_v36  ;;  %v580_v27 = vpop.f32.mrb[2].mxu1 }
 0x3f9   :  { %v860_v39 = vmul.f32 %v1870_v35, %v1870_v35  ;;  %v1880_v40 = vmul.f32 %v1867_v34, %v580_v27  ;;  %v582_v41 = vpop.f32.mrb[3].mxu1 }
 0x3fa   :  { %v861_v42 = vmul.f32 %v1875_v38, %v1875_v38  ;;  %v1885_v43 = vmul.f32 %v1872_v37, %v582_v41 }
 0x3fb   :  { %v862_v44 = vmul.f32 %v1880_v40, %v1880_v40 }
 0x3fc   :  { %v863_v45 = vmul.f32 %v1885_v43, %v1885_v43  ;;  %v892_v46 = vadd.f32 %v861_v42, %v860_v39 }
 0x3fe   :  { %893 = vadd.xlane.f32.xlu0 %v892_v46  ;;  %v586_v49 = vpop.f32.mrb[4].mxu1  ;;  %v895_v50 = vadd.f32 %v863_v45, %v862_v44 }
 0x3ff   :  { %v1898_v52 = vmul.f32 %v1891_v47, %v586_v49  ;;  %v588_v53 = vpop.f32.mrb[5].mxu1 }
 0x400   :  { %v1903_v55 = vmul.f32 %v1893_v48, %v588_v53  ;;  %896 = vadd.xlane.f32.xlu1 %v895_v50  ;;  %v590_v56 = vpop.f32.mrb[6].mxu1 }
 0x401   :  { %v864_v57 = vmul.f32 %v1898_v52, %v1898_v52  ;;  %v1908_v58 = vmul.f32 %v1895_v51, %v590_v56  ;;  %v592_v59 = vpop.f32.mrb[7].mxu1 }
 0x402   :  { %v865_v60 = vmul.f32 %v1903_v55, %v1903_v55  ;;  %v1913_v61 = vmul.f32 %v1900_v54, %v592_v59 }
 0x403   :  { %v866_v62 = vmul.f32 %v1908_v58, %v1908_v58 }
 0x404   :  { %v867_v63 = vmul.f32 %v1913_v61, %v1913_v61  ;;  %v898_v0 = vadd.f32 %v865_v60, %v864_v57 }
 0x406   :  { %899 = vadd.xlane.f32.xlu0 %v898_v0  ;;  %v651_v1 = vpop.f32.mrb[8].mxu1  ;;  %v901_v6 = vadd.f32 %v867_v63, %v866_v62 }
 0x407   :  { %v1920_v2 = vmul.f32 %v1863_v25, %v651_v1  ;;  %v653_v3 = vpop.f32.mrb[9].mxu1 }
 0x408   :  { %v1923_v4 = vmul.f32 %v1865_v33, %v653_v3  ;;  %v655_v5 = vpop.f32.mrb[10].mxu1 }
 0x409   :  { %v868_v8 = vmul.f32 %v1920_v2, %v1920_v2  ;;  %v1928_v9 = vmul.f32 %v1867_v34, %v655_v5  ;;  %v657_v11 = vpop.f32.mrb[11].mxu1 }
 0x40a   :  { %v869_v12 = vmul.f32 %v1923_v4, %v1923_v4  ;;  %v1933_v13 = vmul.f32 %v1872_v37, %v657_v11  ;;  %902 = vadd.xlane.f32.xlu0 %v901_v6 }
 0x40b   :  { %v870_v14 = vmul.f32 %v1928_v9, %v1928_v9 }
 0x40c   :  { %v871_v15 = vmul.f32 %v1933_v13, %v1933_v13  ;;  %v904_v16 = vadd.f32 %v869_v12, %v868_v8 }
 0x40e   :  { %905 = vadd.xlane.f32.xlu0 %v904_v16  ;;  %v661_v17 = vpop.f32.mrb[12].mxu1  ;;  %v907_v18 = vadd.f32 %v871_v15, %v870_v14 }
 0x40f   :  { %v1940_v20 = vmul.f32 %v1891_v47, %v661_v17  ;;  %v663_v21 = vpop.f32.mrb[13].mxu1 }
 0x410   :  { %v1943_v23 = vmul.f32 %v1893_v48, %v663_v21  ;;  %908 = vadd.xlane.f32.xlu1 %v907_v18  ;;  %v665_v24 = vpop.f32.mrb[14].mxu1 }
 0x411   :  { %v872_v28 = vmul.f32 %v1940_v20, %v1940_v20  ;;  %v1948_v29 = vmul.f32 %v1895_v51, %v665_v24  ;;  %v667_v30 = vpop.f32.mrb[15].mxu1 }
 0x412   :  { %v873_v31 = vmul.f32 %v1943_v23, %v1943_v23  ;;  %v1953_v32 = vmul.f32 %v1900_v54, %v667_v30 }
 0x413   :  { %v874_v7 = vmul.f32 %v1948_v29, %v1948_v29 }
 0x414   :  { %v875_v10 = vmul.f32 %v1953_v32, %v1953_v32  ;;  %v910_v19 = vadd.f32 %v873_v31, %v872_v28 }
 0x416   :  { %911 = vadd.xlane.f32.xlu1 %v910_v19  ;;  %v726_v22 = vpop.f32.mrb[16].mxu1  ;;  %v913_v41 = vadd.f32 %v875_v10, %v874_v7 }
 0x417   :  { %v1960_v26 = vmul.f32 %v1863_v25, %v726_v22  ;;  %v728_v36 = vpop.f32.mrb[17].mxu1 }
 0x418   :  { %v1963_v27 = vmul.f32 %v1865_v33, %v728_v36  ;;  %v730_v39 = vpop.f32.mrb[18].mxu1 }
 0x419   :  { %v876_v42 = vmul.f32 %v1960_v26, %v1960_v26  ;;  %v1968_v44 = vmul.f32 %v1867_v34, %v730_v39  ;;  %v732_v45 = vpop.f32.mrb[19].mxu1 }
 0x41a   :  { %v877_v46 = vmul.f32 %v1963_v27, %v1963_v27  ;;  %v1973_v49 = vmul.f32 %v1872_v37, %v732_v45  ;;  %914 = vadd.xlane.f32.xlu1 %v913_v41 }
 0x41b   :  { %v878_v50 = vmul.f32 %v1968_v44, %v1968_v44 }
 0x41c   :  { %v879_v53 = vmul.f32 %v1973_v49, %v1973_v49  ;;  %v916_v56 = vadd.f32 %v877_v46, %v876_v42 }
 0x41e   :  { %917 = vadd.xlane.f32.xlu0 %v916_v56  ;;  %v736_v57 = vpop.f32.mrb[20].mxu1  ;;  %v919_v59 = vadd.f32 %v879_v53, %v878_v50 }
 0x41f   :  { %v1980_v60 = vmul.f32 %v1891_v47, %v736_v57  ;;  %v738_v62 = vpop.f32.mrb[21].mxu1 }
 0x420   :  { %v1983_v63 = vmul.f32 %v1893_v48, %v738_v62  ;;  %920 = vadd.xlane.f32.xlu1 %v919_v59  ;;  %v740_v0 = vpop.f32.mrb[22].mxu1 }
 0x421   :  { %v880_v1 = vmul.f32 %v1980_v60, %v1980_v60  ;;  %v742_v3 = vpop.f32.mrb[23].mxu1  ;;  %v1993_v14 = vmul.f32 %v1895_v51, %v740_v0 }
 0x422   :  { %v881_v5 = vmul.f32 %v1983_v63, %v1983_v63  ;;  %v1996_v15 = vmul.f32 %v1900_v54, %v742_v3 }
 0x424   :  { %v922_v6 = vadd.f32 %v881_v5, %v880_v1  ;;  %v883_v31 = vmul.f32 %v1996_v15, %v1996_v15 }
 0x426   :  { %923 = vadd.xlane.f32.xlu0 %v922_v6  ;;  %v801_v8 = vpop.f32.mrb[24].mxu1 }
 0x427   :  { %v1990_v11 = vmul.f32 %v1863_v25, %v801_v8  ;;  %v803_v12 = vpop.f32.mrb[25].mxu1 }
 0x428   :  { %v1999_v16 = vmul.f32 %v1865_v33, %v803_v12  ;;  %v805_v17 = vpop.f32.mrb[26].mxu1  ;;  %v882_v33 = vmul.f32 %v1993_v14, %v1993_v14 }
 0x429   :  { %v884_v18 = vmul.f32 %v1990_v11, %v1990_v11  ;;  %v2004_v21 = vmul.f32 %v1867_v34, %v805_v17  ;;  %v807_v24 = vpop.f32.mrb[27].mxu1 }
 0x42a   :  { %v885_v25 = vmul.f32 %v1999_v16, %v1999_v16  ;;  %v2009_v28 = vmul.f32 %v1872_v37, %v807_v24  ;;  %v925_v41 = vadd.f32 %v883_v31, %v882_v33 }
 0x42b   :  { %v886_v30 = vmul.f32 %v2004_v21, %v2004_v21 }
 0x42c   :  { %v887_v34 = vmul.f32 %v2009_v28, %v2009_v28  ;;  %v928_v7 = vadd.f32 %v885_v25, %v884_v18 }
 0x42e   :  { %929 = vadd.xlane.f32.xlu0 %v928_v7  ;;  %v811_v10 = vpop.f32.mrb[28].mxu1  ;;  %v931_v19 = vadd.f32 %v887_v34, %v886_v30 }
 0x42f   :  { %v2020_v22 = vmul.f32 %v1891_v47, %v811_v10  ;;  %v813_v37 = vpop.f32.mrb[29].mxu1 }
 0x430   :  { %v2023_v36 = vmul.f32 %v1893_v48, %v813_v37  ;;  %932 = vadd.xlane.f32.xlu1 %v931_v19  ;;  %v815_v39 = vpop.f32.mrb[30].mxu1 }
 0x431   :  { %2189 = vst [vmem:[#allocation20_spill] sm:$0xff] %v2020_v22  ;;  %v888_v42 = vmul.f32 %v2020_v22, %v2020_v22  ;;  %v2028_v45 = vmul.f32 %v1895_v51, %v815_v39  ;;  %v817_v46 = vpop.f32.mrb[31].mxu1 }
 0x432   :  { %2190 = vst [vmem:[#allocation21_spill] sm:$0xff] %v2023_v36  ;;  %v889_v50 = vmul.f32 %v2023_v36, %v2023_v36  ;;  %v2033_v47 = vmul.f32 %v1900_v54, %v817_v46  ;;  %926 = vadd.xlane.f32.xlu0 %v925_v41 }
 0x433   :  { %2191 = vst [vmem:[#allocation22_spill] sm:$0xff] %v2028_v45  ;;  %v890_v48 = vmul.f32 %v2028_v45, %v2028_v45 }
 0x434   :  { %2192 = vst [vmem:[#allocation23_spill] sm:$0xff] %v2033_v47  ;;  %v891_v53 = vmul.f32 %v2033_v47, %v2033_v47  ;;  %v934_v56 = vadd.f32 %v889_v50, %v888_v42 }
 0x436   :  { %935 = vadd.xlane.f32.xlu1 %v934_v56  ;;  %v937_v57 = vadd.f32 %v891_v53, %v890_v48 }
 0x43a   :  { %938 = vadd.xlane.f32.xlu1 %v937_v57 }
 0x48b   :  { %v894_v51 = vpop.xlane.xlu0 %893 }
 0x48c   :  { %v940_v62 = vmax.f32 %v894_v51, 1e-24 }
 0x48d   :  { %v897_v59 = vpop.xlane.xlu1 %896 }
 0x48e   :  { %v941_v0 = vmax.f32 %v897_v59, 1e-24 }
 0x490   :  { %1389 = vrsqrt.f32 %v941_v0 }
 0x491   :  { %1391 = vrsqrt.f32 %v940_v62 }
 0x493   :  { %v900_v1 = vpop.xlane.xlu0 %899 }
 0x494   :  { %v942_v54 = vmax.f32 %v900_v1, 1e-24 }
 0x496   :  { %1393 = vrsqrt.f32 %v942_v54 }
 0x497   :  { %v903_v3 = vpop.xlane.xlu0 %902 }
 0x498   :  { %v943_v5 = vmax.f32 %v903_v3, 1e-24 }
 0x49a   :  { %v2039_v6 = vpop.eup %1389  ;;  %1395 = vrsqrt.f32 %v943_v5 }
 0x49b   :  { %v906_v8 = vpop.xlane.xlu0 %905  ;;  %v2041_v12 = vpop.eup %1391  ;;  %v973_v17 = vmul.f32 %v2039_v6, %v2039_v6 }
 0x49c   :  { %v944_v24 = vmax.f32 %v906_v8, 1e-24  ;;  %v972_v30 = vmul.f32 %v2041_v12, %v2041_v12 }
 0x49d   :  { %v909_v18 = vpop.xlane.xlu1 %908  ;;  %v989_v31 = vmul.f32 %v973_v17, %v897_v59 }
 0x49e   :  { %v945_v25 = vmax.f32 %v909_v18, 1e-24  ;;  %v988_v7 = vmul.f32 %v972_v30, %v894_v51 }
 0x4a0   :  { %v2047_v33 = vpop.eup %1393  ;;  %1397 = vrsqrt.f32 %v945_v25  ;;  %v1004_v41 = vadd.f32 %v989_v31, %v988_v7 }
 0x4a1   :  { %v974_v34 = vmul.f32 %v2047_v33, %v2047_v33  ;;  %1399 = vrsqrt.f32 %v944_v24 }
 0x4a3   :  { %v990_v10 = vmul.f32 %v974_v34, %v900_v1  ;;  %v912_v19 = vpop.xlane.xlu1 %911 }
 0x4a4   :  { %v2051_v37 = vpop.eup %1395  ;;  %v946_v39 = vmax.f32 %v912_v19, 1e-24 }
 0x4a5   :  { %v975_v42 = vmul.f32 %v2051_v37, %v2051_v37  ;;  %v1005_v46 = vadd.f32 %v1004_v41, %v990_v10 }
 0x4a6   :  { %1401 = vrsqrt.f32 %v946_v39 }
 0x4a7   :  { %v991_v50 = vmul.f32 %v975_v42, %v903_v3  ;;  %v915_v48 = vpop.xlane.xlu1 %914 }
 0x4a8   :  { %v947_v53 = vmax.f32 %v915_v48, 1e-24 }
 0x4a9   :  { %v1006_v56 = vadd.f32 %v1005_v46, %v991_v50 }
 0x4aa   :  { %v2055_v57 = vpop.eup %1397  ;;  %1403 = vrsqrt.f32 %v947_v53 }
 0x4ab   :  { %v1007_v59 = vrot.slane %v1006_v56, 4  ;;  %v2057_v51 = vpop.eup %1399  ;;  %v977_v0 = vmul.f32 %v2055_v57, %v2055_v57  ;;  %v2063_v5 = vpop.xlane.xlu0 %917 }
 0x4ac   :  { %v976_v54 = vmul.f32 %v2057_v51, %v2057_v51  ;;  %v948_v31 = vmax.f32 %v2063_v5, 1e-24 }
 0x4ad   :  { %v1008_v62 = vadd.f32 %v1007_v59, %v1006_v56  ;;  %v2067_v17 = vpop.xlane.xlu1 %920  ;;  %v993_v25 = vmul.f32 %v977_v0, %v909_v18 }
 0x4ae   :  { %v992_v7 = vmul.f32 %v976_v54, %v906_v8  ;;  %v949_v39 = vmax.f32 %v2067_v17, 1e-24  ;;  %1405 = vrsqrt.f32 %v948_v31 }
 0x4af   :  { %v1009_v1 = vrot.slane %v1008_v62, 2 }
 0x4b0   :  { %v2065_v3 = vpop.eup %1401  ;;  %v1013_v53 = vadd.f32 %v993_v25, %v992_v7  ;;  %1407 = vrsqrt.f32 %v949_v39 }
 0x4b1   :  { %v1010_v24 = vadd.f32 %v1009_v1, %v1008_v62  ;;  %v978_v30 = vmul.f32 %v2065_v3, %v2065_v3 }
 0x4b3   :  { %v1011_v34 = vrot.slane %v1010_v24, 1  ;;  %v994_v10 = vmul.f32 %v978_v30, %v912_v19  ;;  %v2073_v41 = vpop.xlane.xlu0 %923 }
 0x4b4   :  { %v2075_v42 = vpop.eup %1403  ;;  %v950_v46 = vmax.f32 %v2073_v41, 1e-24 }
 0x4b5   :  { %v1012_v50 = vadd.f32 %v1011_v34, %v1010_v24  ;;  %v979_v18 = vmul.f32 %v2075_v42, %v2075_v42  ;;  %v1014_v59 = vadd.f32 %v1013_v53, %v994_v10 }
 0x4b6   :  { %1409 = vrsqrt.f32 %v950_v46 }
 0x4b7   :  { %v1040_v56 = vmax.f32 %v1012_v50, 1e-24  ;;  %v995_v62 = vmul.f32 %v979_v18, %v915_v48 }
 0x4b8   :  { %v2083_v34 = vpop.eup %1405 }
 0x4b9   :  { %1411 = vrsqrt.f32 %v1040_v56  ;;  %v1015_v8 = vadd.f32 %v1014_v59, %v995_v62  ;;  %v980_v50 = vmul.f32 %v2083_v34, %v2083_v34 }
 0x4ba   :  { %v2085_v7 = vpop.eup %1407 }
 0x4bb   :  { %v1016_v19 = vrot.slane %v1015_v8, 4  ;;  %v2080_v0 = vpop.xlane.xlu0 %929 }
 0x4bc   :  { %v952_v24 = vmax.f32 %v2080_v0, 1e-24 }
 0x4bd   :  { %v1017_v1 = vadd.f32 %v1016_v19, %v1015_v8  ;;  %v933_v54 = vpop.xlane.xlu1 %932  ;;  %v981_v8 = vmul.f32 %v2085_v7, %v2085_v7 }
 0x4be   :  { %v953_v30 = vmax.f32 %v933_v54, 1e-24 }
 0x4bf   :  { %v1018_v47 = vrot.slane %v1017_v1, 2  ;;  %v927_v25 = vpop.xlane.xlu0 %926 }
 0x4c0   :  { %v951_v31 = vmax.f32 %v927_v25, 1e-24  ;;  %1413 = vrsqrt.f32 %v953_v30  ;;  %v2087_v10 = vpop.eup %1409 }
 0x4c1   :  { %v1019_v48 = vadd.f32 %v1018_v47, %v1017_v1  ;;  %v982_v19 = vmul.f32 %v2087_v10, %v2087_v10 }
 0x4c2   :  { %1415 = vrsqrt.f32 %v951_v31 }
 0x4c3   :  { %v1412_v39 = vpop.eup %1411  ;;  %v1020_v46 = vrot.slane %v1019_v48, 1  ;;  %1417 = vrsqrt.f32 %v952_v24  ;;  %v936_v53 = vpop.xlane.xlu1 %935 }
 0x4c4   :  { %v1048_v18 = vmul.f32 %v1412_v39, %v2041_v12  ;;  %v1049_v56 = vmul.f32 %v1412_v39, %v2039_v6  ;;  %v1050_v59 = vmul.f32 %v1412_v39, %v2047_v33  ;;  %v1051_v62 = vmul.f32 %v1412_v39, %v2051_v37 }
 0x4c5   :  { %v1021_v47 = vadd.f32 %v1020_v46, %v1019_v48  ;;  %v954_v1 = vmax.f32 %v936_v53, 1e-24 }
 0x4c6   :  { %v1064_v30 = vmul.f32 %v1048_v18, %v1870_v35  ;;  %v1065_v24 = vmul.f32 %v1048_v18, %v1875_v38  ;;  %v1066_v12 = vmul.f32 %v1049_v56, %v1880_v40  ;;  %v1067_v6 = vmul.f32 %v1049_v56, %v1885_v43 }
 0x4c7   :  { %v1068_v33 = vmul.f32 %v1050_v59, %v1898_v52  ;;  %v1069_v37 = vmul.f32 %v1050_v59, %v1903_v55  ;;  %v1070_v31 = vmul.f32 %v1051_v62, %v1908_v58  ;;  %v1071_v48 = vmul.f32 %v1051_v62, %v1913_v61  ;;  %v939_v39 = vpop.xlane.xlu1 %938 }
 0x4c8   :  { %v1270_v46 = vpack.c.bf16 %v1065_v24, %v1064_v30  ;;  %v1271_v45 = vpack.c.bf16 %v1067_v6, %v1066_v12  ;;  %v1041_v36 = vmax.f32 %v1021_v47, 1e-24  ;;  %1419 = vrsqrt.f32 %v954_v1 }
 0x4c9   :  { %v1272_v35 = vpack.c.bf16 %v1069_v37, %v1068_v33  ;;  %v1273_v22 = vpack.c.bf16 %v1071_v48, %v1070_v31  ;;  %v997_v38 = vmul.f32 %v981_v8, %v2067_v17  ;;  %v955_v40 = vmax.f32 %v939_v39, 1e-24 }
 0x4ca   :  { %1192 = vst [vmem:[#allocation14] sm:$0xff] %v1270_v46  ;;  %1193 = vst [vmem:[#allocation14 + $0x8] sm:$0xff] %v1271_v45  ;;  %1421 = vrsqrt.f32 %v1041_v36  ;;  %v2108_v43 = vpop.eup %1413  ;;  %v996_v52 = vmul.f32 %v980_v50, %v2063_v5  ;;  %v998_v55 = vmul.f32 %v982_v19, %v2073_v41 }
 0x4cb   :  { %1194 = vst [vmem:[#allocation14 + $0x10] sm:$0xff] %v1272_v35  ;;  %1195 = vst [vmem:[#allocation14 + $0x18] sm:$0xff] %v1273_v22  ;;  %1423 = vrsqrt.f32 %v955_v40  ;;  %v985_v17 = vmul.f32 %v2108_v43, %v2108_v43 }
 0x4cc   :  { %v1416_v58 = vpop.eup %1415  ;;  %v1022_v18 = vadd.f32 %v997_v38, %v996_v52 }
 0x4cd   :  { %v2112_v61 = vpop.eup %1417  ;;  %v983_v56 = vmul.f32 %v1416_v58, %v1416_v58  ;;  %v1001_v5 = vmul.f32 %v985_v17, %v933_v54 }
 0x4ce   :  { %v1023_v59 = vadd.f32 %v1022_v18, %v998_v55  ;;  %v984_v36 = vmul.f32 %v2112_v61, %v2112_v61 }
 0x4cf   :  { %v999_v45 = vmul.f32 %v983_v56, %v927_v25 }
 0x4d0   :  { %v1000_v8 = vmul.f32 %v984_v36, %v2080_v0 }
 0x4d1   :  { %v1024_v62 = vadd.f32 %v1023_v59, %v999_v45 }
 0x4d2   :  { %v2118_v22 = vpop.eup %1419  ;;  %v1031_v12 = vadd.f32 %v1001_v5, %v1000_v8 }
 0x4d3   :  { %v1025_v50 = vrot.slane %v1024_v62, 4  ;;  %v986_v41 = vmul.f32 %v2118_v22, %v2118_v22 }
 0x4d4   :  { %v1422_v47 = vpop.eup %1421 }
 0x4d5   :  { %v2123_v19 = vpop.eup %1423  ;;  %v1052_v1 = vmul.f32 %v1422_v47, %v2057_v51  ;;  %v1053_v25 = vmul.f32 %v1422_v47, %v2055_v57  ;;  %v1054_v30 = vmul.f32 %v1422_v47, %v2065_v3  ;;  %v1055_v24 = vmul.f32 %v1422_v47, %v2075_v42 }
 0x4d6   :  { %v1026_v6 = vadd.f32 %v1025_v50, %v1024_v62  ;;  %v1002_v54 = vmul.f32 %v986_v41, %v936_v53  ;;  %v987_v33 = vmul.f32 %v2123_v19, %v2123_v19 }
 0x4d7   :  { %v1072_v37 = vmul.f32 %v1052_v1, %v1920_v2  ;;  %v1073_v0 = vmul.f32 %v1052_v1, %v1923_v4  ;;  %v1074_v31 = vmul.f32 %v1053_v25, %v1928_v9  ;;  %v1075_v51 = vmul.f32 %v1053_v25, %v1933_v13 }
 0x4d8   :  { %v1076_v57 = vmul.f32 %v1054_v30, %v1940_v20  ;;  %v1077_v3 = vmul.f32 %v1054_v30, %v1943_v23  ;;  %v1078_v42 = vmul.f32 %v1055_v24, %v1948_v29  ;;  %v1079_v48 = vmul.f32 %v1055_v24, %v1953_v32 }
 0x4d9   :  { %v1274_v53 = vpack.c.bf16 %v1073_v0, %v1072_v37  ;;  %v1275_v46 = vpack.c.bf16 %v1075_v51, %v1074_v31  ;;  %v1027_v35 = vrot.slane %v1026_v6, 2  ;;  %v1032_v2 = vadd.f32 %v1031_v12, %v1002_v54  ;;  %v2195_v37 = vld [vmem:[#allocation22_spill] sm:$0xff]  ;;  %v2196_v0 = vld [vmem:[#allocation23_spill] sm:$0xff] }
 0x4da   :  { %v1276_v38 = vpack.c.bf16 %v1077_v3, %v1076_v57  ;;  %v1277_v40 = vpack.c.bf16 %v1079_v48, %v1078_v42  ;;  %v1003_v52 = vmul.f32 %v987_v33, %v939_v39  ;;  %v2194_v33 = vld [vmem:[#allocation21_spill] sm:$0xff] }
 0x4db   :  { %1196 = vst [vmem:[#allocation14 + $0x20] sm:$0xff] %v1274_v53  ;;  %1197 = vst [vmem:[#allocation14 + $0x28] sm:$0xff] %v1275_v46  ;;  %v1028_v4 = vadd.f32 %v1027_v35, %v1026_v6  ;;  %v2193_v6 = vld [vmem:[#allocation20_spill] sm:$0xff] }
 0x4dc   :  { %1198 = vst [vmem:[#allocation14 + $0x30] sm:$0xff] %v1276_v38  ;;  %1199 = vst [vmem:[#allocation14 + $0x38] sm:$0xff] %v1277_v40  ;;  %v1033_v9 = vadd.f32 %v1032_v2, %v1003_v52 }
 0x4dd   :  { %v1029_v13 = vrot.slane %v1028_v4, 1 }
 0x4de   :  { %v1034_v20 = vrot.slane %v1033_v9, 4 }
 0x4df   :  { %v1030_v23 = vadd.f32 %v1029_v13, %v1028_v4 }
 0x4e0   :  { %v1035_v55 = vadd.f32 %v1034_v20, %v1033_v9 }
 0x4e1   :  { %v1042_v29 = vmax.f32 %v1030_v23, 1e-24 }
 0x4e2   :  { %v1036_v18 = vrot.slane %v1035_v55, 2 }
 0x4e3   :  { %1425 = vrsqrt.f32 %v1042_v29 }
 0x4e4   :  { %v1037_v32 = vadd.f32 %v1036_v18, %v1035_v55 }
 0x4e6   :  { %v1038_v56 = vrot.slane %v1037_v32, 1 }
 0x4e8   :  { %v1039_v17 = vadd.f32 %v1038_v56, %v1037_v32 }
 0x4ea   :  { %v1043_v59 = vmax.f32 %v1039_v17, 1e-24 }
 0x4ec   :  { %1427 = vrsqrt.f32 %v1043_v59 }
 0x4ed   :  { %v1426_v45 = vpop.eup %1425 }
 0x4ee   :  { %v1056_v39 = vmul.f32 %v1426_v45, %v2083_v34  ;;  %v1057_v36 = vmul.f32 %v1426_v45, %v2085_v7  ;;  %v1058_v62 = vmul.f32 %v1426_v45, %v2087_v10  ;;  %v1059_v5 = vmul.f32 %v1426_v45, %v1416_v58 }
 0x4f0   :  { %v1080_v50 = vmul.f32 %v1056_v39, %v1960_v26  ;;  %v1081_v41 = vmul.f32 %v1056_v39, %v1963_v27  ;;  %v1082_v47 = vmul.f32 %v1057_v36, %v1968_v44  ;;  %v1083_v8 = vmul.f32 %v1057_v36, %v1973_v49 }
 0x4f1   :  { %v1084_v1 = vmul.f32 %v1058_v62, %v1980_v60  ;;  %v1085_v25 = vmul.f32 %v1058_v62, %v1983_v63  ;;  %v1086_v30 = vmul.f32 %v1059_v5, %v1993_v14  ;;  %v1087_v34 = vmul.f32 %v1059_v5, %v1996_v15 }
 0x4f2   :  { %v1278_v7 = vpack.c.bf16 %v1081_v41, %v1080_v50  ;;  %v1279_v24 = vpack.c.bf16 %v1083_v8, %v1082_v47 }
 0x4f3   :  { %v1280_v10 = vpack.c.bf16 %v1085_v25, %v1084_v1  ;;  %v1281_v58 = vpack.c.bf16 %v1087_v34, %v1086_v30 }
 0x4f4   :  { %1200 = vst [vmem:[#allocation14 + $0x40] sm:$0xff] %v1278_v7  ;;  %1201 = vst [vmem:[#allocation14 + $0x48] sm:$0xff] %v1279_v24 }
 0x4f5   :  { %1202 = vst [vmem:[#allocation14 + $0x50] sm:$0xff] %v1280_v10  ;;  %1203 = vst [vmem:[#allocation14 + $0x58] sm:$0xff] %v1281_v58 }
 0x4f6   :  { %v1428_v26 = vpop.eup %1427 }
 0x4f7   :  { %v1060_v27 = vmul.f32 %v1428_v26, %v2112_v61  ;;  %v1061_v44 = vmul.f32 %v1428_v26, %v2108_v43  ;;  %v1062_v49 = vmul.f32 %v1428_v26, %v2118_v22  ;;  %v1063_v60 = vmul.f32 %v1428_v26, %v2123_v19 }
 0x4f9   :  { %v1088_v63 = vmul.f32 %v1060_v27, %v1990_v11  ;;  %v1089_v14 = vmul.f32 %v1060_v27, %v1999_v16  ;;  %v1090_v15 = vmul.f32 %v1061_v44, %v2004_v21  ;;  %v1091_v12 = vmul.f32 %v1061_v44, %v2009_v28 }
 0x4fa   :  { %v1092_v54 = vmul.f32 %v1062_v49, %v2193_v6  ;;  %v1093_v61 = vmul.f32 %v1062_v49, %v2194_v33  ;;  %v1094_v43 = vmul.f32 %v1063_v60, %v2195_v37  ;;  %v1095_v22 = vmul.f32 %v1063_v60, %v2196_v0 }
 0x4fb   :  { %v1282_v31 = vpack.c.bf16 %v1089_v14, %v1088_v63  ;;  %v1283_v19 = vpack.c.bf16 %v1091_v12, %v1090_v15 }
 0x4fc   :  { %v1284_v51 = vpack.c.bf16 %v1093_v61, %v1092_v54  ;;  %v1285_v11 = vpack.c.bf16 %v1095_v22, %v1094_v43 }
 0x4fd   :  { %1204 = vst [vmem:[#allocation14 + $0x60] sm:$0xff] %v1282_v31  ;;  %1205 = vst [vmem:[#allocation14 + $0x68] sm:$0xff] %v1283_v19 }
 0x4fe   :  { %1206 = vst [vmem:[#allocation14 + $0x70] sm:$0xff] %v1284_v51  ;;  %1207 = vst [vmem:[#allocation14 + $0x78] sm:$0xff] %v1285_v11 }
 0x4ff   :  { %1594 = shalt.err (!%p1591_p4)
}
 0x500   :  { %s1595_s18 = scalar_lea.hbm %s2184_s7, 2048 }
 0x501   :  { %p1596_p5 = scmp.ne.s32.totalorder %s2184_s7, %s1595_s18  ;;  %p1599_p6 = scmp.lt.u32.totalorder %s1595_s18, %s2184_s7 }
 0x503   :  { %p1601_p7 = pnand %p1599_p6, %p1596_p5 }
 0x505   :  { %1604 = shalt.err (!%p1601_p7)
}
 0x506   :  { %1219 = dma.vmem_to_hbm [thread:$0]  %s1214_s30, 2048, %s2184_s7, [#allocation4], %s1621_s5, %s1621_s5, %s1622_s24  }
 0x507   :  { %1613 = dma.done.wait [#allocation4], 2048  }
 0x508   :  { %1614 = vsyncadd [#allocation4], 4294965248 }
 0x509   :  { %1223 = vsyncpa [#allocation3], 1 }
 0x50a   :  { %1224 = vsyncpa [#allocation6], 1 }
 0x50b   :  { %1225 = vsyncpa [#allocation9], 1 }
 0x50c   :  { %1226 = vsyncpa [#allocation12], 1 }
 0x50d   :  { %1227 = vsyncpa [#allocation4], 1 }

// kernel: netvlad_forward.3
= control target key start
LH: loop header
LB: loop body
LE: loop exit
PB: predicated region body
PF: predicated region fallthrough
CT: control target
= control target key end

     0   :  { %9 = vsyncpa [#allocation3], 0  ;;  %s11130_s0 = inlined_call_operand.hbm [shape: bf16[4,8192], index: 0, kind: input, shape index: {}]   ;;  %s11131_s1 = inlined_call_operand.hbm [shape: bf16[8192,256], index: 1, kind: input, shape index: {}]   ;;  %s11132_s2 = inlined_call_operand.hbm [shape: f32[1,256], index: 2, kind: input, shape index: {}]   ;;  %s11133_s3 = inlined_call_operand.hbm [shape: f32[1,256], index: 3, kind: input, shape index: {}]   ;;  %s11134_s4 = inlined_call_operand.hbm [shape: f32[4,256], index: 4, kind: output, shape index: {}]  }
   0x1   :  { %10 = vsyncpa [#allocation6], 0 }
   0x2   :  { %11 = vsyncpa [#allocation9], 0 }
   0x3   :  { %12 = vsyncpa [#allocation4], 0  ;;  %s10778_s15 = smov [#allocation5]   ;;  %s10660_s19 = scalar_lea.hbm %s11131_s1, 131072 }
   0x4   :  { %s28_s16 = sshll.u32 %s10778_s15, 4  ;;  %p10661_p0 = scmp.ne.s32.totalorder %s11131_s1, %s10660_s19  ;;  %s29_s16 = int_to_ptr.vmem [resolvable:$true] %s28_s16 }
   0x5   :  { %p10664_p1 = scmp.lt.u32.totalorder %s10660_s19, %s11131_s1 }
   0x7   :  { %p10666_p2 = pnand %p10664_p1, %p10661_p0 }
   0x9   :  { %10669 = shalt.err (!%p10666_p2)
}
   0xa   :  { %s10670_s24 = scalar_lea.vmem %s29_s16, 131072  ;;  %p10675_p4 = scmp.lt.s32.totalorder %s29_s16, %s29_s16 }
   0xb   :  { %p10671_p3 = scmp.ne.s32.totalorder %s29_s16, %s10670_s24  ;;  %p10676_p5 = scmp.lt.s32.totalorder %s10670_s24, %s10670_s24 }
   0xd   :  { %p10677_p6 = por %p10676_p5, %p10675_p4 }
   0xf   :  { %p10678_p7 = pnand %p10677_p6, %p10671_p3 }
  0x11   :  { %10681 = shalt.err (!%p10678_p7)
}
  0x12   :  { %s10779_s25 = smov 128   ;;  %s10780_s26 = smov 8  }
  0x13   :  { %34 = dma.hbm_to_vmem [thread:$0]  %s11131_s1, 131072, %s29_s16, [#allocation6], %s10779_s25, %s10779_s25, %s10780_s26  }
  0x14   :  { %s10781_s29 = smov [#allocation2]   ;;  %s10782_s5 = smov [#allocation7]  }
  0x15   :  { %s19_s30 = sshll.u32 %s10781_s29, 4  ;;  %s41_s6 = sshll.u32 %s10782_s5, 4  ;;  %s20_s30 = int_to_ptr.vmem [resolvable:$true] %s19_s30  ;;  %s42_s6 = int_to_ptr.vmem [resolvable:$true] %s41_s6 }
  0x16   :  { %s10682_s9 = scalar_lea.hbm %s11130_s0, 2048 }
  0x17   :  { %p10683_p8 = scmp.ne.s32.totalorder %s11130_s0, %s10682_s9  ;;  %p10686_p9 = scmp.lt.u32.totalorder %s10682_s9, %s11130_s0 }
  0x19   :  { %p10688_p10 = pnand %p10686_p9, %p10683_p8 }
  0x1b   :  { %10691 = shalt.err (!%p10688_p10)
}
  0x1c   :  { %s10692_s1 = scalar_lea.vmem %s20_s30, 2048  ;;  %p10697_p12 = scmp.lt.s32.totalorder %s20_s30, %s20_s30 }
  0x1d   :  { %p10693_p11 = scmp.ne.s32.totalorder %s20_s30, %s10692_s1  ;;  %p10698_p13 = scmp.lt.s32.totalorder %s10692_s1, %s10692_s1 }
  0x1f   :  { %p10699_p0 = por %p10698_p13, %p10697_p12 }
  0x21   :  { %p10700_p1 = pnand %p10699_p0, %p10693_p11 }
  0x23   :  { %10703 = shalt.err (!%p10700_p1)
}
  0x24   :  { %22 = dma.hbm_to_vmem [thread:$0]  %s11130_s0, 2048, %s20_s30, [#allocation3]  }
  0x25   :  { %s10704_s18 = scalar_lea.hbm %s11132_s2, 32 }
  0x26   :  { %p10705_p2 = scmp.ne.s32.totalorder %s11132_s2, %s10704_s18  ;;  %p10708_p3 = scmp.lt.u32.totalorder %s10704_s18, %s11132_s2 }
  0x28   :  { %p10710_p4 = pnand %p10708_p3, %p10705_p2 }
  0x2a   :  { %10713 = shalt.err (!%p10710_p4)
}
  0x2b   :  { %s10714_s23 = scalar_lea.vmem %s42_s6, 32  ;;  %p10719_p6 = scmp.lt.s32.totalorder %s42_s6, %s42_s6 }
  0x2c   :  { %p10715_p5 = scmp.ne.s32.totalorder %s42_s6, %s10714_s23  ;;  %p10720_p7 = scmp.lt.s32.totalorder %s10714_s23, %s10714_s23 }
  0x2e   :  { %p10721_p8 = por %p10720_p7, %p10719_p6 }
  0x30   :  { %p10722_p9 = pnand %p10721_p8, %p10715_p5 }
  0x32   :  { %10725 = shalt.err (!%p10722_p9)
}
  0x33   :  { %44 = dma.hbm_to_vmem [thread:$0]  %s11132_s2, 32, %s42_s6, [#allocation6]  }
  0x34   :  { %s10783_s25 = smov [#allocation8]   ;;  %s10726_s29 = scalar_lea.hbm %s11133_s3, 32 }
  0x35   :  { %s51_s26 = sshll.u32 %s10783_s25, 4  ;;  %p10727_p10 = scmp.ne.s32.totalorder %s11133_s3, %s10726_s29  ;;  %s52_s26 = int_to_ptr.vmem [resolvable:$true] %s51_s26 }
  0x36   :  { %p10730_p11 = scmp.lt.u32.totalorder %s10726_s29, %s11133_s3 }
  0x38   :  { %p10732_p12 = pnand %p10730_p11, %p10727_p10 }
  0x3a   :  { %10735 = shalt.err (!%p10732_p12)
}
  0x3b   :  { %s10736_s9 = scalar_lea.vmem %s52_s26, 32  ;;  %p10741_p0 = scmp.lt.s32.totalorder %s52_s26, %s52_s26 }
  0x3c   :  { %p10737_p13 = scmp.ne.s32.totalorder %s52_s26, %s10736_s9  ;;  %p10742_p1 = scmp.lt.s32.totalorder %s10736_s9, %s10736_s9 }
  0x3e   :  { %p10743_p2 = por %p10742_p1, %p10741_p0 }
  0x40   :  { %p10744_p3 = pnand %p10743_p2, %p10737_p13 }
  0x42   :  { %10747 = shalt.err (!%p10744_p3)
}
  0x43   :  { %54 = dma.hbm_to_vmem [thread:$0]  %s11133_s3, 32, %s52_s26, [#allocation9]  }
  0x44   :  { %10770 = dma.done.wait [#allocation3], 2048  }
  0x45   :  { %10771 = vsyncadd [#allocation3], 4294965248 }
  0x46   :  { %10772 = dma.done.wait [#allocation6], 131104  }
  0x47   :  { %10773 = vsyncadd [#allocation6], 4294836192 }
  0x48   :  { %10774 = dma.done.wait [#allocation9], 32  }
  0x49   :  { %10775 = vsyncadd [#allocation9], 4294967264  ;;  %v9108_v0 = vld [vmem:[#allocation5 + $0x4] ss:$8 sps:$4 sm:$0xff]   ;;  %v9112_v2 = vld [vmem:[#allocation5] ss:$8 sps:$4 sm:$0xff]   ;;  %v1133_v38 = vlaneseq }
  0x4a   :  { %v9110_v1 = vld [vmem:[#allocation5 + $0x1004] ss:$8 sps:$4 sm:$0xff]   ;;  %6585 = vmatprep.subr.bf16.mxu1 %v9108_v0  ;;  %v9113_v3 = vld [vmem:[#allocation5 + $0x1000] ss:$8 sps:$4 sm:$0xff]   ;;  %v9114_v4 = vld [vmem:[#allocation5 + $0x14] ss:$8 sps:$4 sm:$0xff]  }
  0x4b   :  { %7241 = vmatprep.subr.bf16.mxu0 %v9110_v1  ;;  %6586 = vmatpush1.bf16.msra.mxu1 %v9112_v2  ;;  %v9116_v5 = vld [vmem:[#allocation5 + $0x1014] ss:$8 sps:$4 sm:$0xff]   ;;  %v9118_v6 = vld [vmem:[#allocation5 + $0x10] ss:$8 sps:$4 sm:$0xff]   ;;  %v9120_v8 = vld [vmem:[#allocation5 + $0x24] ss:$8 sps:$4 sm:$0xff]  }
  0x4c   :  { %7242 = vmatpush1.bf16.msra.mxu0 %v9113_v3  ;;  %6587 = vmatprep.subr.bf16.mxu1 %v9114_v4  ;;  %v9119_v7 = vld [vmem:[#allocation5 + $0x1010] ss:$8 sps:$4 sm:$0xff]   ;;  %v9122_v9 = vld [vmem:[#allocation5 + $0x1024] ss:$8 sps:$4 sm:$0xff]   ;;  %v9124_v10 = vld [vmem:[#allocation5 + $0x20] ss:$8 sps:$4 sm:$0xff]  }
  0x4d   :  { %7243 = vmatprep.subr.bf16.mxu0 %v9116_v5  ;;  %v9125_v11 = vld [vmem:[#allocation5 + $0x1020] ss:$8 sps:$4 sm:$0xff]   ;;  %v9126_v12 = vld [vmem:[#allocation5 + $0x34] ss:$8 sps:$4 sm:$0xff]   ;;  %v9130_v14 = vld [vmem:[#allocation5 + $0x30] ss:$8 sps:$4 sm:$0xff]  }
  0x4e   :  { %v9128_v13 = vld [vmem:[#allocation5 + $0x1034] ss:$8 sps:$4 sm:$0xff]   ;;  %v9131_v15 = vld [vmem:[#allocation5 + $0x1030] ss:$8 sps:$4 sm:$0xff]   ;;  %v9132_v16 = vld [vmem:[#allocation5 + $0x44] ss:$8 sps:$4 sm:$0xff]  }
  0x4f   :  { %6588 = vmatpush1.bf16.msra.mxu1 %v9118_v6  ;;  %v9134_v17 = vld [vmem:[#allocation5 + $0x1044] ss:$8 sps:$4 sm:$0xff]   ;;  %v9136_v18 = vld [vmem:[#allocation5 + $0x40] ss:$8 sps:$4 sm:$0xff]   ;;  %v9138_v20 = vld [vmem:[#allocation5 + $0x54] ss:$8 sps:$4 sm:$0xff]  }
  0x50   :  { %7244 = vmatpush1.bf16.msra.mxu0 %v9119_v7  ;;  %6589 = vmatprep.subr.bf16.mxu1 %v9120_v8  ;;  %v9137_v19 = vld [vmem:[#allocation5 + $0x1040] ss:$8 sps:$4 sm:$0xff]   ;;  %v9140_v21 = vld [vmem:[#allocation5 + $0x1054] ss:$8 sps:$4 sm:$0xff]   ;;  %v9142_v22 = vld [vmem:[#allocation5 + $0x50] ss:$8 sps:$4 sm:$0xff]  }
  0x51   :  { %7245 = vmatprep.subr.bf16.mxu0 %v9122_v9  ;;  %v9143_v23 = vld [vmem:[#allocation5 + $0x1050] ss:$8 sps:$4 sm:$0xff]   ;;  %v9144_v24 = vld [vmem:[#allocation5 + $0x64] ss:$8 sps:$4 sm:$0xff]   ;;  %v9148_v26 = vld [vmem:[#allocation5 + $0x60] ss:$8 sps:$4 sm:$0xff]  }
  0x52   :  { %v9146_v25 = vld [vmem:[#allocation5 + $0x1064] ss:$8 sps:$4 sm:$0xff]   ;;  %v9149_v27 = vld [vmem:[#allocation5 + $0x1060] ss:$8 sps:$4 sm:$0xff]   ;;  %v9150_v28 = vld [vmem:[#allocation5 + $0x74] ss:$8 sps:$4 sm:$0xff]  }
  0x53   :  { %6590 = vmatpush1.bf16.msra.mxu1 %v9124_v10  ;;  %v9152_v29 = vld [vmem:[#allocation5 + $0x1074] ss:$8 sps:$4 sm:$0xff]   ;;  %v9154_v30 = vld [vmem:[#allocation5 + $0x70] ss:$8 sps:$4 sm:$0xff]   ;;  %v9156_v32 = vld [vmem:[#allocation5 + $0x84] ss:$8 sps:$4 sm:$0xff]  }
  0x54   :  { %7246 = vmatpush1.bf16.msra.mxu0 %v9125_v11  ;;  %6591 = vmatprep.subr.bf16.mxu1 %v9126_v12  ;;  %v9155_v31 = vld [vmem:[#allocation5 + $0x1070] ss:$8 sps:$4 sm:$0xff]   ;;  %v9158_v33 = vld [vmem:[#allocation5 + $0x1084] ss:$8 sps:$4 sm:$0xff]   ;;  %v9160_v34 = vld [vmem:[#allocation5 + $0x80] ss:$8 sps:$4 sm:$0xff]  }
  0x55   :  { %7247 = vmatprep.subr.bf16.mxu0 %v9128_v13  ;;  %v9161_v35 = vld [vmem:[#allocation5 + $0x1080] ss:$8 sps:$4 sm:$0xff]   ;;  %v10784_v36 = vmov 1983009808   ;;  %v9162_v39 = vld [vmem:[#allocation5 + $0x94] ss:$8 sps:$4 sm:$0xff]  }
  0x56   :  { %v1131_v37 = vunpack.c.l.s4 %v10784_v36  ;;  %v9164_v40 = vld [vmem:[#allocation5 + $0x1094] ss:$8 sps:$4 sm:$0xff]   ;;  %v9166_v41 = vld [vmem:[#allocation5 + $0x90] ss:$8 sps:$4 sm:$0xff]   ;;  %v10859_v43 = vshrl.u32 %v1133_v38, 7  ;;  %v73_v52 = vld [vmem:[#allocation2] sm:$0xff] }
  0x57   :  { %6592 = vmatpush1.bf16.msra.mxu1 %v9130_v14  ;;  %v9167_v44 = vld [vmem:[#allocation5 + $0x1090] ss:$8 sps:$4 sm:$0xff]   ;;  %v9168_v45 = vld [vmem:[#allocation5 + $0xa4] ss:$8 sps:$4 sm:$0xff]   ;;  %v9172_v47 = vld [vmem:[#allocation5 + $0xa0] ss:$8 sps:$4 sm:$0xff]   ;;  %v1129_v10 = vcombine.high %v73_v52, %v73_v52 }
  0x58   :  { %7248 = vmatpush1.bf16.msra.mxu0 %v9131_v15  ;;  %6593 = vmatprep.subr.bf16.mxu1 %v9132_v16  ;;  %v1132_v42 = vunpack.c.0.s8 %v1131_v37  ;;  %v9170_v46 = vld [vmem:[#allocation5 + $0x10a4] ss:$8 sps:$4 sm:$0xff]   ;;  %v9173_v48 = vld [vmem:[#allocation5 + $0x10a0] ss:$8 sps:$4 sm:$0xff]   ;;  %v9174_v50 = vld [vmem:[#allocation5 + $0xb4] ss:$8 sps:$4 sm:$0xff]  }
  0x59   :  { %7249 = vmatprep.subr.bf16.mxu0 %v9134_v17  ;;  %v9176_v51 = vld [vmem:[#allocation5 + $0x10b4] ss:$8 sps:$4 sm:$0xff]   ;;  %v9178_v53 = vld [vmem:[#allocation5 + $0xb0] ss:$8 sps:$4 sm:$0xff]   ;;  %v81_v56 = vld [vmem:[#allocation2 + $0x40] sm:$0xff]  ;;  %s10785_s3 = smov [#allocation10]  }
  0x5a   :  { %v10862_v49 = vsub.s32 %v1132_v42, %v10859_v43  ;;  %v9179_v55 = vld [vmem:[#allocation5 + $0x10b0] ss:$8 sps:$4 sm:$0xff]   ;;  %v9180_v57 = vld [vmem:[#allocation5 + $0xc4] ss:$8 sps:$4 sm:$0xff]   ;;  %v9184_v62 = vld [vmem:[#allocation5 + $0xc0] ss:$8 sps:$4 sm:$0xff]   ;;  %v1265_v11 = vcombine.high %v81_v56, %v81_v56 }
  0x5b   :  { %6594 = vmatpush1.bf16.msra.mxu1 %v9136_v18  ;;  %v9182_v58 = vld [vmem:[#allocation5 + $0x10c4] ss:$8 sps:$4 sm:$0xff]   ;;  %v9185_v63 = vld [vmem:[#allocation5 + $0x10c0] ss:$8 sps:$4 sm:$0xff]   ;;  %v9186_v0 = vld [vmem:[#allocation5 + $0xd4] ss:$8 sps:$4 sm:$0xff]  }
  0x5c   :  { %7250 = vmatpush1.bf16.msra.mxu0 %v9137_v19  ;;  %6595 = vmatprep.subr.bf16.mxu1 %v9138_v20  ;;  %v1136_v54 = vrot.slane %v73_v52, %v10862_v49  ;;  %v1272_v60 = vrot.slane %v81_v56, %v10862_v49  ;;  %v9188_v1 = vld [vmem:[#allocation5 + $0x10d4] ss:$8 sps:$4 sm:$0xff]   ;;  %v9190_v2 = vld [vmem:[#allocation5 + $0xd0] ss:$8 sps:$4 sm:$0xff]   ;;  %v9192_v4 = vld [vmem:[#allocation5 + $0xe4] ss:$8 sps:$4 sm:$0xff]   ;;  %v10867_v16 = vrot.slane %v1129_v10, %v10862_v49 }
  0x5d   :  { %7251 = vmatprep.subr.bf16.mxu0 %v9140_v21  ;;  %v9191_v3 = vld [vmem:[#allocation5 + $0x10d0] ss:$8 sps:$4 sm:$0xff]   ;;  %v9194_v5 = vld [vmem:[#allocation5 + $0x10e4] ss:$8 sps:$4 sm:$0xff]   ;;  %v9196_v6 = vld [vmem:[#allocation5 + $0xe0] ss:$8 sps:$4 sm:$0xff]   ;;  %v10870_v17 = vrot.slane %v1265_v11, %v10862_v49 }
  0x5e   :  { %v1144_v59 = vcombine.high %v1136_v54, %v1136_v54  ;;  %v1280_v61 = vcombine.high %v1272_v60, %v1272_v60  ;;  %v9197_v7 = vld [vmem:[#allocation5 + $0x10e0] ss:$8 sps:$4 sm:$0xff]   ;;  %v9198_v8 = vld [vmem:[#allocation5 + $0xf4] ss:$8 sps:$4 sm:$0xff]   ;;  %v9202_v12 = vld [vmem:[#allocation5 + $0xf0] ss:$8 sps:$4 sm:$0xff]  }
  0x5f   :  { %6596 = vmatpush1.bf16.msra.mxu1 %v9142_v22  ;;  %v9200_v9 = vld [vmem:[#allocation5 + $0x10f4] ss:$8 sps:$4 sm:$0xff]   ;;  %v9203_v13 = vld [vmem:[#allocation5 + $0x10f0] ss:$8 sps:$4 sm:$0xff]   ;;  %v9207_v14 = vld [vmem:[#allocation5 + $0x104] ss:$8 sps:$4 sm:$0xff]   ;;  %v1145_v22 = vcombine.high %v10867_v16, %v10867_v16 }
  0x60   :  { %7252 = vmatpush1.bf16.msra.mxu0 %v9143_v23  ;;  %6597 = vmatprep.subr.bf16.mxu1 %v9144_v24  ;;  %v9211_v15 = vld [vmem:[#allocation5 + $0x1104] ss:$8 sps:$4 sm:$0xff]   ;;  %v9205_v18 = vld [vmem:[#allocation5 + $0x100] ss:$8 sps:$4 sm:$0xff]   ;;  %v9214_v20 = vld [vmem:[#allocation5 + $0x114] ss:$8 sps:$4 sm:$0xff]   ;;  %v1281_v23 = vcombine.high %v10870_v17, %v10870_v17 }
  0x61   :  { %7253 = vmatprep.subr.bf16.mxu0 %v9146_v25  ;;  %6617 = vmatprep.mubr.bf16.mxu1 %v1144_v59  ;;  %v9209_v19 = vld [vmem:[#allocation5 + $0x1100] ss:$8 sps:$4 sm:$0xff]   ;;  %v9217_v21 = vld [vmem:[#allocation5 + $0x1114] ss:$8 sps:$4 sm:$0xff]   ;;  %v9212_v24 = vld [vmem:[#allocation5 + $0x110] ss:$8 sps:$4 sm:$0xff]  }
  0x62   :  { %7273 = vmatprep.mubr.bf16.mxu0 %v1280_v61  ;;  %v9215_v25 = vld [vmem:[#allocation5 + $0x1110] ss:$8 sps:$4 sm:$0xff]   ;;  %v9230_v36 = vld [vmem:[#allocation5 + $0x140] ss:$8 sps:$4 sm:$0xff]   ;;  %v9238_v38 = vld [vmem:[#allocation5 + $0x154] ss:$8 sps:$4 sm:$0xff]  }
  0x63   :  { %6598 = vmatpush1.bf16.msra.mxu1 %v9148_v26  ;;  %v9220_v26 = vld [vmem:[#allocation5 + $0x124] ss:$8 sps:$4 sm:$0xff]   ;;  %v9233_v37 = vld [vmem:[#allocation5 + $0x1140] ss:$8 sps:$4 sm:$0xff]   ;;  %v9262_v56 = vld [vmem:[#allocation5 + $0x194] ss:$8 sps:$4 sm:$0xff]  }
  0x64   :  { %7254 = vmatpush1.bf16.msra.mxu0 %v9149_v27  ;;  %6599 = vmatprep.subr.bf16.mxu1 %v9150_v28  ;;  %v9223_v27 = vld [vmem:[#allocation5 + $0x1124] ss:$8 sps:$4 sm:$0xff]   ;;  %v9218_v28 = vld [vmem:[#allocation5 + $0x120] ss:$8 sps:$4 sm:$0xff]   ;;  %v9263_v59 = vld [vmem:[#allocation5 + $0x1190] ss:$8 sps:$4 sm:$0xff]  }
  0x65   :  { %7255 = vmatprep.subr.bf16.mxu0 %v9152_v29  ;;  %v9221_v29 = vld [vmem:[#allocation5 + $0x1120] ss:$8 sps:$4 sm:$0xff]   ;;  %v9244_v42 = vld [vmem:[#allocation5 + $0x164] ss:$8 sps:$4 sm:$0xff]   ;;  %v9284_v10 = vld [vmem:[#allocation5 + $0x1d0] ss:$8 sps:$4 sm:$0xff]  }
  0x66   :  { %v9256_v52 = vld [vmem:[#allocation5 + $0x184] ss:$8 sps:$4 sm:$0xff]   ;;  %v9287_v11 = vld [vmem:[#allocation5 + $0x11d0] ss:$8 sps:$4 sm:$0xff]   ;;  %s7942_s10 = sshll.u32 %s10785_s3, 4  ;;  %s7943_s10 = int_to_ptr.vmem [resolvable:$true] %s7942_s10 }
  0x67   :  { %6600 = vmatpush1.bf16.msra.mxu1 %v9154_v30  ;;  %v9226_v30 = vld [vmem:[#allocation5 + $0x134] ss:$8 sps:$4 sm:$0xff]   ;;  %v9271_v61 = vld [vmem:[#allocation5 + $0x11a4] ss:$8 sps:$4 sm:$0xff]   ;;  %s10748_s11 = scalar_lea.vmem %s7943_s10, 128  ;;  %p10753_p5 = scmp.lt.s32.totalorder %s7943_s10, %s7943_s10 }
  0x68   :  { %7256 = vmatpush1.bf16.msra.mxu0 %v9155_v31  ;;  %6601 = vmatprep.subr.bf16.mxu1 %v9156_v32  ;;  %v9229_v31 = vld [vmem:[#allocation5 + $0x1134] ss:$8 sps:$4 sm:$0xff]   ;;  %v9224_v32 = vld [vmem:[#allocation5 + $0x130] ss:$8 sps:$4 sm:$0xff]   ;;  %p10749_p4 = scmp.ne.s32.totalorder %s7943_s10, %s10748_s11  ;;  %p10754_p6 = scmp.lt.s32.totalorder %s10748_s11, %s10748_s11 }
  0x69   :  { %7257 = vmatprep.subr.bf16.mxu0 %v9158_v33  ;;  %v9227_v33 = vld [vmem:[#allocation5 + $0x1130] ss:$8 sps:$4 sm:$0xff]  }
  0x6a   :  { %p10755_p7 = por %p10754_p6, %p10753_p5 }
  0x6b   :  { %6602 = vmatpush1.bf16.msra.mxu1 %v9160_v34  ;;  %v9232_v34 = vld [vmem:[#allocation5 + $0x144] ss:$8 sps:$4 sm:$0xff]  }
  0x6c   :  { %7258 = vmatpush1.bf16.msra.mxu0 %v9161_v35  ;;  %6603 = vmatprep.subr.bf16.mxu1 %v9162_v39  ;;  %v9235_v35 = vld [vmem:[#allocation5 + $0x1144] ss:$8 sps:$4 sm:$0xff]   ;;  %v9241_v39 = vld [vmem:[#allocation5 + $0x1154] ss:$8 sps:$4 sm:$0xff]   ;;  %p10756_p8 = pnand %p10755_p7, %p10749_p4 }
  0x6d   :  { %7259 = vmatprep.subr.bf16.mxu0 %v9164_v40  ;;  %v9236_v40 = vld [vmem:[#allocation5 + $0x150] ss:$8 sps:$4 sm:$0xff]  }
  0x6f   :  { %6604 = vmatpush1.bf16.msra.mxu1 %v9166_v41  ;;  %v9239_v41 = vld [vmem:[#allocation5 + $0x1150] ss:$8 sps:$4 sm:$0xff]  }
  0x70   :  { %7260 = vmatpush1.bf16.msra.mxu0 %v9167_v44  ;;  %6605 = vmatprep.subr.bf16.mxu1 %v9168_v45  ;;  %v9247_v44 = vld [vmem:[#allocation5 + $0x1164] ss:$8 sps:$4 sm:$0xff]   ;;  %v9242_v45 = vld [vmem:[#allocation5 + $0x160] ss:$8 sps:$4 sm:$0xff]  }
  0x71   :  { %7261 = vmatprep.subr.bf16.mxu0 %v9170_v46  ;;  %v9245_v46 = vld [vmem:[#allocation5 + $0x1160] ss:$8 sps:$4 sm:$0xff]  }
  0x73   :  { %6606 = vmatpush1.bf16.msra.mxu1 %v9172_v47  ;;  %v9250_v47 = vld [vmem:[#allocation5 + $0x174] ss:$8 sps:$4 sm:$0xff]  }
  0x74   :  { %7262 = vmatpush1.bf16.msra.mxu0 %v9173_v48  ;;  %6607 = vmatprep.subr.bf16.mxu1 %v9174_v50  ;;  %v9253_v48 = vld [vmem:[#allocation5 + $0x1174] ss:$8 sps:$4 sm:$0xff]   ;;  %v9248_v50 = vld [vmem:[#allocation5 + $0x170] ss:$8 sps:$4 sm:$0xff]  }
  0x75   :  { %7263 = vmatprep.subr.bf16.mxu0 %v9176_v51  ;;  %v9251_v51 = vld [vmem:[#allocation5 + $0x1170] ss:$8 sps:$4 sm:$0xff]  }
  0x77   :  { %6608 = vmatpush1.bf16.msra.mxu1 %v9178_v53  ;;  %v9259_v53 = vld [vmem:[#allocation5 + $0x1184] ss:$8 sps:$4 sm:$0xff]  }
  0x78   :  { %7264 = vmatpush1.bf16.msra.mxu0 %v9179_v55  ;;  %6609 = vmatprep.subr.bf16.mxu1 %v9180_v57  ;;  %v9257_v55 = vld [vmem:[#allocation5 + $0x1180] ss:$8 sps:$4 sm:$0xff]   ;;  %v9265_v57 = vld [vmem:[#allocation5 + $0x1194] ss:$8 sps:$4 sm:$0xff]  }
  0x79   :  { %7265 = vmatprep.subr.bf16.mxu0 %v9182_v58  ;;  %v9260_v58 = vld [vmem:[#allocation5 + $0x190] ss:$8 sps:$4 sm:$0xff]  }
  0x7b   :  { %6610 = vmatpush1.bf16.msra.mxu1 %v9184_v62  ;;  %v9266_v62 = vld [vmem:[#allocation5 + $0x1a0] ss:$8 sps:$4 sm:$0xff]  }
  0x7c   :  { %7266 = vmatpush1.bf16.msra.mxu0 %v9185_v63  ;;  %6611 = vmatprep.subr.bf16.mxu1 %v9186_v0  ;;  %v9269_v63 = vld [vmem:[#allocation5 + $0x11a0] ss:$8 sps:$4 sm:$0xff]   ;;  %v9274_v0 = vld [vmem:[#allocation5 + $0x1b4] ss:$8 sps:$4 sm:$0xff]  }
  0x7d   :  { %7267 = vmatprep.subr.bf16.mxu0 %v9188_v1  ;;  %v9277_v1 = vld [vmem:[#allocation5 + $0x11b4] ss:$8 sps:$4 sm:$0xff]  }
  0x7f   :  { %6612 = vmatpush1.bf16.msra.mxu1 %v9190_v2  ;;  %v9272_v2 = vld [vmem:[#allocation5 + $0x1b0] ss:$8 sps:$4 sm:$0xff]  }
  0x80   :  { %7268 = vmatpush1.bf16.msra.mxu0 %v9191_v3  ;;  %6613 = vmatprep.subr.bf16.mxu1 %v9192_v4  ;;  %v9275_v3 = vld [vmem:[#allocation5 + $0x11b0] ss:$8 sps:$4 sm:$0xff]   ;;  %v9280_v4 = vld [vmem:[#allocation5 + $0x1c4] ss:$8 sps:$4 sm:$0xff]  }
  0x81   :  { %7269 = vmatprep.subr.bf16.mxu0 %v9194_v5  ;;  %v9283_v5 = vld [vmem:[#allocation5 + $0x11c4] ss:$8 sps:$4 sm:$0xff]  }
  0x83   :  { %6614 = vmatpush1.bf16.msra.mxu1 %v9196_v6  ;;  %v9278_v6 = vld [vmem:[#allocation5 + $0x1c0] ss:$8 sps:$4 sm:$0xff]  }
  0x84   :  { %7270 = vmatpush1.bf16.msra.mxu0 %v9197_v7  ;;  %6615 = vmatprep.subr.bf16.mxu1 %v9198_v8  ;;  %v9281_v7 = vld [vmem:[#allocation5 + $0x11c0] ss:$8 sps:$4 sm:$0xff]   ;;  %v9286_v8 = vld [vmem:[#allocation5 + $0x1d4] ss:$8 sps:$4 sm:$0xff]  }
  0x85   :  { %7271 = vmatprep.subr.bf16.mxu0 %v9200_v9  ;;  %v9289_v9 = vld [vmem:[#allocation5 + $0x11d4] ss:$8 sps:$4 sm:$0xff]  }
  0x87   :  { %6616 = vmatpush1.bf16.msra.mxu1 %v9202_v12  ;;  %v9292_v12 = vld [vmem:[#allocation5 + $0x1e4] ss:$8 sps:$4 sm:$0xff]  }
  0x88   :  { %7272 = vmatpush1.bf16.msra.mxu0 %v9203_v13  ;;  %6626 = vmatprep.subr.bf16.mxu1 %v9207_v14  ;;  %v9295_v13 = vld [vmem:[#allocation5 + $0x11e4] ss:$8 sps:$4 sm:$0xff]   ;;  %v9290_v14 = vld [vmem:[#allocation5 + $0x1e0] ss:$8 sps:$4 sm:$0xff]  }
  0x89   :  { %7282 = vmatprep.subr.bf16.mxu0 %v9211_v15  ;;  %v9293_v15 = vld [vmem:[#allocation5 + $0x11e0] ss:$8 sps:$4 sm:$0xff]  }
  0x8a   :  { %6618 = vmatmul.mubr.bf16.vlgmr.msra.gmra.mrb[0].mxu1 %v1136_v54  ;;  %v9254_v54 = vld [vmem:[#allocation5 + $0x180] ss:$8 sps:$4 sm:$0xff]  }
  0x8b   :  { %7274 = vmatmul.mubr.bf16.vlgmr.msra.gmra.mrb[0].mxu0 %v1272_v60  ;;  %6627 = vmatpush1.bf16.msra.mxu1 %v9205_v18  ;;  %v9268_v60 = vld [vmem:[#allocation5 + $0x1a4] ss:$8 sps:$4 sm:$0xff]   ;;  %v9298_v18 = vld [vmem:[#allocation5 + $0x1f4] ss:$8 sps:$4 sm:$0xff]  }
  0x8c   :  { %7283 = vmatpush1.bf16.msra.mxu0 %v9209_v19  ;;  %6628 = vmatprep.subr.bf16.mxu1 %v9214_v20  ;;  %v9301_v19 = vld [vmem:[#allocation5 + $0x11f4] ss:$8 sps:$4 sm:$0xff]   ;;  %v9296_v20 = vld [vmem:[#allocation5 + $0x1f0] ss:$8 sps:$4 sm:$0xff]  }
  0x8d   :  { %7284 = vmatprep.subr.bf16.mxu0 %v9217_v21  ;;  %6658 = vmatprep.mubr.bf16.mxu1 %v1145_v22  ;;  %v9299_v21 = vld [vmem:[#allocation5 + $0x11f0] ss:$8 sps:$4 sm:$0xff]   ;;  %v9304_v22 = vld [vmem:[#allocation5 + $0x204] ss:$8 sps:$4 sm:$0xff]  }
  0x8e   :  { %7314 = vmatprep.mubr.bf16.mxu0 %v1281_v23  ;;  %v9307_v23 = vld [vmem:[#allocation5 + $0x1204] ss:$8 sps:$4 sm:$0xff]  }
  0x8f   :  { %6629 = vmatpush1.bf16.msra.mxu1 %v9212_v24  ;;  %v9302_v24 = vld [vmem:[#allocation5 + $0x200] ss:$8 sps:$4 sm:$0xff]  }
  0x90   :  { %7285 = vmatpush1.bf16.msra.mxu0 %v9215_v25  ;;  %6630 = vmatprep.subr.bf16.mxu1 %v9220_v26  ;;  %v9305_v25 = vld [vmem:[#allocation5 + $0x1200] ss:$8 sps:$4 sm:$0xff]   ;;  %v9310_v26 = vld [vmem:[#allocation5 + $0x214] ss:$8 sps:$4 sm:$0xff]  }
  0x91   :  { %7286 = vmatprep.subr.bf16.mxu0 %v9223_v27  ;;  %v10876_v27 = vld [vmem:[#allocation2 + $0x8] sm:$0xff] }
  0x93   :  { %6631 = vmatpush1.bf16.msra.mxu1 %v9218_v28  ;;  %v9313_v28 = vld [vmem:[#allocation5 + $0x1214] ss:$8 sps:$4 sm:$0xff]  }
  0x94   :  { %7287 = vmatpush1.bf16.msra.mxu0 %v9221_v29  ;;  %6632 = vmatprep.subr.bf16.mxu1 %v9226_v30  ;;  %v10880_v29 = vrot.slane %v10876_v27, %v10862_v49  ;;  %v10882_v30 = vld [vmem:[#allocation2 + $0x48] sm:$0xff] }
  0x95   :  { %7288 = vmatprep.subr.bf16.mxu0 %v9229_v31  ;;  %v9308_v31 = vld [vmem:[#allocation5 + $0x210] ss:$8 sps:$4 sm:$0xff]  }
  0x97   :  { %6633 = vmatpush1.bf16.msra.mxu1 %v9224_v32  ;;  %v9311_v32 = vld [vmem:[#allocation5 + $0x1210] ss:$8 sps:$4 sm:$0xff]  }
  0x98   :  { %7289 = vmatpush1.bf16.msra.mxu0 %v9227_v33  ;;  %6634 = vmatprep.subr.bf16.mxu1 %v9232_v34  ;;  %v1161_v33 = vcombine.high %v10880_v29, %v10880_v29  ;;  %v10890_v34 = vrot.slane %v10882_v30, %v10862_v49 }
  0x99   :  { %7290 = vmatprep.subr.bf16.mxu0 %v9235_v35  ;;  %v9316_v35 = vld [vmem:[#allocation5 + $0x224] ss:$8 sps:$4 sm:$0xff]  }
  0x9b   :  { %6635 = vmatpush1.bf16.msra.mxu1 %v9230_v36  ;;  %v9319_v36 = vld [vmem:[#allocation5 + $0x1224] ss:$8 sps:$4 sm:$0xff]  }
  0x9c   :  { %7291 = vmatpush1.bf16.msra.mxu0 %v9233_v37  ;;  %6636 = vmatprep.subr.bf16.mxu1 %v9238_v38  ;;  %v9317_v37 = vld [vmem:[#allocation5 + $0x1220] ss:$8 sps:$4 sm:$0xff]   ;;  %v9322_v38 = vld [vmem:[#allocation5 + $0x234] ss:$8 sps:$4 sm:$0xff]  }
  0x9d   :  { %7292 = vmatprep.subr.bf16.mxu0 %v9241_v39  ;;  %v9325_v39 = vld [vmem:[#allocation5 + $0x1234] ss:$8 sps:$4 sm:$0xff]  }
  0x9f   :  { %6637 = vmatpush1.bf16.msra.mxu1 %v9236_v40  ;;  %v9320_v40 = vld [vmem:[#allocation5 + $0x230] ss:$8 sps:$4 sm:$0xff]  }
  0xa0   :  { %7293 = vmatpush1.bf16.msra.mxu0 %v9239_v41  ;;  %6638 = vmatprep.subr.bf16.mxu1 %v9244_v42  ;;  %v9323_v41 = vld [vmem:[#allocation5 + $0x1230] ss:$8 sps:$4 sm:$0xff]   ;;  %v9328_v42 = vld [vmem:[#allocation5 + $0x244] ss:$8 sps:$4 sm:$0xff]  }
  0xa1   :  { %7294 = vmatprep.subr.bf16.mxu0 %v9247_v44  ;;  %v9331_v44 = vld [vmem:[#allocation5 + $0x1244] ss:$8 sps:$4 sm:$0xff]  }
  0xa3   :  { %6639 = vmatpush1.bf16.msra.mxu1 %v9242_v45  ;;  %v9326_v45 = vld [vmem:[#allocation5 + $0x240] ss:$8 sps:$4 sm:$0xff]  }
  0xa4   :  { %7295 = vmatpush1.bf16.msra.mxu0 %v9245_v46  ;;  %6640 = vmatprep.subr.bf16.mxu1 %v9250_v47  ;;  %v9329_v46 = vld [vmem:[#allocation5 + $0x1240] ss:$8 sps:$4 sm:$0xff]   ;;  %v9334_v47 = vld [vmem:[#allocation5 + $0x254] ss:$8 sps:$4 sm:$0xff]  }
  0xa5   :  { %7296 = vmatprep.subr.bf16.mxu0 %v9253_v48  ;;  %v9337_v48 = vld [vmem:[#allocation5 + $0x1254] ss:$8 sps:$4 sm:$0xff]  }
  0xa7   :  { %6641 = vmatpush1.bf16.msra.mxu1 %v9248_v50  ;;  %v9332_v50 = vld [vmem:[#allocation5 + $0x250] ss:$8 sps:$4 sm:$0xff]  }
  0xa8   :  { %7297 = vmatpush1.bf16.msra.mxu0 %v9251_v51  ;;  %6642 = vmatprep.subr.bf16.mxu1 %v9256_v52  ;;  %v9335_v51 = vld [vmem:[#allocation5 + $0x1250] ss:$8 sps:$4 sm:$0xff]   ;;  %v9340_v52 = vld [vmem:[#allocation5 + $0x264] ss:$8 sps:$4 sm:$0xff]  }
  0xa9   :  { %7298 = vmatprep.subr.bf16.mxu0 %v9259_v53  ;;  %v9343_v53 = vld [vmem:[#allocation5 + $0x1264] ss:$8 sps:$4 sm:$0xff]  }
  0xab   :  { %6643 = vmatpush1.bf16.msra.mxu1 %v9254_v54  ;;  %v9338_v54 = vld [vmem:[#allocation5 + $0x260] ss:$8 sps:$4 sm:$0xff]  }
  0xac   :  { %7299 = vmatpush1.bf16.msra.mxu0 %v9257_v55  ;;  %6644 = vmatprep.subr.bf16.mxu1 %v9262_v56  ;;  %v9341_v55 = vld [vmem:[#allocation5 + $0x1260] ss:$8 sps:$4 sm:$0xff]   ;;  %v9346_v56 = vld [vmem:[#allocation5 + $0x274] ss:$8 sps:$4 sm:$0xff]  }
  0xad   :  { %7300 = vmatprep.subr.bf16.mxu0 %v9265_v57  ;;  %v9349_v57 = vld [vmem:[#allocation5 + $0x1274] ss:$8 sps:$4 sm:$0xff]  }
  0xaf   :  { %6645 = vmatpush1.bf16.msra.mxu1 %v9260_v58  ;;  %v9344_v58 = vld [vmem:[#allocation5 + $0x270] ss:$8 sps:$4 sm:$0xff]  }
  0xb0   :  { %7301 = vmatpush1.bf16.msra.mxu0 %v9263_v59  ;;  %6646 = vmatprep.subr.bf16.mxu1 %v9268_v60  ;;  %v9347_v59 = vld [vmem:[#allocation5 + $0x1270] ss:$8 sps:$4 sm:$0xff]   ;;  %v9352_v60 = vld [vmem:[#allocation5 + $0x284] ss:$8 sps:$4 sm:$0xff]  }
  0xb1   :  { %7302 = vmatprep.subr.bf16.mxu0 %v9271_v61  ;;  %v9355_v61 = vld [vmem:[#allocation5 + $0x1284] ss:$8 sps:$4 sm:$0xff]  }
  0xb3   :  { %6647 = vmatpush1.bf16.msra.mxu1 %v9266_v62  ;;  %v9350_v62 = vld [vmem:[#allocation5 + $0x280] ss:$8 sps:$4 sm:$0xff]  }
  0xb4   :  { %7303 = vmatpush1.bf16.msra.mxu0 %v9269_v63  ;;  %6648 = vmatprep.subr.bf16.mxu1 %v9274_v0  ;;  %v9353_v63 = vld [vmem:[#allocation5 + $0x1280] ss:$8 sps:$4 sm:$0xff]   ;;  %v9358_v0 = vld [vmem:[#allocation5 + $0x294] ss:$8 sps:$4 sm:$0xff]  }
  0xb5   :  { %7304 = vmatprep.subr.bf16.mxu0 %v9277_v1  ;;  %v9361_v1 = vld [vmem:[#allocation5 + $0x1294] ss:$8 sps:$4 sm:$0xff]  }
  0xb7   :  { %6649 = vmatpush1.bf16.msra.mxu1 %v9272_v2  ;;  %v9356_v2 = vld [vmem:[#allocation5 + $0x290] ss:$8 sps:$4 sm:$0xff]  }
  0xb8   :  { %7305 = vmatpush1.bf16.msra.mxu0 %v9275_v3  ;;  %6650 = vmatprep.subr.bf16.mxu1 %v9280_v4  ;;  %v9359_v3 = vld [vmem:[#allocation5 + $0x1290] ss:$8 sps:$4 sm:$0xff]   ;;  %v9364_v4 = vld [vmem:[#allocation5 + $0x2a4] ss:$8 sps:$4 sm:$0xff]  }
  0xb9   :  { %7306 = vmatprep.subr.bf16.mxu0 %v9283_v5  ;;  %v9367_v5 = vld [vmem:[#allocation5 + $0x12a4] ss:$8 sps:$4 sm:$0xff]  }
  0xbb   :  { %6651 = vmatpush1.bf16.msra.mxu1 %v9278_v6  ;;  %v9362_v6 = vld [vmem:[#allocation5 + $0x2a0] ss:$8 sps:$4 sm:$0xff]  }
  0xbc   :  { %7307 = vmatpush1.bf16.msra.mxu0 %v9281_v7  ;;  %6652 = vmatprep.subr.bf16.mxu1 %v9286_v8  ;;  %v9365_v7 = vld [vmem:[#allocation5 + $0x12a0] ss:$8 sps:$4 sm:$0xff]   ;;  %v9370_v8 = vld [vmem:[#allocation5 + $0x2b4] ss:$8 sps:$4 sm:$0xff]  }
  0xbd   :  { %7308 = vmatprep.subr.bf16.mxu0 %v9289_v9  ;;  %v9373_v9 = vld [vmem:[#allocation5 + $0x12b4] ss:$8 sps:$4 sm:$0xff]  }
  0xbf   :  { %6653 = vmatpush1.bf16.msra.mxu1 %v9284_v10  ;;  %v9368_v10 = vld [vmem:[#allocation5 + $0x2b0] ss:$8 sps:$4 sm:$0xff]  }
  0xc0   :  { %7309 = vmatpush1.bf16.msra.mxu0 %v9287_v11  ;;  %6654 = vmatprep.subr.bf16.mxu1 %v9292_v12  ;;  %v9371_v11 = vld [vmem:[#allocation5 + $0x12b0] ss:$8 sps:$4 sm:$0xff]   ;;  %v9376_v12 = vld [vmem:[#allocation5 + $0x2c4] ss:$8 sps:$4 sm:$0xff]  }
  0xc1   :  { %7310 = vmatprep.subr.bf16.mxu0 %v9295_v13  ;;  %v9379_v13 = vld [vmem:[#allocation5 + $0x12c4] ss:$8 sps:$4 sm:$0xff]  }
  0xc3   :  { %6655 = vmatpush1.bf16.msra.mxu1 %v9290_v14  ;;  %v9374_v14 = vld [vmem:[#allocation5 + $0x2c0] ss:$8 sps:$4 sm:$0xff]  }
  0xc4   :  { %7311 = vmatpush1.bf16.msra.mxu0 %v9293_v15  ;;  %6656 = vmatprep.subr.bf16.mxu1 %v9298_v18  ;;  %v9377_v15 = vld [vmem:[#allocation5 + $0x12c0] ss:$8 sps:$4 sm:$0xff]   ;;  %v9382_v18 = vld [vmem:[#allocation5 + $0x2d4] ss:$8 sps:$4 sm:$0xff]  }
  0xc5   :  { %7312 = vmatprep.subr.bf16.mxu0 %v9301_v19  ;;  %v9385_v19 = vld [vmem:[#allocation5 + $0x12d4] ss:$8 sps:$4 sm:$0xff]  }
  0xc7   :  { %6657 = vmatpush1.bf16.msra.mxu1 %v9296_v20  ;;  %v9380_v20 = vld [vmem:[#allocation5 + $0x2d0] ss:$8 sps:$4 sm:$0xff]  }
  0xc8   :  { %7313 = vmatpush1.bf16.msra.mxu0 %v9299_v21  ;;  %6667 = vmatprep.subr.bf16.mxu1 %v9304_v22  ;;  %v9383_v21 = vld [vmem:[#allocation5 + $0x12d0] ss:$8 sps:$4 sm:$0xff]   ;;  %v9388_v22 = vld [vmem:[#allocation5 + $0x2e4] ss:$8 sps:$4 sm:$0xff]  }
  0xc9   :  { %7323 = vmatprep.subr.bf16.mxu0 %v9307_v23  ;;  %v9391_v23 = vld [vmem:[#allocation5 + $0x12e4] ss:$8 sps:$4 sm:$0xff]  }
  0xca   :  { %6659 = vmatmul.mubr.bf16.vlgmr.msra.gmra.mrb[0].mxu1 %v10867_v16  ;;  %v1297_v16 = vcombine.high %v10890_v34, %v10890_v34 }
  0xcb   :  { %7315 = vmatmul.mubr.bf16.vlgmr.msra.gmra.mrb[0].mxu0 %v10870_v17  ;;  %6668 = vmatpush1.bf16.msra.mxu1 %v9302_v24  ;;  %v9314_v17 = vld [vmem:[#allocation5 + $0x220] ss:$8 sps:$4 sm:$0xff]  }
  0xcc   :  { %7324 = vmatpush1.bf16.msra.mxu0 %v9305_v25  ;;  %6669 = vmatprep.subr.bf16.mxu1 %v9310_v26  ;;  %v9386_v24 = vld [vmem:[#allocation5 + $0x2e0] ss:$8 sps:$4 sm:$0xff]   ;;  %v9394_v26 = vld [vmem:[#allocation5 + $0x2f4] ss:$8 sps:$4 sm:$0xff]  }
  0xcd   :  { %7325 = vmatprep.subr.bf16.mxu0 %v9313_v28  ;;  %6699 = vmatprep.mubr.bf16.mxu1 %v1161_v33  ;;  %v9389_v25 = vld [vmem:[#allocation5 + $0x12e0] ss:$8 sps:$4 sm:$0xff]   ;;  %v9397_v28 = vld [vmem:[#allocation5 + $0x12f4] ss:$8 sps:$4 sm:$0xff]   ;;  %v9392_v33 = vld [vmem:[#allocation5 + $0x2f0] ss:$8 sps:$4 sm:$0xff]  }
  0xce   :  { %7355 = vmatprep.mubr.bf16.mxu0 %v1297_v16  ;;  %v9403_v16 = vld [vmem:[#allocation5 + $0x1304] ss:$8 sps:$4 sm:$0xff]  }
  0xcf   :  { %6670 = vmatpush1.bf16.msra.mxu1 %v9308_v31  ;;  %v1146_v31 = vcombine.high %v10876_v27, %v10876_v27  ;;  %v9406_v27 = vld [vmem:[#allocation5 + $0x314] ss:$8 sps:$4 sm:$0xff]  }
  0xd0   :  { %7326 = vmatpush1.bf16.msra.mxu0 %v9311_v32  ;;  %6671 = vmatprep.subr.bf16.mxu1 %v9316_v35  ;;  %v1282_v32 = vcombine.high %v10882_v30, %v10882_v30  ;;  %v9395_v35 = vld [vmem:[#allocation5 + $0x12f0] ss:$8 sps:$4 sm:$0xff]   ;;  %v9409_v30 = vld [vmem:[#allocation5 + $0x1314] ss:$8 sps:$4 sm:$0xff]  }
  0xd1   :  { %7327 = vmatprep.subr.bf16.mxu0 %v9319_v36  ;;  %v9400_v36 = vld [vmem:[#allocation5 + $0x304] ss:$8 sps:$4 sm:$0xff]  }
  0xd3   :  { %6672 = vmatpush1.bf16.msra.mxu1 %v9314_v17  ;;  %v10899_v17 = vrot.slane %v1146_v31, %v10862_v49  ;;  %v9476_v31 = vld [vmem:[#allocation5 + $0x3d0] ss:$8 sps:$4 sm:$0xff]  }
  0xd4   :  { %7328 = vmatpush1.bf16.msra.mxu0 %v9317_v37  ;;  %6673 = vmatprep.subr.bf16.mxu1 %v9322_v38  ;;  %v10902_v37 = vrot.slane %v1282_v32, %v10862_v49  ;;  %v9398_v38 = vld [vmem:[#allocation5 + $0x300] ss:$8 sps:$4 sm:$0xff]   ;;  %v9479_v32 = vld [vmem:[#allocation5 + $0x13d0] ss:$8 sps:$4 sm:$0xff]  }
  0xd5   :  { %7329 = vmatprep.subr.bf16.mxu0 %v9325_v39  ;;  %v9401_v39 = vld [vmem:[#allocation5 + $0x1300] ss:$8 sps:$4 sm:$0xff]  }
  0xd7   :  { %6674 = vmatpush1.bf16.msra.mxu1 %v9320_v40  ;;  %v1162_v40 = vcombine.high %v10899_v17, %v10899_v17 }
  0xd8   :  { %7330 = vmatpush1.bf16.msra.mxu0 %v9323_v41  ;;  %6675 = vmatprep.subr.bf16.mxu1 %v9328_v42  ;;  %v1298_v41 = vcombine.high %v10902_v37, %v10902_v37  ;;  %v9404_v42 = vld [vmem:[#allocation5 + $0x310] ss:$8 sps:$4 sm:$0xff]  }
  0xd9   :  { %7331 = vmatprep.subr.bf16.mxu0 %v9331_v44  ;;  %v9407_v44 = vld [vmem:[#allocation5 + $0x1310] ss:$8 sps:$4 sm:$0xff]  }
  0xdb   :  { %6676 = vmatpush1.bf16.msra.mxu1 %v9326_v45  ;;  %v9412_v45 = vld [vmem:[#allocation5 + $0x324] ss:$8 sps:$4 sm:$0xff]  }
  0xdc   :  { %7332 = vmatpush1.bf16.msra.mxu0 %v9329_v46  ;;  %6677 = vmatprep.subr.bf16.mxu1 %v9334_v47  ;;  %v9415_v46 = vld [vmem:[#allocation5 + $0x1324] ss:$8 sps:$4 sm:$0xff]   ;;  %v9410_v47 = vld [vmem:[#allocation5 + $0x320] ss:$8 sps:$4 sm:$0xff]  }
  0xdd   :  { %7333 = vmatprep.subr.bf16.mxu0 %v9337_v48  ;;  %v9413_v48 = vld [vmem:[#allocation5 + $0x1320] ss:$8 sps:$4 sm:$0xff]  }
  0xdf   :  { %6678 = vmatpush1.bf16.msra.mxu1 %v9332_v50  ;;  %v9418_v50 = vld [vmem:[#allocation5 + $0x334] ss:$8 sps:$4 sm:$0xff]  }
  0xe0   :  { %7334 = vmatpush1.bf16.msra.mxu0 %v9335_v51  ;;  %6679 = vmatprep.subr.bf16.mxu1 %v9340_v52  ;;  %v9416_v51 = vld [vmem:[#allocation5 + $0x330] ss:$8 sps:$4 sm:$0xff]   ;;  %v9424_v52 = vld [vmem:[#allocation5 + $0x344] ss:$8 sps:$4 sm:$0xff]  }
  0xe1   :  { %7335 = vmatprep.subr.bf16.mxu0 %v9343_v53  ;;  %v9427_v53 = vld [vmem:[#allocation5 + $0x1344] ss:$8 sps:$4 sm:$0xff]  }
  0xe3   :  { %6680 = vmatpush1.bf16.msra.mxu1 %v9338_v54  ;;  %v9422_v54 = vld [vmem:[#allocation5 + $0x340] ss:$8 sps:$4 sm:$0xff]  }
  0xe4   :  { %7336 = vmatpush1.bf16.msra.mxu0 %v9341_v55  ;;  %6681 = vmatprep.subr.bf16.mxu1 %v9346_v56  ;;  %v9425_v55 = vld [vmem:[#allocation5 + $0x1340] ss:$8 sps:$4 sm:$0xff]   ;;  %v9430_v56 = vld [vmem:[#allocation5 + $0x354] ss:$8 sps:$4 sm:$0xff]  }
  0xe5   :  { %7337 = vmatprep.subr.bf16.mxu0 %v9349_v57  ;;  %v9433_v57 = vld [vmem:[#allocation5 + $0x1354] ss:$8 sps:$4 sm:$0xff]  }
  0xe7   :  { %6682 = vmatpush1.bf16.msra.mxu1 %v9344_v58  ;;  %v9428_v58 = vld [vmem:[#allocation5 + $0x350] ss:$8 sps:$4 sm:$0xff]  }
  0xe8   :  { %7338 = vmatpush1.bf16.msra.mxu0 %v9347_v59  ;;  %6683 = vmatprep.subr.bf16.mxu1 %v9352_v60  ;;  %v9431_v59 = vld [vmem:[#allocation5 + $0x1350] ss:$8 sps:$4 sm:$0xff]   ;;  %v9436_v60 = vld [vmem:[#allocation5 + $0x364] ss:$8 sps:$4 sm:$0xff]  }
  0xe9   :  { %7339 = vmatprep.subr.bf16.mxu0 %v9355_v61  ;;  %v9439_v61 = vld [vmem:[#allocation5 + $0x1364] ss:$8 sps:$4 sm:$0xff]  }
  0xeb   :  { %6684 = vmatpush1.bf16.msra.mxu1 %v9350_v62  ;;  %v9434_v62 = vld [vmem:[#allocation5 + $0x360] ss:$8 sps:$4 sm:$0xff]  }
  0xec   :  { %7340 = vmatpush1.bf16.msra.mxu0 %v9353_v63  ;;  %6685 = vmatprep.subr.bf16.mxu1 %v9358_v0  ;;  %v9437_v63 = vld [vmem:[#allocation5 + $0x1360] ss:$8 sps:$4 sm:$0xff]   ;;  %v9442_v0 = vld [vmem:[#allocation5 + $0x374] ss:$8 sps:$4 sm:$0xff]  }
  0xed   :  { %7341 = vmatprep.subr.bf16.mxu0 %v9361_v1  ;;  %v9445_v1 = vld [vmem:[#allocation5 + $0x1374] ss:$8 sps:$4 sm:$0xff]  }
  0xef   :  { %6686 = vmatpush1.bf16.msra.mxu1 %v9356_v2  ;;  %v9440_v2 = vld [vmem:[#allocation5 + $0x370] ss:$8 sps:$4 sm:$0xff]  }
  0xf0   :  { %7342 = vmatpush1.bf16.msra.mxu0 %v9359_v3  ;;  %6687 = vmatprep.subr.bf16.mxu1 %v9364_v4  ;;  %v9443_v3 = vld [vmem:[#allocation5 + $0x1370] ss:$8 sps:$4 sm:$0xff]   ;;  %v9448_v4 = vld [vmem:[#allocation5 + $0x384] ss:$8 sps:$4 sm:$0xff]  }
  0xf1   :  { %7343 = vmatprep.subr.bf16.mxu0 %v9367_v5  ;;  %v9451_v5 = vld [vmem:[#allocation5 + $0x1384] ss:$8 sps:$4 sm:$0xff]  }
  0xf3   :  { %6688 = vmatpush1.bf16.msra.mxu1 %v9362_v6  ;;  %v9446_v6 = vld [vmem:[#allocation5 + $0x380] ss:$8 sps:$4 sm:$0xff]  }
  0xf4   :  { %7344 = vmatpush1.bf16.msra.mxu0 %v9365_v7  ;;  %6689 = vmatprep.subr.bf16.mxu1 %v9370_v8  ;;  %v9449_v7 = vld [vmem:[#allocation5 + $0x1380] ss:$8 sps:$4 sm:$0xff]   ;;  %v9454_v8 = vld [vmem:[#allocation5 + $0x394] ss:$8 sps:$4 sm:$0xff]  }
  0xf5   :  { %7345 = vmatprep.subr.bf16.mxu0 %v9373_v9  ;;  %v9457_v9 = vld [vmem:[#allocation5 + $0x1394] ss:$8 sps:$4 sm:$0xff]  }
  0xf7   :  { %6690 = vmatpush1.bf16.msra.mxu1 %v9368_v10  ;;  %v9452_v10 = vld [vmem:[#allocation5 + $0x390] ss:$8 sps:$4 sm:$0xff]  }
  0xf8   :  { %7346 = vmatpush1.bf16.msra.mxu0 %v9371_v11  ;;  %6691 = vmatprep.subr.bf16.mxu1 %v9376_v12  ;;  %v9455_v11 = vld [vmem:[#allocation5 + $0x1390] ss:$8 sps:$4 sm:$0xff]   ;;  %v9460_v12 = vld [vmem:[#allocation5 + $0x3a4] ss:$8 sps:$4 sm:$0xff]  }
  0xf9   :  { %7347 = vmatprep.subr.bf16.mxu0 %v9379_v13  ;;  %v9463_v13 = vld [vmem:[#allocation5 + $0x13a4] ss:$8 sps:$4 sm:$0xff]  }
  0xfb   :  { %6692 = vmatpush1.bf16.msra.mxu1 %v9374_v14  ;;  %v9458_v14 = vld [vmem:[#allocation5 + $0x3a0] ss:$8 sps:$4 sm:$0xff]  }
  0xfc   :  { %7348 = vmatpush1.bf16.msra.mxu0 %v9377_v15  ;;  %6693 = vmatprep.subr.bf16.mxu1 %v9382_v18  ;;  %v9461_v15 = vld [vmem:[#allocation5 + $0x13a0] ss:$8 sps:$4 sm:$0xff]   ;;  %v9466_v18 = vld [vmem:[#allocation5 + $0x3b4] ss:$8 sps:$4 sm:$0xff]  }
  0xfd   :  { %7349 = vmatprep.subr.bf16.mxu0 %v9385_v19  ;;  %v9469_v19 = vld [vmem:[#allocation5 + $0x13b4] ss:$8 sps:$4 sm:$0xff]  }
  0xff   :  { %6694 = vmatpush1.bf16.msra.mxu1 %v9380_v20  ;;  %v9464_v20 = vld [vmem:[#allocation5 + $0x3b0] ss:$8 sps:$4 sm:$0xff]  }
 0x100   :  { %7350 = vmatpush1.bf16.msra.mxu0 %v9383_v21  ;;  %6695 = vmatprep.subr.bf16.mxu1 %v9388_v22  ;;  %v9467_v21 = vld [vmem:[#allocation5 + $0x13b0] ss:$8 sps:$4 sm:$0xff]   ;;  %v9472_v22 = vld [vmem:[#allocation5 + $0x3c4] ss:$8 sps:$4 sm:$0xff]  }
 0x101   :  { %7351 = vmatprep.subr.bf16.mxu0 %v9391_v23  ;;  %v9475_v23 = vld [vmem:[#allocation5 + $0x13c4] ss:$8 sps:$4 sm:$0xff]  }
 0x103   :  { %6696 = vmatpush1.bf16.msra.mxu1 %v9386_v24  ;;  %v9470_v24 = vld [vmem:[#allocation5 + $0x3c0] ss:$8 sps:$4 sm:$0xff]  }
 0x104   :  { %7352 = vmatpush1.bf16.msra.mxu0 %v9389_v25  ;;  %6697 = vmatprep.subr.bf16.mxu1 %v9394_v26  ;;  %v9473_v25 = vld [vmem:[#allocation5 + $0x13c0] ss:$8 sps:$4 sm:$0xff]   ;;  %v9478_v26 = vld [vmem:[#allocation5 + $0x3d4] ss:$8 sps:$4 sm:$0xff]  }
 0x105   :  { %7353 = vmatprep.subr.bf16.mxu0 %v9397_v28  ;;  %v9481_v28 = vld [vmem:[#allocation5 + $0x13d4] ss:$8 sps:$4 sm:$0xff]  }
 0x107   :  { %6698 = vmatpush1.bf16.msra.mxu1 %v9392_v33  ;;  %v9484_v33 = vld [vmem:[#allocation5 + $0x3e4] ss:$8 sps:$4 sm:$0xff]  }
 0x108   :  { %7354 = vmatpush1.bf16.msra.mxu0 %v9395_v35  ;;  %6708 = vmatprep.subr.bf16.mxu1 %v9400_v36  ;;  %v9487_v35 = vld [vmem:[#allocation5 + $0x13e4] ss:$8 sps:$4 sm:$0xff]   ;;  %v9482_v36 = vld [vmem:[#allocation5 + $0x3e0] ss:$8 sps:$4 sm:$0xff]  }
 0x109   :  { %7364 = vmatprep.subr.bf16.mxu0 %v9403_v16  ;;  %v9485_v16 = vld [vmem:[#allocation5 + $0x13e0] ss:$8 sps:$4 sm:$0xff]  }
 0x10a   :  { %6700 = vmatmul.mubr.bf16.vlgmr.msra.gmra.mrb[0].mxu1 %v10880_v29  ;;  %v9421_v29 = vld [vmem:[#allocation5 + $0x1334] ss:$8 sps:$4 sm:$0xff]  }
 0x10b   :  { %7356 = vmatmul.mubr.bf16.vlgmr.msra.gmra.mrb[0].mxu0 %v10890_v34  ;;  %6709 = vmatpush1.bf16.msra.mxu1 %v9398_v38  ;;  %v9419_v34 = vld [vmem:[#allocation5 + $0x1330] ss:$8 sps:$4 sm:$0xff]   ;;  %v9490_v38 = vld [vmem:[#allocation5 + $0x3f4] ss:$8 sps:$4 sm:$0xff]  }
 0x10c   :  { %7365 = vmatpush1.bf16.msra.mxu0 %v9401_v39  ;;  %6710 = vmatprep.subr.bf16.mxu1 %v9406_v27  ;;  %v9493_v39 = vld [vmem:[#allocation5 + $0x13f4] ss:$8 sps:$4 sm:$0xff]  }
 0x10d   :  { %7366 = vmatprep.subr.bf16.mxu0 %v9409_v30  ;;  %6740 = vmatprep.mubr.bf16.mxu1 %v1162_v40  ;;  %v10910_v27 = vld [vmem:[#allocation2 + $0x10] sm:$0xff] }
 0x10e   :  { %7396 = vmatprep.mubr.bf16.mxu0 %v1298_v41  ;;  %v10912_v30 = vld [vmem:[#allocation2 + $0x50] sm:$0xff] }
 0x10f   :  { %6711 = vmatpush1.bf16.msra.mxu1 %v9404_v42  ;;  %v9488_v40 = vld [vmem:[#allocation5 + $0x3f0] ss:$8 sps:$4 sm:$0xff]   ;;  %v9497_v42 = vld [vmem:[#allocation5 + $0x404] ss:$8 sps:$4 sm:$0xff]  }
 0x110   :  { %7367 = vmatpush1.bf16.msra.mxu0 %v9407_v44  ;;  %6712 = vmatprep.subr.bf16.mxu1 %v9412_v45  ;;  %v9491_v41 = vld [vmem:[#allocation5 + $0x13f0] ss:$8 sps:$4 sm:$0xff]   ;;  %v9501_v44 = vld [vmem:[#allocation5 + $0x1404] ss:$8 sps:$4 sm:$0xff]   ;;  %v10916_v45 = vrot.slane %v10910_v27, %v10862_v49 }
 0x111   :  { %7368 = vmatprep.subr.bf16.mxu0 %v9415_v46  ;;  %v10920_v46 = vrot.slane %v10912_v30, %v10862_v49 }
 0x113   :  { %6713 = vmatpush1.bf16.msra.mxu1 %v9410_v47  ;;  %v9495_v47 = vld [vmem:[#allocation5 + $0x400] ss:$8 sps:$4 sm:$0xff]  }
 0x114   :  { %7369 = vmatpush1.bf16.msra.mxu0 %v9413_v48  ;;  %6714 = vmatprep.subr.bf16.mxu1 %v9418_v50  ;;  %v9499_v48 = vld [vmem:[#allocation5 + $0x1400] ss:$8 sps:$4 sm:$0xff]   ;;  %v9504_v50 = vld [vmem:[#allocation5 + $0x414] ss:$8 sps:$4 sm:$0xff]  }
 0x115   :  { %7370 = vmatprep.subr.bf16.mxu0 %v9421_v29  ;;  %v9507_v29 = vld [vmem:[#allocation5 + $0x1414] ss:$8 sps:$4 sm:$0xff]  }
 0x117   :  { %6715 = vmatpush1.bf16.msra.mxu1 %v9416_v51  ;;  %v1178_v51 = vcombine.high %v10916_v45, %v10916_v45 }
 0x118   :  { %7371 = vmatpush1.bf16.msra.mxu0 %v9419_v34  ;;  %6716 = vmatprep.subr.bf16.mxu1 %v9424_v52  ;;  %v1314_v34 = vcombine.high %v10920_v46, %v10920_v46  ;;  %v9502_v52 = vld [vmem:[#allocation5 + $0x410] ss:$8 sps:$4 sm:$0xff]  }
 0x119   :  { %7372 = vmatprep.subr.bf16.mxu0 %v9427_v53  ;;  %v9505_v53 = vld [vmem:[#allocation5 + $0x1410] ss:$8 sps:$4 sm:$0xff]  }
 0x11b   :  { %6717 = vmatpush1.bf16.msra.mxu1 %v9422_v54  ;;  %v9510_v54 = vld [vmem:[#allocation5 + $0x424] ss:$8 sps:$4 sm:$0xff]  }
 0x11c   :  { %7373 = vmatpush1.bf16.msra.mxu0 %v9425_v55  ;;  %6718 = vmatprep.subr.bf16.mxu1 %v9430_v56  ;;  %v9513_v55 = vld [vmem:[#allocation5 + $0x1424] ss:$8 sps:$4 sm:$0xff]   ;;  %v9508_v56 = vld [vmem:[#allocation5 + $0x420] ss:$8 sps:$4 sm:$0xff]  }
 0x11d   :  { %7374 = vmatprep.subr.bf16.mxu0 %v9433_v57  ;;  %v9511_v57 = vld [vmem:[#allocation5 + $0x1420] ss:$8 sps:$4 sm:$0xff]  }
 0x11f   :  { %6719 = vmatpush1.bf16.msra.mxu1 %v9428_v58  ;;  %v9516_v58 = vld [vmem:[#allocation5 + $0x434] ss:$8 sps:$4 sm:$0xff]  }
 0x120   :  { %7375 = vmatpush1.bf16.msra.mxu0 %v9431_v59  ;;  %6720 = vmatprep.subr.bf16.mxu1 %v9436_v60  ;;  %v9517_v59 = vld [vmem:[#allocation5 + $0x1430] ss:$8 sps:$4 sm:$0xff]   ;;  %v9522_v60 = vld [vmem:[#allocation5 + $0x444] ss:$8 sps:$4 sm:$0xff]  }
 0x121   :  { %7376 = vmatprep.subr.bf16.mxu0 %v9439_v61  ;;  %v9525_v61 = vld [vmem:[#allocation5 + $0x1444] ss:$8 sps:$4 sm:$0xff]  }
 0x123   :  { %6721 = vmatpush1.bf16.msra.mxu1 %v9434_v62  ;;  %v9520_v62 = vld [vmem:[#allocation5 + $0x440] ss:$8 sps:$4 sm:$0xff]  }
 0x124   :  { %7377 = vmatpush1.bf16.msra.mxu0 %v9437_v63  ;;  %6722 = vmatprep.subr.bf16.mxu1 %v9442_v0  ;;  %v9523_v63 = vld [vmem:[#allocation5 + $0x1440] ss:$8 sps:$4 sm:$0xff]   ;;  %v9528_v0 = vld [vmem:[#allocation5 + $0x454] ss:$8 sps:$4 sm:$0xff]  }
 0x125   :  { %7378 = vmatprep.subr.bf16.mxu0 %v9445_v1  ;;  %v9531_v1 = vld [vmem:[#allocation5 + $0x1454] ss:$8 sps:$4 sm:$0xff]  }
 0x127   :  { %6723 = vmatpush1.bf16.msra.mxu1 %v9440_v2  ;;  %v9526_v2 = vld [vmem:[#allocation5 + $0x450] ss:$8 sps:$4 sm:$0xff]  }
 0x128   :  { %7379 = vmatpush1.bf16.msra.mxu0 %v9443_v3  ;;  %6724 = vmatprep.subr.bf16.mxu1 %v9448_v4  ;;  %v9529_v3 = vld [vmem:[#allocation5 + $0x1450] ss:$8 sps:$4 sm:$0xff]   ;;  %v9534_v4 = vld [vmem:[#allocation5 + $0x464] ss:$8 sps:$4 sm:$0xff]  }
 0x129   :  { %7380 = vmatprep.subr.bf16.mxu0 %v9451_v5  ;;  %v9537_v5 = vld [vmem:[#allocation5 + $0x1464] ss:$8 sps:$4 sm:$0xff]  }
 0x12b   :  { %6725 = vmatpush1.bf16.msra.mxu1 %v9446_v6  ;;  %v9532_v6 = vld [vmem:[#allocation5 + $0x460] ss:$8 sps:$4 sm:$0xff]  }
 0x12c   :  { %7381 = vmatpush1.bf16.msra.mxu0 %v9449_v7  ;;  %6726 = vmatprep.subr.bf16.mxu1 %v9454_v8  ;;  %v9535_v7 = vld [vmem:[#allocation5 + $0x1460] ss:$8 sps:$4 sm:$0xff]   ;;  %v9540_v8 = vld [vmem:[#allocation5 + $0x474] ss:$8 sps:$4 sm:$0xff]  }
 0x12d   :  { %7382 = vmatprep.subr.bf16.mxu0 %v9457_v9  ;;  %v9543_v9 = vld [vmem:[#allocation5 + $0x1474] ss:$8 sps:$4 sm:$0xff]  }
 0x12f   :  { %6727 = vmatpush1.bf16.msra.mxu1 %v9452_v10  ;;  %v9538_v10 = vld [vmem:[#allocation5 + $0x470] ss:$8 sps:$4 sm:$0xff]  }
 0x130   :  { %7383 = vmatpush1.bf16.msra.mxu0 %v9455_v11  ;;  %6728 = vmatprep.subr.bf16.mxu1 %v9460_v12  ;;  %v9541_v11 = vld [vmem:[#allocation5 + $0x1470] ss:$8 sps:$4 sm:$0xff]   ;;  %v9546_v12 = vld [vmem:[#allocation5 + $0x484] ss:$8 sps:$4 sm:$0xff]  }
 0x131   :  { %7384 = vmatprep.subr.bf16.mxu0 %v9463_v13  ;;  %v9549_v13 = vld [vmem:[#allocation5 + $0x1484] ss:$8 sps:$4 sm:$0xff]  }
 0x133   :  { %6729 = vmatpush1.bf16.msra.mxu1 %v9458_v14  ;;  %v9544_v14 = vld [vmem:[#allocation5 + $0x480] ss:$8 sps:$4 sm:$0xff]  }
 0x134   :  { %7385 = vmatpush1.bf16.msra.mxu0 %v9461_v15  ;;  %6730 = vmatprep.subr.bf16.mxu1 %v9466_v18  ;;  %v9547_v15 = vld [vmem:[#allocation5 + $0x1480] ss:$8 sps:$4 sm:$0xff]   ;;  %v9552_v18 = vld [vmem:[#allocation5 + $0x494] ss:$8 sps:$4 sm:$0xff]  }
 0x135   :  { %7386 = vmatprep.subr.bf16.mxu0 %v9469_v19  ;;  %v9555_v19 = vld [vmem:[#allocation5 + $0x1494] ss:$8 sps:$4 sm:$0xff]  }
 0x137   :  { %6731 = vmatpush1.bf16.msra.mxu1 %v9464_v20  ;;  %v9550_v20 = vld [vmem:[#allocation5 + $0x490] ss:$8 sps:$4 sm:$0xff]  }
 0x138   :  { %7387 = vmatpush1.bf16.msra.mxu0 %v9467_v21  ;;  %6732 = vmatprep.subr.bf16.mxu1 %v9472_v22  ;;  %v9553_v21 = vld [vmem:[#allocation5 + $0x1490] ss:$8 sps:$4 sm:$0xff]   ;;  %v9558_v22 = vld [vmem:[#allocation5 + $0x4a4] ss:$8 sps:$4 sm:$0xff]  }
 0x139   :  { %7388 = vmatprep.subr.bf16.mxu0 %v9475_v23  ;;  %v9561_v23 = vld [vmem:[#allocation5 + $0x14a4] ss:$8 sps:$4 sm:$0xff]  }
 0x13b   :  { %6733 = vmatpush1.bf16.msra.mxu1 %v9470_v24  ;;  %v9556_v24 = vld [vmem:[#allocation5 + $0x4a0] ss:$8 sps:$4 sm:$0xff]  }
 0x13c   :  { %7389 = vmatpush1.bf16.msra.mxu0 %v9473_v25  ;;  %6734 = vmatprep.subr.bf16.mxu1 %v9478_v26  ;;  %v9559_v25 = vld [vmem:[#allocation5 + $0x14a0] ss:$8 sps:$4 sm:$0xff]   ;;  %v9564_v26 = vld [vmem:[#allocation5 + $0x4b4] ss:$8 sps:$4 sm:$0xff]  }
 0x13d   :  { %7390 = vmatprep.subr.bf16.mxu0 %v9481_v28  ;;  %v9567_v28 = vld [vmem:[#allocation5 + $0x14b4] ss:$8 sps:$4 sm:$0xff]  }
 0x13f   :  { %6735 = vmatpush1.bf16.msra.mxu1 %v9476_v31  ;;  %v9562_v31 = vld [vmem:[#allocation5 + $0x4b0] ss:$8 sps:$4 sm:$0xff]  }
 0x140   :  { %7391 = vmatpush1.bf16.msra.mxu0 %v9479_v32  ;;  %6736 = vmatprep.subr.bf16.mxu1 %v9484_v33  ;;  %v9565_v32 = vld [vmem:[#allocation5 + $0x14b0] ss:$8 sps:$4 sm:$0xff]   ;;  %v9570_v33 = vld [vmem:[#allocation5 + $0x4c4] ss:$8 sps:$4 sm:$0xff]  }
 0x141   :  { %7392 = vmatprep.subr.bf16.mxu0 %v9487_v35  ;;  %v9573_v35 = vld [vmem:[#allocation5 + $0x14c4] ss:$8 sps:$4 sm:$0xff]  }
 0x143   :  { %6737 = vmatpush1.bf16.msra.mxu1 %v9482_v36  ;;  %v9568_v36 = vld [vmem:[#allocation5 + $0x4c0] ss:$8 sps:$4 sm:$0xff]  }
 0x144   :  { %7393 = vmatpush1.bf16.msra.mxu0 %v9485_v16  ;;  %6738 = vmatprep.subr.bf16.mxu1 %v9490_v38  ;;  %v9571_v16 = vld [vmem:[#allocation5 + $0x14c0] ss:$8 sps:$4 sm:$0xff]   ;;  %v9576_v38 = vld [vmem:[#allocation5 + $0x4d4] ss:$8 sps:$4 sm:$0xff]  }
 0x145   :  { %7394 = vmatprep.subr.bf16.mxu0 %v9493_v39  ;;  %v9579_v39 = vld [vmem:[#allocation5 + $0x14d4] ss:$8 sps:$4 sm:$0xff]  }
 0x147   :  { %6739 = vmatpush1.bf16.msra.mxu1 %v9488_v40  ;;  %v9574_v40 = vld [vmem:[#allocation5 + $0x4d0] ss:$8 sps:$4 sm:$0xff]  }
 0x148   :  { %7395 = vmatpush1.bf16.msra.mxu0 %v9491_v41  ;;  %6749 = vmatprep.subr.bf16.mxu1 %v9497_v42  ;;  %v9577_v41 = vld [vmem:[#allocation5 + $0x14d0] ss:$8 sps:$4 sm:$0xff]   ;;  %v9582_v42 = vld [vmem:[#allocation5 + $0x4e4] ss:$8 sps:$4 sm:$0xff]  }
 0x149   :  { %7405 = vmatprep.subr.bf16.mxu0 %v9501_v44  ;;  %v9585_v44 = vld [vmem:[#allocation5 + $0x14e4] ss:$8 sps:$4 sm:$0xff]  }
 0x14a   :  { %6741 = vmatmul.mubr.bf16.vlgmr.msra.gmra.mrb[0].mxu1 %v10899_v17  ;;  %v9519_v17 = vld [vmem:[#allocation5 + $0x1434] ss:$8 sps:$4 sm:$0xff]  }
 0x14b   :  { %7397 = vmatmul.mubr.bf16.vlgmr.msra.gmra.mrb[0].mxu0 %v10902_v37  ;;  %6750 = vmatpush1.bf16.msra.mxu1 %v9495_v47  ;;  %v9514_v37 = vld [vmem:[#allocation5 + $0x430] ss:$8 sps:$4 sm:$0xff]   ;;  %v9580_v47 = vld [vmem:[#allocation5 + $0x4e0] ss:$8 sps:$4 sm:$0xff]  }
 0x14c   :  { %7406 = vmatpush1.bf16.msra.mxu0 %v9499_v48  ;;  %6751 = vmatprep.subr.bf16.mxu1 %v9504_v50  ;;  %v9583_v48 = vld [vmem:[#allocation5 + $0x14e0] ss:$8 sps:$4 sm:$0xff]   ;;  %v9588_v50 = vld [vmem:[#allocation5 + $0x4f4] ss:$8 sps:$4 sm:$0xff]  }
 0x14d   :  { %7407 = vmatprep.subr.bf16.mxu0 %v9507_v29  ;;  %6781 = vmatprep.mubr.bf16.mxu1 %v1178_v51  ;;  %v9591_v29 = vld [vmem:[#allocation5 + $0x14f4] ss:$8 sps:$4 sm:$0xff]   ;;  %v1163_v51 = vcombine.high %v10910_v27, %v10910_v27  ;;  %v9592_v27 = vld [vmem:[#allocation5 + $0x500] ss:$8 sps:$4 sm:$0xff]  }
 0x14e   :  { %7437 = vmatprep.mubr.bf16.mxu0 %v1314_v34  ;;  %v1299_v34 = vcombine.high %v10912_v30, %v10912_v30  ;;  %v9600_v30 = vld [vmem:[#allocation5 + $0x514] ss:$8 sps:$4 sm:$0xff]  }
 0x14f   :  { %6752 = vmatpush1.bf16.msra.mxu1 %v9502_v52  ;;  %v9586_v52 = vld [vmem:[#allocation5 + $0x4f0] ss:$8 sps:$4 sm:$0xff]  }
 0x150   :  { %7408 = vmatpush1.bf16.msra.mxu0 %v9505_v53  ;;  %6753 = vmatprep.subr.bf16.mxu1 %v9510_v54  ;;  %v9589_v53 = vld [vmem:[#allocation5 + $0x14f0] ss:$8 sps:$4 sm:$0xff]   ;;  %v9594_v54 = vld [vmem:[#allocation5 + $0x504] ss:$8 sps:$4 sm:$0xff]  }
 0x151   :  { %7409 = vmatprep.subr.bf16.mxu0 %v9513_v55  ;;  %v9597_v55 = vld [vmem:[#allocation5 + $0x1504] ss:$8 sps:$4 sm:$0xff]  }
 0x153   :  { %6754 = vmatpush1.bf16.msra.mxu1 %v9508_v56  ;;  %v10933_v56 = vrot.slane %v1163_v51, %v10862_v49  ;;  %v9670_v51 = vld [vmem:[#allocation5 + $0x5d0] ss:$8 sps:$4 sm:$0xff]  }
 0x154   :  { %7410 = vmatpush1.bf16.msra.mxu0 %v9511_v57  ;;  %6755 = vmatprep.subr.bf16.mxu1 %v9516_v58  ;;  %v10936_v57 = vrot.slane %v1299_v34, %v10862_v49  ;;  %v9595_v58 = vld [vmem:[#allocation5 + $0x1500] ss:$8 sps:$4 sm:$0xff]   ;;  %v9673_v34 = vld [vmem:[#allocation5 + $0x15d0] ss:$8 sps:$4 sm:$0xff]  }
 0x155   :  { %7411 = vmatprep.subr.bf16.mxu0 %v9519_v17  ;;  %v9603_v17 = vld [vmem:[#allocation5 + $0x1514] ss:$8 sps:$4 sm:$0xff]  }
 0x157   :  { %6756 = vmatpush1.bf16.msra.mxu1 %v9514_v37  ;;  %v1179_v37 = vcombine.high %v10933_v56, %v10933_v56 }
 0x158   :  { %7412 = vmatpush1.bf16.msra.mxu0 %v9517_v59  ;;  %6757 = vmatprep.subr.bf16.mxu1 %v9522_v60  ;;  %v1315_v59 = vcombine.high %v10936_v57, %v10936_v57  ;;  %v9598_v60 = vld [vmem:[#allocation5 + $0x510] ss:$8 sps:$4 sm:$0xff]  }
 0x159   :  { %7413 = vmatprep.subr.bf16.mxu0 %v9525_v61  ;;  %v9601_v61 = vld [vmem:[#allocation5 + $0x1510] ss:$8 sps:$4 sm:$0xff]  }
 0x15b   :  { %6758 = vmatpush1.bf16.msra.mxu1 %v9520_v62  ;;  %v9606_v62 = vld [vmem:[#allocation5 + $0x524] ss:$8 sps:$4 sm:$0xff]  }
 0x15c   :  { %7414 = vmatpush1.bf16.msra.mxu0 %v9523_v63  ;;  %6759 = vmatprep.subr.bf16.mxu1 %v9528_v0  ;;  %v9609_v63 = vld [vmem:[#allocation5 + $0x1524] ss:$8 sps:$4 sm:$0xff]   ;;  %v9604_v0 = vld [vmem:[#allocation5 + $0x520] ss:$8 sps:$4 sm:$0xff]  }
 0x15d   :  { %7415 = vmatprep.subr.bf16.mxu0 %v9531_v1  ;;  %v9607_v1 = vld [vmem:[#allocation5 + $0x1520] ss:$8 sps:$4 sm:$0xff]  }
 0x15f   :  { %6760 = vmatpush1.bf16.msra.mxu1 %v9526_v2  ;;  %v9612_v2 = vld [vmem:[#allocation5 + $0x534] ss:$8 sps:$4 sm:$0xff]  }
 0x160   :  { %7416 = vmatpush1.bf16.msra.mxu0 %v9529_v3  ;;  %6761 = vmatprep.subr.bf16.mxu1 %v9534_v4  ;;  %v9613_v3 = vld [vmem:[#allocation5 + $0x1530] ss:$8 sps:$4 sm:$0xff]   ;;  %v9618_v4 = vld [vmem:[#allocation5 + $0x544] ss:$8 sps:$4 sm:$0xff]  }
 0x161   :  { %7417 = vmatprep.subr.bf16.mxu0 %v9537_v5  ;;  %v9621_v5 = vld [vmem:[#allocation5 + $0x1544] ss:$8 sps:$4 sm:$0xff]  }
 0x163   :  { %6762 = vmatpush1.bf16.msra.mxu1 %v9532_v6  ;;  %v9616_v6 = vld [vmem:[#allocation5 + $0x540] ss:$8 sps:$4 sm:$0xff]  }
 0x164   :  { %7418 = vmatpush1.bf16.msra.mxu0 %v9535_v7  ;;  %6763 = vmatprep.subr.bf16.mxu1 %v9540_v8  ;;  %v9619_v7 = vld [vmem:[#allocation5 + $0x1540] ss:$8 sps:$4 sm:$0xff]   ;;  %v9624_v8 = vld [vmem:[#allocation5 + $0x554] ss:$8 sps:$4 sm:$0xff]  }
 0x165   :  { %7419 = vmatprep.subr.bf16.mxu0 %v9543_v9  ;;  %v9627_v9 = vld [vmem:[#allocation5 + $0x1554] ss:$8 sps:$4 sm:$0xff]  }
 0x167   :  { %6764 = vmatpush1.bf16.msra.mxu1 %v9538_v10  ;;  %v9622_v10 = vld [vmem:[#allocation5 + $0x550] ss:$8 sps:$4 sm:$0xff]  }
 0x168   :  { %7420 = vmatpush1.bf16.msra.mxu0 %v9541_v11  ;;  %6765 = vmatprep.subr.bf16.mxu1 %v9546_v12  ;;  %v9625_v11 = vld [vmem:[#allocation5 + $0x1550] ss:$8 sps:$4 sm:$0xff]   ;;  %v9630_v12 = vld [vmem:[#allocation5 + $0x564] ss:$8 sps:$4 sm:$0xff]  }
 0x169   :  { %7421 = vmatprep.subr.bf16.mxu0 %v9549_v13  ;;  %v9633_v13 = vld [vmem:[#allocation5 + $0x1564] ss:$8 sps:$4 sm:$0xff]  }
 0x16b   :  { %6766 = vmatpush1.bf16.msra.mxu1 %v9544_v14  ;;  %v9628_v14 = vld [vmem:[#allocation5 + $0x560] ss:$8 sps:$4 sm:$0xff]  }
 0x16c   :  { %7422 = vmatpush1.bf16.msra.mxu0 %v9547_v15  ;;  %6767 = vmatprep.subr.bf16.mxu1 %v9552_v18  ;;  %v9631_v15 = vld [vmem:[#allocation5 + $0x1560] ss:$8 sps:$4 sm:$0xff]   ;;  %v9636_v18 = vld [vmem:[#allocation5 + $0x574] ss:$8 sps:$4 sm:$0xff]  }
 0x16d   :  { %7423 = vmatprep.subr.bf16.mxu0 %v9555_v19  ;;  %v9639_v19 = vld [vmem:[#allocation5 + $0x1574] ss:$8 sps:$4 sm:$0xff]  }
 0x16f   :  { %6768 = vmatpush1.bf16.msra.mxu1 %v9550_v20  ;;  %v9634_v20 = vld [vmem:[#allocation5 + $0x570] ss:$8 sps:$4 sm:$0xff]  }
 0x170   :  { %7424 = vmatpush1.bf16.msra.mxu0 %v9553_v21  ;;  %6769 = vmatprep.subr.bf16.mxu1 %v9558_v22  ;;  %v9637_v21 = vld [vmem:[#allocation5 + $0x1570] ss:$8 sps:$4 sm:$0xff]   ;;  %v9642_v22 = vld [vmem:[#allocation5 + $0x584] ss:$8 sps:$4 sm:$0xff]  }
 0x171   :  { %7425 = vmatprep.subr.bf16.mxu0 %v9561_v23  ;;  %v9645_v23 = vld [vmem:[#allocation5 + $0x1584] ss:$8 sps:$4 sm:$0xff]  }
 0x173   :  { %6770 = vmatpush1.bf16.msra.mxu1 %v9556_v24  ;;  %v9640_v24 = vld [vmem:[#allocation5 + $0x580] ss:$8 sps:$4 sm:$0xff]  }
 0x174   :  { %7426 = vmatpush1.bf16.msra.mxu0 %v9559_v25  ;;  %6771 = vmatprep.subr.bf16.mxu1 %v9564_v26  ;;  %v9643_v25 = vld [vmem:[#allocation5 + $0x1580] ss:$8 sps:$4 sm:$0xff]   ;;  %v9648_v26 = vld [vmem:[#allocation5 + $0x594] ss:$8 sps:$4 sm:$0xff]  }
 0x175   :  { %7427 = vmatprep.subr.bf16.mxu0 %v9567_v28  ;;  %v9651_v28 = vld [vmem:[#allocation5 + $0x1594] ss:$8 sps:$4 sm:$0xff]  }
 0x177   :  { %6772 = vmatpush1.bf16.msra.mxu1 %v9562_v31  ;;  %v9646_v31 = vld [vmem:[#allocation5 + $0x590] ss:$8 sps:$4 sm:$0xff]  }
 0x178   :  { %7428 = vmatpush1.bf16.msra.mxu0 %v9565_v32  ;;  %6773 = vmatprep.subr.bf16.mxu1 %v9570_v33  ;;  %v9649_v32 = vld [vmem:[#allocation5 + $0x1590] ss:$8 sps:$4 sm:$0xff]   ;;  %v9654_v33 = vld [vmem:[#allocation5 + $0x5a4] ss:$8 sps:$4 sm:$0xff]  }
 0x179   :  { %7429 = vmatprep.subr.bf16.mxu0 %v9573_v35  ;;  %v9657_v35 = vld [vmem:[#allocation5 + $0x15a4] ss:$8 sps:$4 sm:$0xff]  }
 0x17b   :  { %6774 = vmatpush1.bf16.msra.mxu1 %v9568_v36  ;;  %v9652_v36 = vld [vmem:[#allocation5 + $0x5a0] ss:$8 sps:$4 sm:$0xff]  }
 0x17c   :  { %7430 = vmatpush1.bf16.msra.mxu0 %v9571_v16  ;;  %6775 = vmatprep.subr.bf16.mxu1 %v9576_v38  ;;  %v9655_v16 = vld [vmem:[#allocation5 + $0x15a0] ss:$8 sps:$4 sm:$0xff]   ;;  %v9660_v38 = vld [vmem:[#allocation5 + $0x5b4] ss:$8 sps:$4 sm:$0xff]  }
 0x17d   :  { %7431 = vmatprep.subr.bf16.mxu0 %v9579_v39  ;;  %v9663_v39 = vld [vmem:[#allocation5 + $0x15b4] ss:$8 sps:$4 sm:$0xff]  }
 0x17f   :  { %6776 = vmatpush1.bf16.msra.mxu1 %v9574_v40  ;;  %v9658_v40 = vld [vmem:[#allocation5 + $0x5b0] ss:$8 sps:$4 sm:$0xff]  }
 0x180   :  { %7432 = vmatpush1.bf16.msra.mxu0 %v9577_v41  ;;  %6777 = vmatprep.subr.bf16.mxu1 %v9582_v42  ;;  %v9661_v41 = vld [vmem:[#allocation5 + $0x15b0] ss:$8 sps:$4 sm:$0xff]   ;;  %v9666_v42 = vld [vmem:[#allocation5 + $0x5c4] ss:$8 sps:$4 sm:$0xff]  }
 0x181   :  { %7433 = vmatprep.subr.bf16.mxu0 %v9585_v44  ;;  %v9669_v44 = vld [vmem:[#allocation5 + $0x15c4] ss:$8 sps:$4 sm:$0xff]  }
 0x183   :  { %6778 = vmatpush1.bf16.msra.mxu1 %v9580_v47  ;;  %v9664_v47 = vld [vmem:[#allocation5 + $0x5c0] ss:$8 sps:$4 sm:$0xff]  }
 0x184   :  { %7434 = vmatpush1.bf16.msra.mxu0 %v9583_v48  ;;  %6779 = vmatprep.subr.bf16.mxu1 %v9588_v50  ;;  %v9667_v48 = vld [vmem:[#allocation5 + $0x15c0] ss:$8 sps:$4 sm:$0xff]   ;;  %v9672_v50 = vld [vmem:[#allocation5 + $0x5d4] ss:$8 sps:$4 sm:$0xff]  }
 0x185   :  { %7435 = vmatprep.subr.bf16.mxu0 %v9591_v29  ;;  %v9675_v29 = vld [vmem:[#allocation5 + $0x15d4] ss:$8 sps:$4 sm:$0xff]  }
 0x187   :  { %6780 = vmatpush1.bf16.msra.mxu1 %v9586_v52  ;;  %v9678_v52 = vld [vmem:[#allocation5 + $0x5e4] ss:$8 sps:$4 sm:$0xff]  }
 0x188   :  { %7436 = vmatpush1.bf16.msra.mxu0 %v9589_v53  ;;  %6790 = vmatprep.subr.bf16.mxu1 %v9594_v54  ;;  %v9681_v53 = vld [vmem:[#allocation5 + $0x15e4] ss:$8 sps:$4 sm:$0xff]   ;;  %v9676_v54 = vld [vmem:[#allocation5 + $0x5e0] ss:$8 sps:$4 sm:$0xff]  }
 0x189   :  { %7446 = vmatprep.subr.bf16.mxu0 %v9597_v55  ;;  %v9679_v55 = vld [vmem:[#allocation5 + $0x15e0] ss:$8 sps:$4 sm:$0xff]  }
 0x18a   :  { %6782 = vmatmul.mubr.bf16.vlgmr.msra.gmra.mrb[0].mxu1 %v10916_v45  ;;  %v9615_v45 = vld [vmem:[#allocation5 + $0x1534] ss:$8 sps:$4 sm:$0xff]  }
 0x18b   :  { %7438 = vmatmul.mubr.bf16.vlgmr.msra.gmra.mrb[0].mxu0 %v10920_v46  ;;  %6791 = vmatpush1.bf16.msra.mxu1 %v9592_v27  ;;  %v9610_v46 = vld [vmem:[#allocation5 + $0x530] ss:$8 sps:$4 sm:$0xff]   ;;  %v9684_v27 = vld [vmem:[#allocation5 + $0x5f4] ss:$8 sps:$4 sm:$0xff]  }
 0x18c   :  { %7447 = vmatpush1.bf16.msra.mxu0 %v9595_v58  ;;  %6792 = vmatprep.subr.bf16.mxu1 %v9600_v30  ;;  %v9687_v58 = vld [vmem:[#allocation5 + $0x15f4] ss:$8 sps:$4 sm:$0xff]  }
 0x18d   :  { %7448 = vmatprep.subr.bf16.mxu0 %v9603_v17  ;;  %6822 = vmatprep.mubr.bf16.mxu1 %v1179_v37  ;;  %v10944_v30 = vld [vmem:[#allocation2 + $0x18] sm:$0xff] }
 0x18e   :  { %7478 = vmatprep.mubr.bf16.mxu0 %v1315_v59  ;;  %v10946_v17 = vld [vmem:[#allocation2 + $0x58] sm:$0xff] }
 0x18f   :  { %6793 = vmatpush1.bf16.msra.mxu1 %v9598_v60  ;;  %v9682_v37 = vld [vmem:[#allocation5 + $0x5f0] ss:$8 sps:$4 sm:$0xff]   ;;  %v9691_v60 = vld [vmem:[#allocation5 + $0x604] ss:$8 sps:$4 sm:$0xff]  }
 0x190   :  { %7449 = vmatpush1.bf16.msra.mxu0 %v9601_v61  ;;  %6794 = vmatprep.subr.bf16.mxu1 %v9606_v62  ;;  %v9685_v59 = vld [vmem:[#allocation5 + $0x15f0] ss:$8 sps:$4 sm:$0xff]   ;;  %v9695_v61 = vld [vmem:[#allocation5 + $0x1604] ss:$8 sps:$4 sm:$0xff]   ;;  %v10950_v62 = vrot.slane %v10944_v30, %v10862_v49 }
 0x191   :  { %7450 = vmatprep.subr.bf16.mxu0 %v9609_v63  ;;  %v10954_v63 = vrot.slane %v10946_v17, %v10862_v49 }
 0x193   :  { %6795 = vmatpush1.bf16.msra.mxu1 %v9604_v0  ;;  %v9689_v0 = vld [vmem:[#allocation5 + $0x600] ss:$8 sps:$4 sm:$0xff]  }
 0x194   :  { %7451 = vmatpush1.bf16.msra.mxu0 %v9607_v1  ;;  %6796 = vmatprep.subr.bf16.mxu1 %v9612_v2  ;;  %v9693_v1 = vld [vmem:[#allocation5 + $0x1600] ss:$8 sps:$4 sm:$0xff]   ;;  %v9698_v2 = vld [vmem:[#allocation5 + $0x614] ss:$8 sps:$4 sm:$0xff]  }
 0x195   :  { %7452 = vmatprep.subr.bf16.mxu0 %v9615_v45  ;;  %v9701_v45 = vld [vmem:[#allocation5 + $0x1614] ss:$8 sps:$4 sm:$0xff]  }
 0x197   :  { %6797 = vmatpush1.bf16.msra.mxu1 %v9610_v46  ;;  %v1195_v46 = vcombine.high %v10950_v62, %v10950_v62 }
 0x198   :  { %7453 = vmatpush1.bf16.msra.mxu0 %v9613_v3  ;;  %6798 = vmatprep.subr.bf16.mxu1 %v9618_v4  ;;  %v1331_v3 = vcombine.high %v10954_v63, %v10954_v63  ;;  %v9696_v4 = vld [vmem:[#allocation5 + $0x610] ss:$8 sps:$4 sm:$0xff]  }
 0x199   :  { %7454 = vmatprep.subr.bf16.mxu0 %v9621_v5  ;;  %v9699_v5 = vld [vmem:[#allocation5 + $0x1610] ss:$8 sps:$4 sm:$0xff]  }
 0x19b   :  { %6799 = vmatpush1.bf16.msra.mxu1 %v9616_v6  ;;  %v9704_v6 = vld [vmem:[#allocation5 + $0x624] ss:$8 sps:$4 sm:$0xff]  }
 0x19c   :  { %7455 = vmatpush1.bf16.msra.mxu0 %v9619_v7  ;;  %6800 = vmatprep.subr.bf16.mxu1 %v9624_v8  ;;  %v9707_v7 = vld [vmem:[#allocation5 + $0x1624] ss:$8 sps:$4 sm:$0xff]   ;;  %v9702_v8 = vld [vmem:[#allocation5 + $0x620] ss:$8 sps:$4 sm:$0xff]  }
 0x19d   :  { %7456 = vmatprep.subr.bf16.mxu0 %v9627_v9  ;;  %v9705_v9 = vld [vmem:[#allocation5 + $0x1620] ss:$8 sps:$4 sm:$0xff]  }
 0x19f   :  { %6801 = vmatpush1.bf16.msra.mxu1 %v9622_v10  ;;  %v9710_v10 = vld [vmem:[#allocation5 + $0x634] ss:$8 sps:$4 sm:$0xff]  }
 0x1a0   :  { %7457 = vmatpush1.bf16.msra.mxu0 %v9625_v11  ;;  %6802 = vmatprep.subr.bf16.mxu1 %v9630_v12  ;;  %v9711_v11 = vld [vmem:[#allocation5 + $0x1630] ss:$8 sps:$4 sm:$0xff]   ;;  %v9716_v12 = vld [vmem:[#allocation5 + $0x644] ss:$8 sps:$4 sm:$0xff]  }
 0x1a1   :  { %7458 = vmatprep.subr.bf16.mxu0 %v9633_v13  ;;  %v9719_v13 = vld [vmem:[#allocation5 + $0x1644] ss:$8 sps:$4 sm:$0xff]  }
 0x1a3   :  { %6803 = vmatpush1.bf16.msra.mxu1 %v9628_v14  ;;  %v9714_v14 = vld [vmem:[#allocation5 + $0x640] ss:$8 sps:$4 sm:$0xff]  }
 0x1a4   :  { %7459 = vmatpush1.bf16.msra.mxu0 %v9631_v15  ;;  %6804 = vmatprep.subr.bf16.mxu1 %v9636_v18  ;;  %v9717_v15 = vld [vmem:[#allocation5 + $0x1640] ss:$8 sps:$4 sm:$0xff]   ;;  %v9722_v18 = vld [vmem:[#allocation5 + $0x654] ss:$8 sps:$4 sm:$0xff]  }
 0x1a5   :  { %7460 = vmatprep.subr.bf16.mxu0 %v9639_v19  ;;  %v9725_v19 = vld [vmem:[#allocation5 + $0x1654] ss:$8 sps:$4 sm:$0xff]  }
 0x1a7   :  { %6805 = vmatpush1.bf16.msra.mxu1 %v9634_v20  ;;  %v9720_v20 = vld [vmem:[#allocation5 + $0x650] ss:$8 sps:$4 sm:$0xff]  }
 0x1a8   :  { %7461 = vmatpush1.bf16.msra.mxu0 %v9637_v21  ;;  %6806 = vmatprep.subr.bf16.mxu1 %v9642_v22  ;;  %v9723_v21 = vld [vmem:[#allocation5 + $0x1650] ss:$8 sps:$4 sm:$0xff]   ;;  %v9728_v22 = vld [vmem:[#allocation5 + $0x664] ss:$8 sps:$4 sm:$0xff]  }
 0x1a9   :  { %7462 = vmatprep.subr.bf16.mxu0 %v9645_v23  ;;  %v9731_v23 = vld [vmem:[#allocation5 + $0x1664] ss:$8 sps:$4 sm:$0xff]  }
 0x1ab   :  { %6807 = vmatpush1.bf16.msra.mxu1 %v9640_v24  ;;  %v9726_v24 = vld [vmem:[#allocation5 + $0x660] ss:$8 sps:$4 sm:$0xff]  }
 0x1ac   :  { %7463 = vmatpush1.bf16.msra.mxu0 %v9643_v25  ;;  %6808 = vmatprep.subr.bf16.mxu1 %v9648_v26  ;;  %v9729_v25 = vld [vmem:[#allocation5 + $0x1660] ss:$8 sps:$4 sm:$0xff]   ;;  %v9734_v26 = vld [vmem:[#allocation5 + $0x674] ss:$8 sps:$4 sm:$0xff]  }
 0x1ad   :  { %7464 = vmatprep.subr.bf16.mxu0 %v9651_v28  ;;  %v9737_v28 = vld [vmem:[#allocation5 + $0x1674] ss:$8 sps:$4 sm:$0xff]  }
 0x1af   :  { %6809 = vmatpush1.bf16.msra.mxu1 %v9646_v31  ;;  %v9732_v31 = vld [vmem:[#allocation5 + $0x670] ss:$8 sps:$4 sm:$0xff]  }
 0x1b0   :  { %7465 = vmatpush1.bf16.msra.mxu0 %v9649_v32  ;;  %6810 = vmatprep.subr.bf16.mxu1 %v9654_v33  ;;  %v9735_v32 = vld [vmem:[#allocation5 + $0x1670] ss:$8 sps:$4 sm:$0xff]   ;;  %v9740_v33 = vld [vmem:[#allocation5 + $0x684] ss:$8 sps:$4 sm:$0xff]  }
 0x1b1   :  { %7466 = vmatprep.subr.bf16.mxu0 %v9657_v35  ;;  %v9743_v35 = vld [vmem:[#allocation5 + $0x1684] ss:$8 sps:$4 sm:$0xff]  }
 0x1b3   :  { %6811 = vmatpush1.bf16.msra.mxu1 %v9652_v36  ;;  %v9738_v36 = vld [vmem:[#allocation5 + $0x680] ss:$8 sps:$4 sm:$0xff]  }
 0x1b4   :  { %7467 = vmatpush1.bf16.msra.mxu0 %v9655_v16  ;;  %6812 = vmatprep.subr.bf16.mxu1 %v9660_v38  ;;  %v9741_v16 = vld [vmem:[#allocation5 + $0x1680] ss:$8 sps:$4 sm:$0xff]   ;;  %v9746_v38 = vld [vmem:[#allocation5 + $0x694] ss:$8 sps:$4 sm:$0xff]  }
 0x1b5   :  { %7468 = vmatprep.subr.bf16.mxu0 %v9663_v39  ;;  %v9749_v39 = vld [vmem:[#allocation5 + $0x1694] ss:$8 sps:$4 sm:$0xff]  }
 0x1b7   :  { %6813 = vmatpush1.bf16.msra.mxu1 %v9658_v40  ;;  %v9744_v40 = vld [vmem:[#allocation5 + $0x690] ss:$8 sps:$4 sm:$0xff]  }
 0x1b8   :  { %7469 = vmatpush1.bf16.msra.mxu0 %v9661_v41  ;;  %6814 = vmatprep.subr.bf16.mxu1 %v9666_v42  ;;  %v9747_v41 = vld [vmem:[#allocation5 + $0x1690] ss:$8 sps:$4 sm:$0xff]   ;;  %v9752_v42 = vld [vmem:[#allocation5 + $0x6a4] ss:$8 sps:$4 sm:$0xff]  }
 0x1b9   :  { %7470 = vmatprep.subr.bf16.mxu0 %v9669_v44  ;;  %v9755_v44 = vld [vmem:[#allocation5 + $0x16a4] ss:$8 sps:$4 sm:$0xff]  }
 0x1bb   :  { %6815 = vmatpush1.bf16.msra.mxu1 %v9664_v47  ;;  %v9750_v47 = vld [vmem:[#allocation5 + $0x6a0] ss:$8 sps:$4 sm:$0xff]  }
 0x1bc   :  { %7471 = vmatpush1.bf16.msra.mxu0 %v9667_v48  ;;  %6816 = vmatprep.subr.bf16.mxu1 %v9672_v50  ;;  %v9753_v48 = vld [vmem:[#allocation5 + $0x16a0] ss:$8 sps:$4 sm:$0xff]   ;;  %v9758_v50 = vld [vmem:[#allocation5 + $0x6b4] ss:$8 sps:$4 sm:$0xff]  }
 0x1bd   :  { %7472 = vmatprep.subr.bf16.mxu0 %v9675_v29  ;;  %v9761_v29 = vld [vmem:[#allocation5 + $0x16b4] ss:$8 sps:$4 sm:$0xff]  }
 0x1bf   :  { %6817 = vmatpush1.bf16.msra.mxu1 %v9670_v51  ;;  %v9756_v51 = vld [vmem:[#allocation5 + $0x6b0] ss:$8 sps:$4 sm:$0xff]  }
 0x1c0   :  { %7473 = vmatpush1.bf16.msra.mxu0 %v9673_v34  ;;  %6818 = vmatprep.subr.bf16.mxu1 %v9678_v52  ;;  %v9759_v34 = vld [vmem:[#allocation5 + $0x16b0] ss:$8 sps:$4 sm:$0xff]   ;;  %v9764_v52 = vld [vmem:[#allocation5 + $0x6c4] ss:$8 sps:$4 sm:$0xff]  }
 0x1c1   :  { %7474 = vmatprep.subr.bf16.mxu0 %v9681_v53  ;;  %v9767_v53 = vld [vmem:[#allocation5 + $0x16c4] ss:$8 sps:$4 sm:$0xff]  }
 0x1c3   :  { %6819 = vmatpush1.bf16.msra.mxu1 %v9676_v54  ;;  %v9762_v54 = vld [vmem:[#allocation5 + $0x6c0] ss:$8 sps:$4 sm:$0xff]  }
 0x1c4   :  { %7475 = vmatpush1.bf16.msra.mxu0 %v9679_v55  ;;  %6820 = vmatprep.subr.bf16.mxu1 %v9684_v27  ;;  %v9765_v55 = vld [vmem:[#allocation5 + $0x16c0] ss:$8 sps:$4 sm:$0xff]   ;;  %v9770_v27 = vld [vmem:[#allocation5 + $0x6d4] ss:$8 sps:$4 sm:$0xff]  }
 0x1c5   :  { %7476 = vmatprep.subr.bf16.mxu0 %v9687_v58  ;;  %v9773_v58 = vld [vmem:[#allocation5 + $0x16d4] ss:$8 sps:$4 sm:$0xff]  }
 0x1c7   :  { %6821 = vmatpush1.bf16.msra.mxu1 %v9682_v37  ;;  %v9768_v37 = vld [vmem:[#allocation5 + $0x6d0] ss:$8 sps:$4 sm:$0xff]  }
 0x1c8   :  { %7477 = vmatpush1.bf16.msra.mxu0 %v9685_v59  ;;  %6831 = vmatprep.subr.bf16.mxu1 %v9691_v60  ;;  %v9771_v59 = vld [vmem:[#allocation5 + $0x16d0] ss:$8 sps:$4 sm:$0xff]   ;;  %v9776_v60 = vld [vmem:[#allocation5 + $0x6e4] ss:$8 sps:$4 sm:$0xff]  }
 0x1c9   :  { %7487 = vmatprep.subr.bf16.mxu0 %v9695_v61  ;;  %v9779_v61 = vld [vmem:[#allocation5 + $0x16e4] ss:$8 sps:$4 sm:$0xff]  }
 0x1ca   :  { %6823 = vmatmul.mubr.bf16.vlgmr.msra.gmra.mrb[0].mxu1 %v10933_v56  ;;  %v9713_v56 = vld [vmem:[#allocation5 + $0x1634] ss:$8 sps:$4 sm:$0xff]  }
 0x1cb   :  { %7479 = vmatmul.mubr.bf16.vlgmr.msra.gmra.mrb[0].mxu0 %v10936_v57  ;;  %6832 = vmatpush1.bf16.msra.mxu1 %v9689_v0  ;;  %v9708_v57 = vld [vmem:[#allocation5 + $0x630] ss:$8 sps:$4 sm:$0xff]   ;;  %v9774_v0 = vld [vmem:[#allocation5 + $0x6e0] ss:$8 sps:$4 sm:$0xff]  }
 0x1cc   :  { %7488 = vmatpush1.bf16.msra.mxu0 %v9693_v1  ;;  %6833 = vmatprep.subr.bf16.mxu1 %v9698_v2  ;;  %v9777_v1 = vld [vmem:[#allocation5 + $0x16e0] ss:$8 sps:$4 sm:$0xff]   ;;  %v9782_v2 = vld [vmem:[#allocation5 + $0x6f4] ss:$8 sps:$4 sm:$0xff]  }
 0x1cd   :  { %7489 = vmatprep.subr.bf16.mxu0 %v9701_v45  ;;  %6863 = vmatprep.mubr.bf16.mxu1 %v1195_v46  ;;  %v9785_v45 = vld [vmem:[#allocation5 + $0x16f4] ss:$8 sps:$4 sm:$0xff]   ;;  %v1180_v46 = vcombine.high %v10944_v30, %v10944_v30  ;;  %v9786_v30 = vld [vmem:[#allocation5 + $0x700] ss:$8 sps:$4 sm:$0xff]  }
 0x1ce   :  { %7519 = vmatprep.mubr.bf16.mxu0 %v1331_v3  ;;  %v1316_v3 = vcombine.high %v10946_v17, %v10946_v17  ;;  %v9794_v17 = vld [vmem:[#allocation5 + $0x714] ss:$8 sps:$4 sm:$0xff]  }
 0x1cf   :  { %6834 = vmatpush1.bf16.msra.mxu1 %v9696_v4  ;;  %v9780_v4 = vld [vmem:[#allocation5 + $0x6f0] ss:$8 sps:$4 sm:$0xff]  }
 0x1d0   :  { %7490 = vmatpush1.bf16.msra.mxu0 %v9699_v5  ;;  %6835 = vmatprep.subr.bf16.mxu1 %v9704_v6  ;;  %v9783_v5 = vld [vmem:[#allocation5 + $0x16f0] ss:$8 sps:$4 sm:$0xff]   ;;  %v9788_v6 = vld [vmem:[#allocation5 + $0x704] ss:$8 sps:$4 sm:$0xff]  }
 0x1d1   :  { %7491 = vmatprep.subr.bf16.mxu0 %v9707_v7  ;;  %v9791_v7 = vld [vmem:[#allocation5 + $0x1704] ss:$8 sps:$4 sm:$0xff]  }
 0x1d3   :  { %6836 = vmatpush1.bf16.msra.mxu1 %v9702_v8  ;;  %v10967_v8 = vrot.slane %v1180_v46, %v10862_v49  ;;  %v9864_v46 = vld [vmem:[#allocation5 + $0x7d0] ss:$8 sps:$4 sm:$0xff]  }
 0x1d4   :  { %7492 = vmatpush1.bf16.msra.mxu0 %v9705_v9  ;;  %6837 = vmatprep.subr.bf16.mxu1 %v9710_v10  ;;  %v10970_v9 = vrot.slane %v1316_v3, %v10862_v49  ;;  %v9789_v10 = vld [vmem:[#allocation5 + $0x1700] ss:$8 sps:$4 sm:$0xff]   ;;  %v9867_v3 = vld [vmem:[#allocation5 + $0x17d0] ss:$8 sps:$4 sm:$0xff]  }
 0x1d5   :  { %7493 = vmatprep.subr.bf16.mxu0 %v9713_v56  ;;  %v9797_v56 = vld [vmem:[#allocation5 + $0x1714] ss:$8 sps:$4 sm:$0xff]  }
 0x1d7   :  { %6838 = vmatpush1.bf16.msra.mxu1 %v9708_v57  ;;  %v1196_v57 = vcombine.high %v10967_v8, %v10967_v8 }
 0x1d8   :  { %7494 = vmatpush1.bf16.msra.mxu0 %v9711_v11  ;;  %6839 = vmatprep.subr.bf16.mxu1 %v9716_v12  ;;  %v1332_v11 = vcombine.high %v10970_v9, %v10970_v9  ;;  %v9792_v12 = vld [vmem:[#allocation5 + $0x710] ss:$8 sps:$4 sm:$0xff]  }
 0x1d9   :  { %7495 = vmatprep.subr.bf16.mxu0 %v9719_v13  ;;  %v9795_v13 = vld [vmem:[#allocation5 + $0x1710] ss:$8 sps:$4 sm:$0xff]  }
 0x1db   :  { %6840 = vmatpush1.bf16.msra.mxu1 %v9714_v14  ;;  %v9800_v14 = vld [vmem:[#allocation5 + $0x724] ss:$8 sps:$4 sm:$0xff]  }
 0x1dc   :  { %7496 = vmatpush1.bf16.msra.mxu0 %v9717_v15  ;;  %6841 = vmatprep.subr.bf16.mxu1 %v9722_v18  ;;  %v9803_v15 = vld [vmem:[#allocation5 + $0x1724] ss:$8 sps:$4 sm:$0xff]   ;;  %v9798_v18 = vld [vmem:[#allocation5 + $0x720] ss:$8 sps:$4 sm:$0xff]  }
 0x1dd   :  { %7497 = vmatprep.subr.bf16.mxu0 %v9725_v19  ;;  %v9801_v19 = vld [vmem:[#allocation5 + $0x1720] ss:$8 sps:$4 sm:$0xff]  }
 0x1df   :  { %6842 = vmatpush1.bf16.msra.mxu1 %v9720_v20  ;;  %v9806_v20 = vld [vmem:[#allocation5 + $0x734] ss:$8 sps:$4 sm:$0xff]  }
 0x1e0   :  { %7498 = vmatpush1.bf16.msra.mxu0 %v9723_v21  ;;  %6843 = vmatprep.subr.bf16.mxu1 %v9728_v22  ;;  %v9807_v21 = vld [vmem:[#allocation5 + $0x1730] ss:$8 sps:$4 sm:$0xff]   ;;  %v9812_v22 = vld [vmem:[#allocation5 + $0x744] ss:$8 sps:$4 sm:$0xff]  }
 0x1e1   :  { %7499 = vmatprep.subr.bf16.mxu0 %v9731_v23  ;;  %v9815_v23 = vld [vmem:[#allocation5 + $0x1744] ss:$8 sps:$4 sm:$0xff]  }
 0x1e3   :  { %6844 = vmatpush1.bf16.msra.mxu1 %v9726_v24  ;;  %v9810_v24 = vld [vmem:[#allocation5 + $0x740] ss:$8 sps:$4 sm:$0xff]  }
 0x1e4   :  { %7500 = vmatpush1.bf16.msra.mxu0 %v9729_v25  ;;  %6845 = vmatprep.subr.bf16.mxu1 %v9734_v26  ;;  %v9813_v25 = vld [vmem:[#allocation5 + $0x1740] ss:$8 sps:$4 sm:$0xff]   ;;  %v9818_v26 = vld [vmem:[#allocation5 + $0x754] ss:$8 sps:$4 sm:$0xff]  }
 0x1e5   :  { %7501 = vmatprep.subr.bf16.mxu0 %v9737_v28  ;;  %v9821_v28 = vld [vmem:[#allocation5 + $0x1754] ss:$8 sps:$4 sm:$0xff]  }
 0x1e7   :  { %6846 = vmatpush1.bf16.msra.mxu1 %v9732_v31  ;;  %v9816_v31 = vld [vmem:[#allocation5 + $0x750] ss:$8 sps:$4 sm:$0xff]  }
 0x1e8   :  { %7502 = vmatpush1.bf16.msra.mxu0 %v9735_v32  ;;  %6847 = vmatprep.subr.bf16.mxu1 %v9740_v33  ;;  %v9819_v32 = vld [vmem:[#allocation5 + $0x1750] ss:$8 sps:$4 sm:$0xff]   ;;  %v9824_v33 = vld [vmem:[#allocation5 + $0x764] ss:$8 sps:$4 sm:$0xff]  }
 0x1e9   :  { %7503 = vmatprep.subr.bf16.mxu0 %v9743_v35  ;;  %v9827_v35 = vld [vmem:[#allocation5 + $0x1764] ss:$8 sps:$4 sm:$0xff]  }
 0x1eb   :  { %6848 = vmatpush1.bf16.msra.mxu1 %v9738_v36  ;;  %v9822_v36 = vld [vmem:[#allocation5 + $0x760] ss:$8 sps:$4 sm:$0xff]  }
 0x1ec   :  { %7504 = vmatpush1.bf16.msra.mxu0 %v9741_v16  ;;  %6849 = vmatprep.subr.bf16.mxu1 %v9746_v38  ;;  %v9825_v16 = vld [vmem:[#allocation5 + $0x1760] ss:$8 sps:$4 sm:$0xff]   ;;  %v9830_v38 = vld [vmem:[#allocation5 + $0x774] ss:$8 sps:$4 sm:$0xff]  }
 0x1ed   :  { %7505 = vmatprep.subr.bf16.mxu0 %v9749_v39  ;;  %v9833_v39 = vld [vmem:[#allocation5 + $0x1774] ss:$8 sps:$4 sm:$0xff]  }
 0x1ef   :  { %6850 = vmatpush1.bf16.msra.mxu1 %v9744_v40  ;;  %v9828_v40 = vld [vmem:[#allocation5 + $0x770] ss:$8 sps:$4 sm:$0xff]  }
 0x1f0   :  { %7506 = vmatpush1.bf16.msra.mxu0 %v9747_v41  ;;  %6851 = vmatprep.subr.bf16.mxu1 %v9752_v42  ;;  %v9831_v41 = vld [vmem:[#allocation5 + $0x1770] ss:$8 sps:$4 sm:$0xff]   ;;  %v9836_v42 = vld [vmem:[#allocation5 + $0x784] ss:$8 sps:$4 sm:$0xff]  }
 0x1f1   :  { %7507 = vmatprep.subr.bf16.mxu0 %v9755_v44  ;;  %v9839_v44 = vld [vmem:[#allocation5 + $0x1784] ss:$8 sps:$4 sm:$0xff]  }
 0x1f3   :  { %6852 = vmatpush1.bf16.msra.mxu1 %v9750_v47  ;;  %v9834_v47 = vld [vmem:[#allocation5 + $0x780] ss:$8 sps:$4 sm:$0xff]  }
 0x1f4   :  { %7508 = vmatpush1.bf16.msra.mxu0 %v9753_v48  ;;  %6853 = vmatprep.subr.bf16.mxu1 %v9758_v50  ;;  %v9837_v48 = vld [vmem:[#allocation5 + $0x1780] ss:$8 sps:$4 sm:$0xff]   ;;  %v9842_v50 = vld [vmem:[#allocation5 + $0x794] ss:$8 sps:$4 sm:$0xff]  }
 0x1f5   :  { %7509 = vmatprep.subr.bf16.mxu0 %v9761_v29  ;;  %v9845_v29 = vld [vmem:[#allocation5 + $0x1794] ss:$8 sps:$4 sm:$0xff]  }
 0x1f7   :  { %6854 = vmatpush1.bf16.msra.mxu1 %v9756_v51  ;;  %v9840_v51 = vld [vmem:[#allocation5 + $0x790] ss:$8 sps:$4 sm:$0xff]  }
 0x1f8   :  { %7510 = vmatpush1.bf16.msra.mxu0 %v9759_v34  ;;  %6855 = vmatprep.subr.bf16.mxu1 %v9764_v52  ;;  %v9843_v34 = vld [vmem:[#allocation5 + $0x1790] ss:$8 sps:$4 sm:$0xff]   ;;  %v9848_v52 = vld [vmem:[#allocation5 + $0x7a4] ss:$8 sps:$4 sm:$0xff]  }
 0x1f9   :  { %7511 = vmatprep.subr.bf16.mxu0 %v9767_v53  ;;  %v9851_v53 = vld [vmem:[#allocation5 + $0x17a4] ss:$8 sps:$4 sm:$0xff]  }
 0x1fb   :  { %6856 = vmatpush1.bf16.msra.mxu1 %v9762_v54  ;;  %v9846_v54 = vld [vmem:[#allocation5 + $0x7a0] ss:$8 sps:$4 sm:$0xff]  }
 0x1fc   :  { %7512 = vmatpush1.bf16.msra.mxu0 %v9765_v55  ;;  %6857 = vmatprep.subr.bf16.mxu1 %v9770_v27  ;;  %v9849_v55 = vld [vmem:[#allocation5 + $0x17a0] ss:$8 sps:$4 sm:$0xff]   ;;  %v9854_v27 = vld [vmem:[#allocation5 + $0x7b4] ss:$8 sps:$4 sm:$0xff]  }
 0x1fd   :  { %7513 = vmatprep.subr.bf16.mxu0 %v9773_v58  ;;  %v9857_v58 = vld [vmem:[#allocation5 + $0x17b4] ss:$8 sps:$4 sm:$0xff]  }
 0x1ff   :  { %6858 = vmatpush1.bf16.msra.mxu1 %v9768_v37  ;;  %v9852_v37 = vld [vmem:[#allocation5 + $0x7b0] ss:$8 sps:$4 sm:$0xff]  }
 0x200   :  { %7514 = vmatpush1.bf16.msra.mxu0 %v9771_v59  ;;  %6859 = vmatprep.subr.bf16.mxu1 %v9776_v60  ;;  %v9855_v59 = vld [vmem:[#allocation5 + $0x17b0] ss:$8 sps:$4 sm:$0xff]   ;;  %v9860_v60 = vld [vmem:[#allocation5 + $0x7c4] ss:$8 sps:$4 sm:$0xff]  }
 0x201   :  { %7515 = vmatprep.subr.bf16.mxu0 %v9779_v61  ;;  %v9863_v61 = vld [vmem:[#allocation5 + $0x17c4] ss:$8 sps:$4 sm:$0xff]  }
 0x203   :  { %6860 = vmatpush1.bf16.msra.mxu1 %v9774_v0  ;;  %v9858_v0 = vld [vmem:[#allocation5 + $0x7c0] ss:$8 sps:$4 sm:$0xff]  }
 0x204   :  { %7516 = vmatpush1.bf16.msra.mxu0 %v9777_v1  ;;  %6861 = vmatprep.subr.bf16.mxu1 %v9782_v2  ;;  %v9861_v1 = vld [vmem:[#allocation5 + $0x17c0] ss:$8 sps:$4 sm:$0xff]   ;;  %v9866_v2 = vld [vmem:[#allocation5 + $0x7d4] ss:$8 sps:$4 sm:$0xff]  }
 0x205   :  { %7517 = vmatprep.subr.bf16.mxu0 %v9785_v45  ;;  %v9869_v45 = vld [vmem:[#allocation5 + $0x17d4] ss:$8 sps:$4 sm:$0xff]  }
 0x207   :  { %6862 = vmatpush1.bf16.msra.mxu1 %v9780_v4  ;;  %v9872_v4 = vld [vmem:[#allocation5 + $0x7e4] ss:$8 sps:$4 sm:$0xff]  }
 0x208   :  { %7518 = vmatpush1.bf16.msra.mxu0 %v9783_v5  ;;  %6872 = vmatprep.subr.bf16.mxu1 %v9788_v6  ;;  %v9875_v5 = vld [vmem:[#allocation5 + $0x17e4] ss:$8 sps:$4 sm:$0xff]   ;;  %v9870_v6 = vld [vmem:[#allocation5 + $0x7e0] ss:$8 sps:$4 sm:$0xff]  }
 0x209   :  { %7528 = vmatprep.subr.bf16.mxu0 %v9791_v7  ;;  %v9873_v7 = vld [vmem:[#allocation5 + $0x17e0] ss:$8 sps:$4 sm:$0xff]  }
 0x20a   :  { %6864 = vmatmul.mubr.bf16.vlgmr.msra.gmra.mrb[0].mxu1 %v10950_v62  ;;  %v9809_v62 = vld [vmem:[#allocation5 + $0x1734] ss:$8 sps:$4 sm:$0xff]  }
 0x20b   :  { %7520 = vmatmul.mubr.bf16.vlgmr.msra.gmra.mrb[0].mxu0 %v10954_v63  ;;  %6873 = vmatpush1.bf16.msra.mxu1 %v9786_v30  ;;  %v9804_v63 = vld [vmem:[#allocation5 + $0x730] ss:$8 sps:$4 sm:$0xff]   ;;  %v9878_v30 = vld [vmem:[#allocation5 + $0x7f4] ss:$8 sps:$4 sm:$0xff]  }
 0x20c   :  { %7529 = vmatpush1.bf16.msra.mxu0 %v9789_v10  ;;  %6874 = vmatprep.subr.bf16.mxu1 %v9794_v17  ;;  %v9881_v10 = vld [vmem:[#allocation5 + $0x17f4] ss:$8 sps:$4 sm:$0xff]   ;;  %v10978_v17 = vld [vmem:[#allocation2 + $0x20] sm:$0xff] }
 0x20d   :  { %7530 = vmatprep.subr.bf16.mxu0 %v9797_v56  ;;  %6904 = vmatprep.mubr.bf16.mxu1 %v1196_v57  ;;  %v10980_v56 = vld [vmem:[#allocation2 + $0x60] sm:$0xff]  ;;  %v9876_v57 = vld [vmem:[#allocation5 + $0x7f0] ss:$8 sps:$4 sm:$0xff]  }
 0x20e   :  { %7560 = vmatprep.mubr.bf16.mxu0 %v1332_v11  ;;  %v9879_v11 = vld [vmem:[#allocation5 + $0x17f0] ss:$8 sps:$4 sm:$0xff]  }
 0x20f   :  { %6875 = vmatpush1.bf16.msra.mxu1 %v9792_v12  ;;  %v9885_v12 = vld [vmem:[#allocation5 + $0x804] ss:$8 sps:$4 sm:$0xff]  }
 0x210   :  { %7531 = vmatpush1.bf16.msra.mxu0 %v9795_v13  ;;  %6876 = vmatprep.subr.bf16.mxu1 %v9800_v14  ;;  %v9889_v13 = vld [vmem:[#allocation5 + $0x1804] ss:$8 sps:$4 sm:$0xff]   ;;  %v10984_v14 = vrot.slane %v10978_v17, %v10862_v49 }
 0x211   :  { %7532 = vmatprep.subr.bf16.mxu0 %v9803_v15  ;;  %v10988_v15 = vrot.slane %v10980_v56, %v10862_v49 }
 0x213   :  { %6877 = vmatpush1.bf16.msra.mxu1 %v9798_v18  ;;  %v9883_v18 = vld [vmem:[#allocation5 + $0x800] ss:$8 sps:$4 sm:$0xff]  }
 0x214   :  { %7533 = vmatpush1.bf16.msra.mxu0 %v9801_v19  ;;  %6878 = vmatprep.subr.bf16.mxu1 %v9806_v20  ;;  %v9887_v19 = vld [vmem:[#allocation5 + $0x1800] ss:$8 sps:$4 sm:$0xff]   ;;  %v9892_v20 = vld [vmem:[#allocation5 + $0x814] ss:$8 sps:$4 sm:$0xff]  }
 0x215   :  { %7534 = vmatprep.subr.bf16.mxu0 %v9809_v62  ;;  %v9895_v62 = vld [vmem:[#allocation5 + $0x1814] ss:$8 sps:$4 sm:$0xff]  }
 0x217   :  { %6879 = vmatpush1.bf16.msra.mxu1 %v9804_v63  ;;  %v1212_v63 = vcombine.high %v10984_v14, %v10984_v14 }
 0x218   :  { %7535 = vmatpush1.bf16.msra.mxu0 %v9807_v21  ;;  %6880 = vmatprep.subr.bf16.mxu1 %v9812_v22  ;;  %v1348_v21 = vcombine.high %v10988_v15, %v10988_v15  ;;  %v9890_v22 = vld [vmem:[#allocation5 + $0x810] ss:$8 sps:$4 sm:$0xff]  }
 0x219   :  { %7536 = vmatprep.subr.bf16.mxu0 %v9815_v23  ;;  %v9893_v23 = vld [vmem:[#allocation5 + $0x1810] ss:$8 sps:$4 sm:$0xff]  }
 0x21b   :  { %6881 = vmatpush1.bf16.msra.mxu1 %v9810_v24  ;;  %v9898_v24 = vld [vmem:[#allocation5 + $0x824] ss:$8 sps:$4 sm:$0xff]  }
 0x21c   :  { %7537 = vmatpush1.bf16.msra.mxu0 %v9813_v25  ;;  %6882 = vmatprep.subr.bf16.mxu1 %v9818_v26  ;;  %v9901_v25 = vld [vmem:[#allocation5 + $0x1824] ss:$8 sps:$4 sm:$0xff]   ;;  %v9896_v26 = vld [vmem:[#allocation5 + $0x820] ss:$8 sps:$4 sm:$0xff]  }
 0x21d   :  { %7538 = vmatprep.subr.bf16.mxu0 %v9821_v28  ;;  %v9899_v28 = vld [vmem:[#allocation5 + $0x1820] ss:$8 sps:$4 sm:$0xff]  }
 0x21f   :  { %6883 = vmatpush1.bf16.msra.mxu1 %v9816_v31  ;;  %v9904_v31 = vld [vmem:[#allocation5 + $0x834] ss:$8 sps:$4 sm:$0xff]  }
 0x220   :  { %7539 = vmatpush1.bf16.msra.mxu0 %v9819_v32  ;;  %6884 = vmatprep.subr.bf16.mxu1 %v9824_v33  ;;  %v9905_v32 = vld [vmem:[#allocation5 + $0x1830] ss:$8 sps:$4 sm:$0xff]   ;;  %v9910_v33 = vld [vmem:[#allocation5 + $0x844] ss:$8 sps:$4 sm:$0xff]  }
 0x221   :  { %7540 = vmatprep.subr.bf16.mxu0 %v9827_v35  ;;  %v9913_v35 = vld [vmem:[#allocation5 + $0x1844] ss:$8 sps:$4 sm:$0xff]  }
 0x223   :  { %6885 = vmatpush1.bf16.msra.mxu1 %v9822_v36  ;;  %v9908_v36 = vld [vmem:[#allocation5 + $0x840] ss:$8 sps:$4 sm:$0xff]  }
 0x224   :  { %7541 = vmatpush1.bf16.msra.mxu0 %v9825_v16  ;;  %6886 = vmatprep.subr.bf16.mxu1 %v9830_v38  ;;  %v9911_v16 = vld [vmem:[#allocation5 + $0x1840] ss:$8 sps:$4 sm:$0xff]   ;;  %v9916_v38 = vld [vmem:[#allocation5 + $0x854] ss:$8 sps:$4 sm:$0xff]  }
 0x225   :  { %7542 = vmatprep.subr.bf16.mxu0 %v9833_v39  ;;  %v9919_v39 = vld [vmem:[#allocation5 + $0x1854] ss:$8 sps:$4 sm:$0xff]  }
 0x227   :  { %6887 = vmatpush1.bf16.msra.mxu1 %v9828_v40  ;;  %v9914_v40 = vld [vmem:[#allocation5 + $0x850] ss:$8 sps:$4 sm:$0xff]  }
 0x228   :  { %7543 = vmatpush1.bf16.msra.mxu0 %v9831_v41  ;;  %6888 = vmatprep.subr.bf16.mxu1 %v9836_v42  ;;  %v9917_v41 = vld [vmem:[#allocation5 + $0x1850] ss:$8 sps:$4 sm:$0xff]   ;;  %v9922_v42 = vld [vmem:[#allocation5 + $0x864] ss:$8 sps:$4 sm:$0xff]  }
 0x229   :  { %7544 = vmatprep.subr.bf16.mxu0 %v9839_v44  ;;  %v9925_v44 = vld [vmem:[#allocation5 + $0x1864] ss:$8 sps:$4 sm:$0xff]  }
 0x22b   :  { %6889 = vmatpush1.bf16.msra.mxu1 %v9834_v47  ;;  %v9920_v47 = vld [vmem:[#allocation5 + $0x860] ss:$8 sps:$4 sm:$0xff]  }
 0x22c   :  { %7545 = vmatpush1.bf16.msra.mxu0 %v9837_v48  ;;  %6890 = vmatprep.subr.bf16.mxu1 %v9842_v50  ;;  %v9923_v48 = vld [vmem:[#allocation5 + $0x1860] ss:$8 sps:$4 sm:$0xff]   ;;  %v9928_v50 = vld [vmem:[#allocation5 + $0x874] ss:$8 sps:$4 sm:$0xff]  }
 0x22d   :  { %7546 = vmatprep.subr.bf16.mxu0 %v9845_v29  ;;  %v9931_v29 = vld [vmem:[#allocation5 + $0x1874] ss:$8 sps:$4 sm:$0xff]  }
 0x22f   :  { %6891 = vmatpush1.bf16.msra.mxu1 %v9840_v51  ;;  %v9926_v51 = vld [vmem:[#allocation5 + $0x870] ss:$8 sps:$4 sm:$0xff]  }
 0x230   :  { %7547 = vmatpush1.bf16.msra.mxu0 %v9843_v34  ;;  %6892 = vmatprep.subr.bf16.mxu1 %v9848_v52  ;;  %v9929_v34 = vld [vmem:[#allocation5 + $0x1870] ss:$8 sps:$4 sm:$0xff]   ;;  %v9934_v52 = vld [vmem:[#allocation5 + $0x884] ss:$8 sps:$4 sm:$0xff]  }
 0x231   :  { %7548 = vmatprep.subr.bf16.mxu0 %v9851_v53  ;;  %v9937_v53 = vld [vmem:[#allocation5 + $0x1884] ss:$8 sps:$4 sm:$0xff]  }
 0x233   :  { %6893 = vmatpush1.bf16.msra.mxu1 %v9846_v54  ;;  %v9932_v54 = vld [vmem:[#allocation5 + $0x880] ss:$8 sps:$4 sm:$0xff]  }
 0x234   :  { %7549 = vmatpush1.bf16.msra.mxu0 %v9849_v55  ;;  %6894 = vmatprep.subr.bf16.mxu1 %v9854_v27  ;;  %v9935_v55 = vld [vmem:[#allocation5 + $0x1880] ss:$8 sps:$4 sm:$0xff]   ;;  %v9940_v27 = vld [vmem:[#allocation5 + $0x894] ss:$8 sps:$4 sm:$0xff]  }
 0x235   :  { %7550 = vmatprep.subr.bf16.mxu0 %v9857_v58  ;;  %v9943_v58 = vld [vmem:[#allocation5 + $0x1894] ss:$8 sps:$4 sm:$0xff]  }
 0x237   :  { %6895 = vmatpush1.bf16.msra.mxu1 %v9852_v37  ;;  %v9938_v37 = vld [vmem:[#allocation5 + $0x890] ss:$8 sps:$4 sm:$0xff]  }
 0x238   :  { %7551 = vmatpush1.bf16.msra.mxu0 %v9855_v59  ;;  %6896 = vmatprep.subr.bf16.mxu1 %v9860_v60  ;;  %v9941_v59 = vld [vmem:[#allocation5 + $0x1890] ss:$8 sps:$4 sm:$0xff]   ;;  %v9946_v60 = vld [vmem:[#allocation5 + $0x8a4] ss:$8 sps:$4 sm:$0xff]  }
 0x239   :  { %7552 = vmatprep.subr.bf16.mxu0 %v9863_v61  ;;  %v9949_v61 = vld [vmem:[#allocation5 + $0x18a4] ss:$8 sps:$4 sm:$0xff]  }
 0x23b   :  { %6897 = vmatpush1.bf16.msra.mxu1 %v9858_v0  ;;  %v9944_v0 = vld [vmem:[#allocation5 + $0x8a0] ss:$8 sps:$4 sm:$0xff]  }
 0x23c   :  { %7553 = vmatpush1.bf16.msra.mxu0 %v9861_v1  ;;  %6898 = vmatprep.subr.bf16.mxu1 %v9866_v2  ;;  %v9947_v1 = vld [vmem:[#allocation5 + $0x18a0] ss:$8 sps:$4 sm:$0xff]   ;;  %v9952_v2 = vld [vmem:[#allocation5 + $0x8b4] ss:$8 sps:$4 sm:$0xff]  }
 0x23d   :  { %7554 = vmatprep.subr.bf16.mxu0 %v9869_v45  ;;  %v9955_v45 = vld [vmem:[#allocation5 + $0x18b4] ss:$8 sps:$4 sm:$0xff]  }
 0x23f   :  { %6899 = vmatpush1.bf16.msra.mxu1 %v9864_v46  ;;  %v9950_v46 = vld [vmem:[#allocation5 + $0x8b0] ss:$8 sps:$4 sm:$0xff]  }
 0x240   :  { %7555 = vmatpush1.bf16.msra.mxu0 %v9867_v3  ;;  %6900 = vmatprep.subr.bf16.mxu1 %v9872_v4  ;;  %v9953_v3 = vld [vmem:[#allocation5 + $0x18b0] ss:$8 sps:$4 sm:$0xff]   ;;  %v9958_v4 = vld [vmem:[#allocation5 + $0x8c4] ss:$8 sps:$4 sm:$0xff]  }
 0x241   :  { %7556 = vmatprep.subr.bf16.mxu0 %v9875_v5  ;;  %v9961_v5 = vld [vmem:[#allocation5 + $0x18c4] ss:$8 sps:$4 sm:$0xff]  }
 0x243   :  { %6901 = vmatpush1.bf16.msra.mxu1 %v9870_v6  ;;  %v9956_v6 = vld [vmem:[#allocation5 + $0x8c0] ss:$8 sps:$4 sm:$0xff]  }
 0x244   :  { %7557 = vmatpush1.bf16.msra.mxu0 %v9873_v7  ;;  %6902 = vmatprep.subr.bf16.mxu1 %v9878_v30  ;;  %v9959_v7 = vld [vmem:[#allocation5 + $0x18c0] ss:$8 sps:$4 sm:$0xff]   ;;  %v9964_v30 = vld [vmem:[#allocation5 + $0x8d4] ss:$8 sps:$4 sm:$0xff]  }
 0x245   :  { %7558 = vmatprep.subr.bf16.mxu0 %v9881_v10  ;;  %v9967_v10 = vld [vmem:[#allocation5 + $0x18d4] ss:$8 sps:$4 sm:$0xff]  }
 0x247   :  { %6903 = vmatpush1.bf16.msra.mxu1 %v9876_v57  ;;  %v9962_v57 = vld [vmem:[#allocation5 + $0x8d0] ss:$8 sps:$4 sm:$0xff]  }
 0x248   :  { %7559 = vmatpush1.bf16.msra.mxu0 %v9879_v11  ;;  %6913 = vmatprep.subr.bf16.mxu1 %v9885_v12  ;;  %v9965_v11 = vld [vmem:[#allocation5 + $0x18d0] ss:$8 sps:$4 sm:$0xff]   ;;  %v9970_v12 = vld [vmem:[#allocation5 + $0x8e4] ss:$8 sps:$4 sm:$0xff]  }
 0x249   :  { %7569 = vmatprep.subr.bf16.mxu0 %v9889_v13  ;;  %v9973_v13 = vld [vmem:[#allocation5 + $0x18e4] ss:$8 sps:$4 sm:$0xff]  }
 0x24a   :  { %6905 = vmatmul.mubr.bf16.vlgmr.msra.gmra.mrb[0].mxu1 %v10967_v8  ;;  %v9907_v8 = vld [vmem:[#allocation5 + $0x1834] ss:$8 sps:$4 sm:$0xff]  }
 0x24b   :  { %7561 = vmatmul.mubr.bf16.vlgmr.msra.gmra.mrb[0].mxu0 %v10970_v9  ;;  %6914 = vmatpush1.bf16.msra.mxu1 %v9883_v18  ;;  %v9902_v9 = vld [vmem:[#allocation5 + $0x830] ss:$8 sps:$4 sm:$0xff]   ;;  %v9968_v18 = vld [vmem:[#allocation5 + $0x8e0] ss:$8 sps:$4 sm:$0xff]  }
 0x24c   :  { %7570 = vmatpush1.bf16.msra.mxu0 %v9887_v19  ;;  %6915 = vmatprep.subr.bf16.mxu1 %v9892_v20  ;;  %v9971_v19 = vld [vmem:[#allocation5 + $0x18e0] ss:$8 sps:$4 sm:$0xff]   ;;  %v9976_v20 = vld [vmem:[#allocation5 + $0x8f4] ss:$8 sps:$4 sm:$0xff]  }
 0x24d   :  { %7571 = vmatprep.subr.bf16.mxu0 %v9895_v62  ;;  %6945 = vmatprep.mubr.bf16.mxu1 %v1212_v63  ;;  %v9979_v62 = vld [vmem:[#allocation5 + $0x18f4] ss:$8 sps:$4 sm:$0xff]   ;;  %v1197_v63 = vcombine.high %v10978_v17, %v10978_v17  ;;  %v9980_v17 = vld [vmem:[#allocation5 + $0x900] ss:$8 sps:$4 sm:$0xff]  }
 0x24e   :  { %7601 = vmatprep.mubr.bf16.mxu0 %v1348_v21  ;;  %v1333_v21 = vcombine.high %v10980_v56, %v10980_v56  ;;  %v9988_v56 = vld [vmem:[#allocation5 + $0x914] ss:$8 sps:$4 sm:$0xff]  }
 0x24f   :  { %6916 = vmatpush1.bf16.msra.mxu1 %v9890_v22  ;;  %v9974_v22 = vld [vmem:[#allocation5 + $0x8f0] ss:$8 sps:$4 sm:$0xff]  }
 0x250   :  { %7572 = vmatpush1.bf16.msra.mxu0 %v9893_v23  ;;  %6917 = vmatprep.subr.bf16.mxu1 %v9898_v24  ;;  %v9977_v23 = vld [vmem:[#allocation5 + $0x18f0] ss:$8 sps:$4 sm:$0xff]   ;;  %v9982_v24 = vld [vmem:[#allocation5 + $0x904] ss:$8 sps:$4 sm:$0xff]  }
 0x251   :  { %7573 = vmatprep.subr.bf16.mxu0 %v9901_v25  ;;  %v9985_v25 = vld [vmem:[#allocation5 + $0x1904] ss:$8 sps:$4 sm:$0xff]  }
 0x253   :  { %6918 = vmatpush1.bf16.msra.mxu1 %v9896_v26  ;;  %v11001_v26 = vrot.slane %v1197_v63, %v10862_v49  ;;  %v10058_v63 = vld [vmem:[#allocation5 + $0x9d0] ss:$8 sps:$4 sm:$0xff]  }
 0x254   :  { %7574 = vmatpush1.bf16.msra.mxu0 %v9899_v28  ;;  %6919 = vmatprep.subr.bf16.mxu1 %v9904_v31  ;;  %v11004_v28 = vrot.slane %v1333_v21, %v10862_v49  ;;  %v9983_v31 = vld [vmem:[#allocation5 + $0x1900] ss:$8 sps:$4 sm:$0xff]   ;;  %v10061_v21 = vld [vmem:[#allocation5 + $0x19d0] ss:$8 sps:$4 sm:$0xff]  }
 0x255   :  { %7575 = vmatprep.subr.bf16.mxu0 %v9907_v8  ;;  %v9991_v8 = vld [vmem:[#allocation5 + $0x1914] ss:$8 sps:$4 sm:$0xff]  }
 0x257   :  { %6920 = vmatpush1.bf16.msra.mxu1 %v9902_v9  ;;  %v1213_v9 = vcombine.high %v11001_v26, %v11001_v26 }
 0x258   :  { %7576 = vmatpush1.bf16.msra.mxu0 %v9905_v32  ;;  %6921 = vmatprep.subr.bf16.mxu1 %v9910_v33  ;;  %v1349_v32 = vcombine.high %v11004_v28, %v11004_v28  ;;  %v9986_v33 = vld [vmem:[#allocation5 + $0x910] ss:$8 sps:$4 sm:$0xff]  }
 0x259   :  { %7577 = vmatprep.subr.bf16.mxu0 %v9913_v35  ;;  %v9989_v35 = vld [vmem:[#allocation5 + $0x1910] ss:$8 sps:$4 sm:$0xff]  }
 0x25b   :  { %6922 = vmatpush1.bf16.msra.mxu1 %v9908_v36  ;;  %v9994_v36 = vld [vmem:[#allocation5 + $0x924] ss:$8 sps:$4 sm:$0xff]  }
 0x25c   :  { %7578 = vmatpush1.bf16.msra.mxu0 %v9911_v16  ;;  %6923 = vmatprep.subr.bf16.mxu1 %v9916_v38  ;;  %v9997_v16 = vld [vmem:[#allocation5 + $0x1924] ss:$8 sps:$4 sm:$0xff]   ;;  %v9992_v38 = vld [vmem:[#allocation5 + $0x920] ss:$8 sps:$4 sm:$0xff]  }
 0x25d   :  { %7579 = vmatprep.subr.bf16.mxu0 %v9919_v39  ;;  %v9995_v39 = vld [vmem:[#allocation5 + $0x1920] ss:$8 sps:$4 sm:$0xff]  }
 0x25f   :  { %6924 = vmatpush1.bf16.msra.mxu1 %v9914_v40  ;;  %v10000_v40 = vld [vmem:[#allocation5 + $0x934] ss:$8 sps:$4 sm:$0xff]  }
 0x260   :  { %7580 = vmatpush1.bf16.msra.mxu0 %v9917_v41  ;;  %6925 = vmatprep.subr.bf16.mxu1 %v9922_v42  ;;  %v10001_v41 = vld [vmem:[#allocation5 + $0x1930] ss:$8 sps:$4 sm:$0xff]   ;;  %v10006_v42 = vld [vmem:[#allocation5 + $0x944] ss:$8 sps:$4 sm:$0xff]  }
 0x261   :  { %7581 = vmatprep.subr.bf16.mxu0 %v9925_v44  ;;  %v10009_v44 = vld [vmem:[#allocation5 + $0x1944] ss:$8 sps:$4 sm:$0xff]  }
 0x263   :  { %6926 = vmatpush1.bf16.msra.mxu1 %v9920_v47  ;;  %v10004_v47 = vld [vmem:[#allocation5 + $0x940] ss:$8 sps:$4 sm:$0xff]  }
 0x264   :  { %7582 = vmatpush1.bf16.msra.mxu0 %v9923_v48  ;;  %6927 = vmatprep.subr.bf16.mxu1 %v9928_v50  ;;  %v10007_v48 = vld [vmem:[#allocation5 + $0x1940] ss:$8 sps:$4 sm:$0xff]   ;;  %v10012_v50 = vld [vmem:[#allocation5 + $0x954] ss:$8 sps:$4 sm:$0xff]  }
 0x265   :  { %7583 = vmatprep.subr.bf16.mxu0 %v9931_v29  ;;  %v10015_v29 = vld [vmem:[#allocation5 + $0x1954] ss:$8 sps:$4 sm:$0xff]  }
 0x267   :  { %6928 = vmatpush1.bf16.msra.mxu1 %v9926_v51  ;;  %v10010_v51 = vld [vmem:[#allocation5 + $0x950] ss:$8 sps:$4 sm:$0xff]  }
 0x268   :  { %7584 = vmatpush1.bf16.msra.mxu0 %v9929_v34  ;;  %6929 = vmatprep.subr.bf16.mxu1 %v9934_v52  ;;  %v10013_v34 = vld [vmem:[#allocation5 + $0x1950] ss:$8 sps:$4 sm:$0xff]   ;;  %v10018_v52 = vld [vmem:[#allocation5 + $0x964] ss:$8 sps:$4 sm:$0xff]  }
 0x269   :  { %7585 = vmatprep.subr.bf16.mxu0 %v9937_v53  ;;  %v10021_v53 = vld [vmem:[#allocation5 + $0x1964] ss:$8 sps:$4 sm:$0xff]  }
 0x26b   :  { %6930 = vmatpush1.bf16.msra.mxu1 %v9932_v54  ;;  %v10016_v54 = vld [vmem:[#allocation5 + $0x960] ss:$8 sps:$4 sm:$0xff]  }
 0x26c   :  { %7586 = vmatpush1.bf16.msra.mxu0 %v9935_v55  ;;  %6931 = vmatprep.subr.bf16.mxu1 %v9940_v27  ;;  %v10019_v55 = vld [vmem:[#allocation5 + $0x1960] ss:$8 sps:$4 sm:$0xff]   ;;  %v10024_v27 = vld [vmem:[#allocation5 + $0x974] ss:$8 sps:$4 sm:$0xff]  }
 0x26d   :  { %7587 = vmatprep.subr.bf16.mxu0 %v9943_v58  ;;  %v10027_v58 = vld [vmem:[#allocation5 + $0x1974] ss:$8 sps:$4 sm:$0xff]  }
 0x26f   :  { %6932 = vmatpush1.bf16.msra.mxu1 %v9938_v37  ;;  %v10022_v37 = vld [vmem:[#allocation5 + $0x970] ss:$8 sps:$4 sm:$0xff]  }
 0x270   :  { %7588 = vmatpush1.bf16.msra.mxu0 %v9941_v59  ;;  %6933 = vmatprep.subr.bf16.mxu1 %v9946_v60  ;;  %v10025_v59 = vld [vmem:[#allocation5 + $0x1970] ss:$8 sps:$4 sm:$0xff]   ;;  %v10030_v60 = vld [vmem:[#allocation5 + $0x984] ss:$8 sps:$4 sm:$0xff]  }
 0x271   :  { %7589 = vmatprep.subr.bf16.mxu0 %v9949_v61  ;;  %v10033_v61 = vld [vmem:[#allocation5 + $0x1984] ss:$8 sps:$4 sm:$0xff]  }
 0x273   :  { %6934 = vmatpush1.bf16.msra.mxu1 %v9944_v0  ;;  %v10028_v0 = vld [vmem:[#allocation5 + $0x980] ss:$8 sps:$4 sm:$0xff]  }
 0x274   :  { %7590 = vmatpush1.bf16.msra.mxu0 %v9947_v1  ;;  %6935 = vmatprep.subr.bf16.mxu1 %v9952_v2  ;;  %v10031_v1 = vld [vmem:[#allocation5 + $0x1980] ss:$8 sps:$4 sm:$0xff]   ;;  %v10036_v2 = vld [vmem:[#allocation5 + $0x994] ss:$8 sps:$4 sm:$0xff]  }
 0x275   :  { %7591 = vmatprep.subr.bf16.mxu0 %v9955_v45  ;;  %v10039_v45 = vld [vmem:[#allocation5 + $0x1994] ss:$8 sps:$4 sm:$0xff]  }
 0x277   :  { %6936 = vmatpush1.bf16.msra.mxu1 %v9950_v46  ;;  %v10034_v46 = vld [vmem:[#allocation5 + $0x990] ss:$8 sps:$4 sm:$0xff]  }
 0x278   :  { %7592 = vmatpush1.bf16.msra.mxu0 %v9953_v3  ;;  %6937 = vmatprep.subr.bf16.mxu1 %v9958_v4  ;;  %v10037_v3 = vld [vmem:[#allocation5 + $0x1990] ss:$8 sps:$4 sm:$0xff]   ;;  %v10042_v4 = vld [vmem:[#allocation5 + $0x9a4] ss:$8 sps:$4 sm:$0xff]  }
 0x279   :  { %7593 = vmatprep.subr.bf16.mxu0 %v9961_v5  ;;  %v10045_v5 = vld [vmem:[#allocation5 + $0x19a4] ss:$8 sps:$4 sm:$0xff]  }
 0x27b   :  { %6938 = vmatpush1.bf16.msra.mxu1 %v9956_v6  ;;  %v10040_v6 = vld [vmem:[#allocation5 + $0x9a0] ss:$8 sps:$4 sm:$0xff]  }
 0x27c   :  { %7594 = vmatpush1.bf16.msra.mxu0 %v9959_v7  ;;  %6939 = vmatprep.subr.bf16.mxu1 %v9964_v30  ;;  %v10043_v7 = vld [vmem:[#allocation5 + $0x19a0] ss:$8 sps:$4 sm:$0xff]   ;;  %v10048_v30 = vld [vmem:[#allocation5 + $0x9b4] ss:$8 sps:$4 sm:$0xff]  }
 0x27d   :  { %7595 = vmatprep.subr.bf16.mxu0 %v9967_v10  ;;  %v10051_v10 = vld [vmem:[#allocation5 + $0x19b4] ss:$8 sps:$4 sm:$0xff]  }
 0x27f   :  { %6940 = vmatpush1.bf16.msra.mxu1 %v9962_v57  ;;  %v10046_v57 = vld [vmem:[#allocation5 + $0x9b0] ss:$8 sps:$4 sm:$0xff]  }
 0x280   :  { %7596 = vmatpush1.bf16.msra.mxu0 %v9965_v11  ;;  %6941 = vmatprep.subr.bf16.mxu1 %v9970_v12  ;;  %v10049_v11 = vld [vmem:[#allocation5 + $0x19b0] ss:$8 sps:$4 sm:$0xff]   ;;  %v10054_v12 = vld [vmem:[#allocation5 + $0x9c4] ss:$8 sps:$4 sm:$0xff]  }
 0x281   :  { %7597 = vmatprep.subr.bf16.mxu0 %v9973_v13  ;;  %v10057_v13 = vld [vmem:[#allocation5 + $0x19c4] ss:$8 sps:$4 sm:$0xff]  }
 0x283   :  { %6942 = vmatpush1.bf16.msra.mxu1 %v9968_v18  ;;  %v10052_v18 = vld [vmem:[#allocation5 + $0x9c0] ss:$8 sps:$4 sm:$0xff]  }
 0x284   :  { %7598 = vmatpush1.bf16.msra.mxu0 %v9971_v19  ;;  %6943 = vmatprep.subr.bf16.mxu1 %v9976_v20  ;;  %v10055_v19 = vld [vmem:[#allocation5 + $0x19c0] ss:$8 sps:$4 sm:$0xff]   ;;  %v10060_v20 = vld [vmem:[#allocation5 + $0x9d4] ss:$8 sps:$4 sm:$0xff]  }
 0x285   :  { %7599 = vmatprep.subr.bf16.mxu0 %v9979_v62  ;;  %v10063_v62 = vld [vmem:[#allocation5 + $0x19d4] ss:$8 sps:$4 sm:$0xff]  }
 0x287   :  { %6944 = vmatpush1.bf16.msra.mxu1 %v9974_v22  ;;  %v10066_v22 = vld [vmem:[#allocation5 + $0x9e4] ss:$8 sps:$4 sm:$0xff]  }
 0x288   :  { %7600 = vmatpush1.bf16.msra.mxu0 %v9977_v23  ;;  %6954 = vmatprep.subr.bf16.mxu1 %v9982_v24  ;;  %v10069_v23 = vld [vmem:[#allocation5 + $0x19e4] ss:$8 sps:$4 sm:$0xff]   ;;  %v10064_v24 = vld [vmem:[#allocation5 + $0x9e0] ss:$8 sps:$4 sm:$0xff]  }
 0x289   :  { %7610 = vmatprep.subr.bf16.mxu0 %v9985_v25  ;;  %v10067_v25 = vld [vmem:[#allocation5 + $0x19e0] ss:$8 sps:$4 sm:$0xff]  }
 0x28a   :  { %6946 = vmatmul.mubr.bf16.vlgmr.msra.gmra.mrb[0].mxu1 %v10984_v14  ;;  %v10003_v14 = vld [vmem:[#allocation5 + $0x1934] ss:$8 sps:$4 sm:$0xff]  }
 0x28b   :  { %7602 = vmatmul.mubr.bf16.vlgmr.msra.gmra.mrb[0].mxu0 %v10988_v15  ;;  %6955 = vmatpush1.bf16.msra.mxu1 %v9980_v17  ;;  %v9998_v15 = vld [vmem:[#allocation5 + $0x930] ss:$8 sps:$4 sm:$0xff]   ;;  %v10072_v17 = vld [vmem:[#allocation5 + $0x9f4] ss:$8 sps:$4 sm:$0xff]  }
 0x28c   :  { %7611 = vmatpush1.bf16.msra.mxu0 %v9983_v31  ;;  %6956 = vmatprep.subr.bf16.mxu1 %v9988_v56  ;;  %v10075_v31 = vld [vmem:[#allocation5 + $0x19f4] ss:$8 sps:$4 sm:$0xff]   ;;  %v11012_v56 = vld [vmem:[#allocation2 + $0x28] sm:$0xff] }
 0x28d   :  { %7612 = vmatprep.subr.bf16.mxu0 %v9991_v8  ;;  %6986 = vmatprep.mubr.bf16.mxu1 %v1213_v9  ;;  %v11014_v8 = vld [vmem:[#allocation2 + $0x68] sm:$0xff]  ;;  %v10070_v9 = vld [vmem:[#allocation5 + $0x9f0] ss:$8 sps:$4 sm:$0xff]  }
 0x28e   :  { %7642 = vmatprep.mubr.bf16.mxu0 %v1349_v32  ;;  %v10073_v32 = vld [vmem:[#allocation5 + $0x19f0] ss:$8 sps:$4 sm:$0xff]  }
 0x28f   :  { %6957 = vmatpush1.bf16.msra.mxu1 %v9986_v33  ;;  %v10079_v33 = vld [vmem:[#allocation5 + $0xa04] ss:$8 sps:$4 sm:$0xff]  }
 0x290   :  { %7613 = vmatpush1.bf16.msra.mxu0 %v9989_v35  ;;  %6958 = vmatprep.subr.bf16.mxu1 %v9994_v36  ;;  %v10083_v35 = vld [vmem:[#allocation5 + $0x1a04] ss:$8 sps:$4 sm:$0xff]   ;;  %v11018_v36 = vrot.slane %v11012_v56, %v10862_v49 }
 0x291   :  { %7614 = vmatprep.subr.bf16.mxu0 %v9997_v16  ;;  %v11022_v16 = vrot.slane %v11014_v8, %v10862_v49 }
 0x293   :  { %6959 = vmatpush1.bf16.msra.mxu1 %v9992_v38  ;;  %v10077_v38 = vld [vmem:[#allocation5 + $0xa00] ss:$8 sps:$4 sm:$0xff]  }
 0x294   :  { %7615 = vmatpush1.bf16.msra.mxu0 %v9995_v39  ;;  %6960 = vmatprep.subr.bf16.mxu1 %v10000_v40  ;;  %v10081_v39 = vld [vmem:[#allocation5 + $0x1a00] ss:$8 sps:$4 sm:$0xff]   ;;  %v10086_v40 = vld [vmem:[#allocation5 + $0xa14] ss:$8 sps:$4 sm:$0xff]  }
 0x295   :  { %7616 = vmatprep.subr.bf16.mxu0 %v10003_v14  ;;  %v10089_v14 = vld [vmem:[#allocation5 + $0x1a14] ss:$8 sps:$4 sm:$0xff]  }
 0x297   :  { %6961 = vmatpush1.bf16.msra.mxu1 %v9998_v15  ;;  %v1229_v15 = vcombine.high %v11018_v36, %v11018_v36 }
 0x298   :  { %7617 = vmatpush1.bf16.msra.mxu0 %v10001_v41  ;;  %6962 = vmatprep.subr.bf16.mxu1 %v10006_v42  ;;  %v1365_v41 = vcombine.high %v11022_v16, %v11022_v16  ;;  %v10084_v42 = vld [vmem:[#allocation5 + $0xa10] ss:$8 sps:$4 sm:$0xff]  }
 0x299   :  { %7618 = vmatprep.subr.bf16.mxu0 %v10009_v44  ;;  %v10087_v44 = vld [vmem:[#allocation5 + $0x1a10] ss:$8 sps:$4 sm:$0xff]  }
 0x29b   :  { %6963 = vmatpush1.bf16.msra.mxu1 %v10004_v47  ;;  %v10092_v47 = vld [vmem:[#allocation5 + $0xa24] ss:$8 sps:$4 sm:$0xff]  }
 0x29c   :  { %7619 = vmatpush1.bf16.msra.mxu0 %v10007_v48  ;;  %6964 = vmatprep.subr.bf16.mxu1 %v10012_v50  ;;  %v10095_v48 = vld [vmem:[#allocation5 + $0x1a24] ss:$8 sps:$4 sm:$0xff]   ;;  %v10090_v50 = vld [vmem:[#allocation5 + $0xa20] ss:$8 sps:$4 sm:$0xff]  }
 0x29d   :  { %7620 = vmatprep.subr.bf16.mxu0 %v10015_v29  ;;  %v10093_v29 = vld [vmem:[#allocation5 + $0x1a20] ss:$8 sps:$4 sm:$0xff]  }
 0x29f   :  { %6965 = vmatpush1.bf16.msra.mxu1 %v10010_v51  ;;  %v10098_v51 = vld [vmem:[#allocation5 + $0xa34] ss:$8 sps:$4 sm:$0xff]  }
 0x2a0   :  { %7621 = vmatpush1.bf16.msra.mxu0 %v10013_v34  ;;  %6966 = vmatprep.subr.bf16.mxu1 %v10018_v52  ;;  %v10099_v34 = vld [vmem:[#allocation5 + $0x1a30] ss:$8 sps:$4 sm:$0xff]   ;;  %v10104_v52 = vld [vmem:[#allocation5 + $0xa44] ss:$8 sps:$4 sm:$0xff]  }
 0x2a1   :  { %7622 = vmatprep.subr.bf16.mxu0 %v10021_v53  ;;  %v10107_v53 = vld [vmem:[#allocation5 + $0x1a44] ss:$8 sps:$4 sm:$0xff]  }
 0x2a3   :  { %6967 = vmatpush1.bf16.msra.mxu1 %v10016_v54  ;;  %v10102_v54 = vld [vmem:[#allocation5 + $0xa40] ss:$8 sps:$4 sm:$0xff]  }
 0x2a4   :  { %7623 = vmatpush1.bf16.msra.mxu0 %v10019_v55  ;;  %6968 = vmatprep.subr.bf16.mxu1 %v10024_v27  ;;  %v10105_v55 = vld [vmem:[#allocation5 + $0x1a40] ss:$8 sps:$4 sm:$0xff]   ;;  %v10110_v27 = vld [vmem:[#allocation5 + $0xa54] ss:$8 sps:$4 sm:$0xff]  }
 0x2a5   :  { %7624 = vmatprep.subr.bf16.mxu0 %v10027_v58  ;;  %v10113_v58 = vld [vmem:[#allocation5 + $0x1a54] ss:$8 sps:$4 sm:$0xff]  }
 0x2a7   :  { %6969 = vmatpush1.bf16.msra.mxu1 %v10022_v37  ;;  %v10108_v37 = vld [vmem:[#allocation5 + $0xa50] ss:$8 sps:$4 sm:$0xff]  }
 0x2a8   :  { %7625 = vmatpush1.bf16.msra.mxu0 %v10025_v59  ;;  %6970 = vmatprep.subr.bf16.mxu1 %v10030_v60  ;;  %v10111_v59 = vld [vmem:[#allocation5 + $0x1a50] ss:$8 sps:$4 sm:$0xff]   ;;  %v10116_v60 = vld [vmem:[#allocation5 + $0xa64] ss:$8 sps:$4 sm:$0xff]  }
 0x2a9   :  { %7626 = vmatprep.subr.bf16.mxu0 %v10033_v61  ;;  %v10119_v61 = vld [vmem:[#allocation5 + $0x1a64] ss:$8 sps:$4 sm:$0xff]  }
 0x2ab   :  { %6971 = vmatpush1.bf16.msra.mxu1 %v10028_v0  ;;  %v10114_v0 = vld [vmem:[#allocation5 + $0xa60] ss:$8 sps:$4 sm:$0xff]  }
 0x2ac   :  { %7627 = vmatpush1.bf16.msra.mxu0 %v10031_v1  ;;  %6972 = vmatprep.subr.bf16.mxu1 %v10036_v2  ;;  %v10117_v1 = vld [vmem:[#allocation5 + $0x1a60] ss:$8 sps:$4 sm:$0xff]   ;;  %v10122_v2 = vld [vmem:[#allocation5 + $0xa74] ss:$8 sps:$4 sm:$0xff]  }
 0x2ad   :  { %7628 = vmatprep.subr.bf16.mxu0 %v10039_v45  ;;  %v10125_v45 = vld [vmem:[#allocation5 + $0x1a74] ss:$8 sps:$4 sm:$0xff]  }
 0x2af   :  { %6973 = vmatpush1.bf16.msra.mxu1 %v10034_v46  ;;  %v10120_v46 = vld [vmem:[#allocation5 + $0xa70] ss:$8 sps:$4 sm:$0xff]  }
 0x2b0   :  { %7629 = vmatpush1.bf16.msra.mxu0 %v10037_v3  ;;  %6974 = vmatprep.subr.bf16.mxu1 %v10042_v4  ;;  %v10123_v3 = vld [vmem:[#allocation5 + $0x1a70] ss:$8 sps:$4 sm:$0xff]   ;;  %v10128_v4 = vld [vmem:[#allocation5 + $0xa84] ss:$8 sps:$4 sm:$0xff]  }
 0x2b1   :  { %7630 = vmatprep.subr.bf16.mxu0 %v10045_v5  ;;  %v10131_v5 = vld [vmem:[#allocation5 + $0x1a84] ss:$8 sps:$4 sm:$0xff]  }
 0x2b3   :  { %6975 = vmatpush1.bf16.msra.mxu1 %v10040_v6  ;;  %v10126_v6 = vld [vmem:[#allocation5 + $0xa80] ss:$8 sps:$4 sm:$0xff]  }
 0x2b4   :  { %7631 = vmatpush1.bf16.msra.mxu0 %v10043_v7  ;;  %6976 = vmatprep.subr.bf16.mxu1 %v10048_v30  ;;  %v10129_v7 = vld [vmem:[#allocation5 + $0x1a80] ss:$8 sps:$4 sm:$0xff]   ;;  %v10134_v30 = vld [vmem:[#allocation5 + $0xa94] ss:$8 sps:$4 sm:$0xff]  }
 0x2b5   :  { %7632 = vmatprep.subr.bf16.mxu0 %v10051_v10  ;;  %v10137_v10 = vld [vmem:[#allocation5 + $0x1a94] ss:$8 sps:$4 sm:$0xff]  }
 0x2b7   :  { %6977 = vmatpush1.bf16.msra.mxu1 %v10046_v57  ;;  %v10132_v57 = vld [vmem:[#allocation5 + $0xa90] ss:$8 sps:$4 sm:$0xff]  }
 0x2b8   :  { %7633 = vmatpush1.bf16.msra.mxu0 %v10049_v11  ;;  %6978 = vmatprep.subr.bf16.mxu1 %v10054_v12  ;;  %v10135_v11 = vld [vmem:[#allocation5 + $0x1a90] ss:$8 sps:$4 sm:$0xff]   ;;  %v10140_v12 = vld [vmem:[#allocation5 + $0xaa4] ss:$8 sps:$4 sm:$0xff]  }
 0x2b9   :  { %7634 = vmatprep.subr.bf16.mxu0 %v10057_v13  ;;  %v10143_v13 = vld [vmem:[#allocation5 + $0x1aa4] ss:$8 sps:$4 sm:$0xff]  }
 0x2bb   :  { %6979 = vmatpush1.bf16.msra.mxu1 %v10052_v18  ;;  %v10138_v18 = vld [vmem:[#allocation5 + $0xaa0] ss:$8 sps:$4 sm:$0xff]  }
 0x2bc   :  { %7635 = vmatpush1.bf16.msra.mxu0 %v10055_v19  ;;  %6980 = vmatprep.subr.bf16.mxu1 %v10060_v20  ;;  %v10141_v19 = vld [vmem:[#allocation5 + $0x1aa0] ss:$8 sps:$4 sm:$0xff]   ;;  %v10146_v20 = vld [vmem:[#allocation5 + $0xab4] ss:$8 sps:$4 sm:$0xff]  }
 0x2bd   :  { %7636 = vmatprep.subr.bf16.mxu0 %v10063_v62  ;;  %v10149_v62 = vld [vmem:[#allocation5 + $0x1ab4] ss:$8 sps:$4 sm:$0xff]  }
 0x2bf   :  { %6981 = vmatpush1.bf16.msra.mxu1 %v10058_v63  ;;  %v10144_v63 = vld [vmem:[#allocation5 + $0xab0] ss:$8 sps:$4 sm:$0xff]  }
 0x2c0   :  { %7637 = vmatpush1.bf16.msra.mxu0 %v10061_v21  ;;  %6982 = vmatprep.subr.bf16.mxu1 %v10066_v22  ;;  %v10147_v21 = vld [vmem:[#allocation5 + $0x1ab0] ss:$8 sps:$4 sm:$0xff]   ;;  %v10152_v22 = vld [vmem:[#allocation5 + $0xac4] ss:$8 sps:$4 sm:$0xff]  }
 0x2c1   :  { %7638 = vmatprep.subr.bf16.mxu0 %v10069_v23  ;;  %v10155_v23 = vld [vmem:[#allocation5 + $0x1ac4] ss:$8 sps:$4 sm:$0xff]  }
 0x2c3   :  { %6983 = vmatpush1.bf16.msra.mxu1 %v10064_v24  ;;  %v10150_v24 = vld [vmem:[#allocation5 + $0xac0] ss:$8 sps:$4 sm:$0xff]  }
 0x2c4   :  { %7639 = vmatpush1.bf16.msra.mxu0 %v10067_v25  ;;  %6984 = vmatprep.subr.bf16.mxu1 %v10072_v17  ;;  %v10153_v25 = vld [vmem:[#allocation5 + $0x1ac0] ss:$8 sps:$4 sm:$0xff]   ;;  %v10158_v17 = vld [vmem:[#allocation5 + $0xad4] ss:$8 sps:$4 sm:$0xff]  }
 0x2c5   :  { %7640 = vmatprep.subr.bf16.mxu0 %v10075_v31  ;;  %v10161_v31 = vld [vmem:[#allocation5 + $0x1ad4] ss:$8 sps:$4 sm:$0xff]  }
 0x2c7   :  { %6985 = vmatpush1.bf16.msra.mxu1 %v10070_v9  ;;  %v10156_v9 = vld [vmem:[#allocation5 + $0xad0] ss:$8 sps:$4 sm:$0xff]  }
 0x2c8   :  { %7641 = vmatpush1.bf16.msra.mxu0 %v10073_v32  ;;  %6995 = vmatprep.subr.bf16.mxu1 %v10079_v33  ;;  %v10159_v32 = vld [vmem:[#allocation5 + $0x1ad0] ss:$8 sps:$4 sm:$0xff]   ;;  %v10164_v33 = vld [vmem:[#allocation5 + $0xae4] ss:$8 sps:$4 sm:$0xff]  }
 0x2c9   :  { %7651 = vmatprep.subr.bf16.mxu0 %v10083_v35  ;;  %v10167_v35 = vld [vmem:[#allocation5 + $0x1ae4] ss:$8 sps:$4 sm:$0xff]  }
 0x2ca   :  { %6987 = vmatmul.mubr.bf16.vlgmr.msra.gmra.mrb[0].mxu1 %v11001_v26  ;;  %v10101_v26 = vld [vmem:[#allocation5 + $0x1a34] ss:$8 sps:$4 sm:$0xff]  }
 0x2cb   :  { %7643 = vmatmul.mubr.bf16.vlgmr.msra.gmra.mrb[0].mxu0 %v11004_v28  ;;  %6996 = vmatpush1.bf16.msra.mxu1 %v10077_v38  ;;  %v10096_v28 = vld [vmem:[#allocation5 + $0xa30] ss:$8 sps:$4 sm:$0xff]   ;;  %v10162_v38 = vld [vmem:[#allocation5 + $0xae0] ss:$8 sps:$4 sm:$0xff]  }
 0x2cc   :  { %7652 = vmatpush1.bf16.msra.mxu0 %v10081_v39  ;;  %6997 = vmatprep.subr.bf16.mxu1 %v10086_v40  ;;  %v10165_v39 = vld [vmem:[#allocation5 + $0x1ae0] ss:$8 sps:$4 sm:$0xff]   ;;  %v10170_v40 = vld [vmem:[#allocation5 + $0xaf4] ss:$8 sps:$4 sm:$0xff]  }
 0x2cd   :  { %7653 = vmatprep.subr.bf16.mxu0 %v10089_v14  ;;  %7027 = vmatprep.mubr.bf16.mxu1 %v1229_v15  ;;  %v10173_v14 = vld [vmem:[#allocation5 + $0x1af4] ss:$8 sps:$4 sm:$0xff]   ;;  %v1214_v15 = vcombine.high %v11012_v56, %v11012_v56  ;;  %v10174_v56 = vld [vmem:[#allocation5 + $0xb00] ss:$8 sps:$4 sm:$0xff]  }
 0x2ce   :  { %7683 = vmatprep.mubr.bf16.mxu0 %v1365_v41  ;;  %v1350_v41 = vcombine.high %v11014_v8, %v11014_v8  ;;  %v10182_v8 = vld [vmem:[#allocation5 + $0xb14] ss:$8 sps:$4 sm:$0xff]  }
 0x2cf   :  { %6998 = vmatpush1.bf16.msra.mxu1 %v10084_v42  ;;  %v10168_v42 = vld [vmem:[#allocation5 + $0xaf0] ss:$8 sps:$4 sm:$0xff]  }
 0x2d0   :  { %7654 = vmatpush1.bf16.msra.mxu0 %v10087_v44  ;;  %6999 = vmatprep.subr.bf16.mxu1 %v10092_v47  ;;  %v10171_v44 = vld [vmem:[#allocation5 + $0x1af0] ss:$8 sps:$4 sm:$0xff]   ;;  %v10176_v47 = vld [vmem:[#allocation5 + $0xb04] ss:$8 sps:$4 sm:$0xff]  }
 0x2d1   :  { %7655 = vmatprep.subr.bf16.mxu0 %v10095_v48  ;;  %v10179_v48 = vld [vmem:[#allocation5 + $0x1b04] ss:$8 sps:$4 sm:$0xff]  }
 0x2d3   :  { %7000 = vmatpush1.bf16.msra.mxu1 %v10090_v50  ;;  %v11035_v50 = vrot.slane %v1214_v15, %v10862_v49  ;;  %v10252_v15 = vld [vmem:[#allocation5 + $0xbd0] ss:$8 sps:$4 sm:$0xff]  }
 0x2d4   :  { %7656 = vmatpush1.bf16.msra.mxu0 %v10093_v29  ;;  %7001 = vmatprep.subr.bf16.mxu1 %v10098_v51  ;;  %v11038_v29 = vrot.slane %v1350_v41, %v10862_v49  ;;  %v10177_v51 = vld [vmem:[#allocation5 + $0x1b00] ss:$8 sps:$4 sm:$0xff]   ;;  %v10255_v41 = vld [vmem:[#allocation5 + $0x1bd0] ss:$8 sps:$4 sm:$0xff]  }
 0x2d5   :  { %7657 = vmatprep.subr.bf16.mxu0 %v10101_v26  ;;  %v10185_v26 = vld [vmem:[#allocation5 + $0x1b14] ss:$8 sps:$4 sm:$0xff]  }
 0x2d7   :  { %7002 = vmatpush1.bf16.msra.mxu1 %v10096_v28  ;;  %v1230_v28 = vcombine.high %v11035_v50, %v11035_v50 }
 0x2d8   :  { %7658 = vmatpush1.bf16.msra.mxu0 %v10099_v34  ;;  %7003 = vmatprep.subr.bf16.mxu1 %v10104_v52  ;;  %v1366_v34 = vcombine.high %v11038_v29, %v11038_v29  ;;  %v10180_v52 = vld [vmem:[#allocation5 + $0xb10] ss:$8 sps:$4 sm:$0xff]  }
 0x2d9   :  { %7659 = vmatprep.subr.bf16.mxu0 %v10107_v53  ;;  %v10183_v53 = vld [vmem:[#allocation5 + $0x1b10] ss:$8 sps:$4 sm:$0xff]  }
 0x2db   :  { %7004 = vmatpush1.bf16.msra.mxu1 %v10102_v54  ;;  %v10188_v54 = vld [vmem:[#allocation5 + $0xb24] ss:$8 sps:$4 sm:$0xff]  }
 0x2dc   :  { %7660 = vmatpush1.bf16.msra.mxu0 %v10105_v55  ;;  %7005 = vmatprep.subr.bf16.mxu1 %v10110_v27  ;;  %v10191_v55 = vld [vmem:[#allocation5 + $0x1b24] ss:$8 sps:$4 sm:$0xff]   ;;  %v10186_v27 = vld [vmem:[#allocation5 + $0xb20] ss:$8 sps:$4 sm:$0xff]  }
 0x2dd   :  { %7661 = vmatprep.subr.bf16.mxu0 %v10113_v58  ;;  %v10189_v58 = vld [vmem:[#allocation5 + $0x1b20] ss:$8 sps:$4 sm:$0xff]  }
 0x2df   :  { %7006 = vmatpush1.bf16.msra.mxu1 %v10108_v37  ;;  %v10194_v37 = vld [vmem:[#allocation5 + $0xb34] ss:$8 sps:$4 sm:$0xff]  }
 0x2e0   :  { %7662 = vmatpush1.bf16.msra.mxu0 %v10111_v59  ;;  %7007 = vmatprep.subr.bf16.mxu1 %v10116_v60  ;;  %v10195_v59 = vld [vmem:[#allocation5 + $0x1b30] ss:$8 sps:$4 sm:$0xff]   ;;  %v10200_v60 = vld [vmem:[#allocation5 + $0xb44] ss:$8 sps:$4 sm:$0xff]  }
 0x2e1   :  { %7663 = vmatprep.subr.bf16.mxu0 %v10119_v61  ;;  %v10203_v61 = vld [vmem:[#allocation5 + $0x1b44] ss:$8 sps:$4 sm:$0xff]  }
 0x2e3   :  { %7008 = vmatpush1.bf16.msra.mxu1 %v10114_v0  ;;  %v10198_v0 = vld [vmem:[#allocation5 + $0xb40] ss:$8 sps:$4 sm:$0xff]  }
 0x2e4   :  { %7664 = vmatpush1.bf16.msra.mxu0 %v10117_v1  ;;  %7009 = vmatprep.subr.bf16.mxu1 %v10122_v2  ;;  %v10201_v1 = vld [vmem:[#allocation5 + $0x1b40] ss:$8 sps:$4 sm:$0xff]   ;;  %v10206_v2 = vld [vmem:[#allocation5 + $0xb54] ss:$8 sps:$4 sm:$0xff]  }
 0x2e5   :  { %7665 = vmatprep.subr.bf16.mxu0 %v10125_v45  ;;  %v10209_v45 = vld [vmem:[#allocation5 + $0x1b54] ss:$8 sps:$4 sm:$0xff]  }
 0x2e7   :  { %7010 = vmatpush1.bf16.msra.mxu1 %v10120_v46  ;;  %v10204_v46 = vld [vmem:[#allocation5 + $0xb50] ss:$8 sps:$4 sm:$0xff]  }
 0x2e8   :  { %7666 = vmatpush1.bf16.msra.mxu0 %v10123_v3  ;;  %7011 = vmatprep.subr.bf16.mxu1 %v10128_v4  ;;  %v10207_v3 = vld [vmem:[#allocation5 + $0x1b50] ss:$8 sps:$4 sm:$0xff]   ;;  %v10212_v4 = vld [vmem:[#allocation5 + $0xb64] ss:$8 sps:$4 sm:$0xff]  }
 0x2e9   :  { %7667 = vmatprep.subr.bf16.mxu0 %v10131_v5  ;;  %v10215_v5 = vld [vmem:[#allocation5 + $0x1b64] ss:$8 sps:$4 sm:$0xff]  }
 0x2eb   :  { %7012 = vmatpush1.bf16.msra.mxu1 %v10126_v6  ;;  %v10210_v6 = vld [vmem:[#allocation5 + $0xb60] ss:$8 sps:$4 sm:$0xff]  }
 0x2ec   :  { %7668 = vmatpush1.bf16.msra.mxu0 %v10129_v7  ;;  %7013 = vmatprep.subr.bf16.mxu1 %v10134_v30  ;;  %v10213_v7 = vld [vmem:[#allocation5 + $0x1b60] ss:$8 sps:$4 sm:$0xff]   ;;  %v10218_v30 = vld [vmem:[#allocation5 + $0xb74] ss:$8 sps:$4 sm:$0xff]  }
 0x2ed   :  { %7669 = vmatprep.subr.bf16.mxu0 %v10137_v10  ;;  %v10221_v10 = vld [vmem:[#allocation5 + $0x1b74] ss:$8 sps:$4 sm:$0xff]  }
 0x2ef   :  { %7014 = vmatpush1.bf16.msra.mxu1 %v10132_v57  ;;  %v10216_v57 = vld [vmem:[#allocation5 + $0xb70] ss:$8 sps:$4 sm:$0xff]  }
 0x2f0   :  { %7670 = vmatpush1.bf16.msra.mxu0 %v10135_v11  ;;  %7015 = vmatprep.subr.bf16.mxu1 %v10140_v12  ;;  %v10219_v11 = vld [vmem:[#allocation5 + $0x1b70] ss:$8 sps:$4 sm:$0xff]   ;;  %v10224_v12 = vld [vmem:[#allocation5 + $0xb84] ss:$8 sps:$4 sm:$0xff]  }
 0x2f1   :  { %7671 = vmatprep.subr.bf16.mxu0 %v10143_v13  ;;  %v10227_v13 = vld [vmem:[#allocation5 + $0x1b84] ss:$8 sps:$4 sm:$0xff]  }
 0x2f3   :  { %7016 = vmatpush1.bf16.msra.mxu1 %v10138_v18  ;;  %v10222_v18 = vld [vmem:[#allocation5 + $0xb80] ss:$8 sps:$4 sm:$0xff]  }
 0x2f4   :  { %7672 = vmatpush1.bf16.msra.mxu0 %v10141_v19  ;;  %7017 = vmatprep.subr.bf16.mxu1 %v10146_v20  ;;  %v10225_v19 = vld [vmem:[#allocation5 + $0x1b80] ss:$8 sps:$4 sm:$0xff]   ;;  %v10230_v20 = vld [vmem:[#allocation5 + $0xb94] ss:$8 sps:$4 sm:$0xff]  }
 0x2f5   :  { %7673 = vmatprep.subr.bf16.mxu0 %v10149_v62  ;;  %v10233_v62 = vld [vmem:[#allocation5 + $0x1b94] ss:$8 sps:$4 sm:$0xff]  }
 0x2f7   :  { %7018 = vmatpush1.bf16.msra.mxu1 %v10144_v63  ;;  %v10228_v63 = vld [vmem:[#allocation5 + $0xb90] ss:$8 sps:$4 sm:$0xff]  }
 0x2f8   :  { %7674 = vmatpush1.bf16.msra.mxu0 %v10147_v21  ;;  %7019 = vmatprep.subr.bf16.mxu1 %v10152_v22  ;;  %v10231_v21 = vld [vmem:[#allocation5 + $0x1b90] ss:$8 sps:$4 sm:$0xff]   ;;  %v10236_v22 = vld [vmem:[#allocation5 + $0xba4] ss:$8 sps:$4 sm:$0xff]  }
 0x2f9   :  { %7675 = vmatprep.subr.bf16.mxu0 %v10155_v23  ;;  %v10239_v23 = vld [vmem:[#allocation5 + $0x1ba4] ss:$8 sps:$4 sm:$0xff]  }
 0x2fb   :  { %7020 = vmatpush1.bf16.msra.mxu1 %v10150_v24  ;;  %v10234_v24 = vld [vmem:[#allocation5 + $0xba0] ss:$8 sps:$4 sm:$0xff]  }
 0x2fc   :  { %7676 = vmatpush1.bf16.msra.mxu0 %v10153_v25  ;;  %7021 = vmatprep.subr.bf16.mxu1 %v10158_v17  ;;  %v10237_v25 = vld [vmem:[#allocation5 + $0x1ba0] ss:$8 sps:$4 sm:$0xff]   ;;  %v10242_v17 = vld [vmem:[#allocation5 + $0xbb4] ss:$8 sps:$4 sm:$0xff]  }
 0x2fd   :  { %7677 = vmatprep.subr.bf16.mxu0 %v10161_v31  ;;  %v10245_v31 = vld [vmem:[#allocation5 + $0x1bb4] ss:$8 sps:$4 sm:$0xff]  }
 0x2ff   :  { %7022 = vmatpush1.bf16.msra.mxu1 %v10156_v9  ;;  %v10240_v9 = vld [vmem:[#allocation5 + $0xbb0] ss:$8 sps:$4 sm:$0xff]  }
 0x300   :  { %7678 = vmatpush1.bf16.msra.mxu0 %v10159_v32  ;;  %7023 = vmatprep.subr.bf16.mxu1 %v10164_v33  ;;  %v10243_v32 = vld [vmem:[#allocation5 + $0x1bb0] ss:$8 sps:$4 sm:$0xff]   ;;  %v10248_v33 = vld [vmem:[#allocation5 + $0xbc4] ss:$8 sps:$4 sm:$0xff]  }
 0x301   :  { %7679 = vmatprep.subr.bf16.mxu0 %v10167_v35  ;;  %v10251_v35 = vld [vmem:[#allocation5 + $0x1bc4] ss:$8 sps:$4 sm:$0xff]  }
 0x303   :  { %7024 = vmatpush1.bf16.msra.mxu1 %v10162_v38  ;;  %v10246_v38 = vld [vmem:[#allocation5 + $0xbc0] ss:$8 sps:$4 sm:$0xff]  }
 0x304   :  { %7680 = vmatpush1.bf16.msra.mxu0 %v10165_v39  ;;  %7025 = vmatprep.subr.bf16.mxu1 %v10170_v40  ;;  %v10249_v39 = vld [vmem:[#allocation5 + $0x1bc0] ss:$8 sps:$4 sm:$0xff]   ;;  %v10254_v40 = vld [vmem:[#allocation5 + $0xbd4] ss:$8 sps:$4 sm:$0xff]  }
 0x305   :  { %7681 = vmatprep.subr.bf16.mxu0 %v10173_v14  ;;  %v10257_v14 = vld [vmem:[#allocation5 + $0x1bd4] ss:$8 sps:$4 sm:$0xff]  }
 0x307   :  { %7026 = vmatpush1.bf16.msra.mxu1 %v10168_v42  ;;  %v10260_v42 = vld [vmem:[#allocation5 + $0xbe4] ss:$8 sps:$4 sm:$0xff]  }
 0x308   :  { %7682 = vmatpush1.bf16.msra.mxu0 %v10171_v44  ;;  %7036 = vmatprep.subr.bf16.mxu1 %v10176_v47  ;;  %v10263_v44 = vld [vmem:[#allocation5 + $0x1be4] ss:$8 sps:$4 sm:$0xff]   ;;  %v10258_v47 = vld [vmem:[#allocation5 + $0xbe0] ss:$8 sps:$4 sm:$0xff]  }
 0x309   :  { %7692 = vmatprep.subr.bf16.mxu0 %v10179_v48  ;;  %v10261_v48 = vld [vmem:[#allocation5 + $0x1be0] ss:$8 sps:$4 sm:$0xff]  }
 0x30a   :  { %7028 = vmatmul.mubr.bf16.vlgmr.msra.gmra.mrb[0].mxu1 %v11018_v36  ;;  %v10197_v36 = vld [vmem:[#allocation5 + $0x1b34] ss:$8 sps:$4 sm:$0xff]  }
 0x30b   :  { %7684 = vmatmul.mubr.bf16.vlgmr.msra.gmra.mrb[0].mxu0 %v11022_v16  ;;  %7037 = vmatpush1.bf16.msra.mxu1 %v10174_v56  ;;  %v10192_v16 = vld [vmem:[#allocation5 + $0xb30] ss:$8 sps:$4 sm:$0xff]   ;;  %v10266_v56 = vld [vmem:[#allocation5 + $0xbf4] ss:$8 sps:$4 sm:$0xff]  }
 0x30c   :  { %7693 = vmatpush1.bf16.msra.mxu0 %v10177_v51  ;;  %7038 = vmatprep.subr.bf16.mxu1 %v10182_v8  ;;  %v10269_v51 = vld [vmem:[#allocation5 + $0x1bf4] ss:$8 sps:$4 sm:$0xff]  }
 0x30d   :  { %7694 = vmatprep.subr.bf16.mxu0 %v10185_v26  ;;  %7068 = vmatprep.mubr.bf16.mxu1 %v1230_v28  ;;  %v11046_v8 = vld [vmem:[#allocation2 + $0x30] sm:$0xff] }
 0x30e   :  { %7724 = vmatprep.mubr.bf16.mxu0 %v1366_v34  ;;  %v11048_v26 = vld [vmem:[#allocation2 + $0x70] sm:$0xff] }
 0x30f   :  { %7039 = vmatpush1.bf16.msra.mxu1 %v10180_v52  ;;  %v10264_v28 = vld [vmem:[#allocation5 + $0xbf0] ss:$8 sps:$4 sm:$0xff]   ;;  %v10273_v52 = vld [vmem:[#allocation5 + $0xc04] ss:$8 sps:$4 sm:$0xff]  }
 0x310   :  { %7695 = vmatpush1.bf16.msra.mxu0 %v10183_v53  ;;  %7040 = vmatprep.subr.bf16.mxu1 %v10188_v54  ;;  %v10267_v34 = vld [vmem:[#allocation5 + $0x1bf0] ss:$8 sps:$4 sm:$0xff]   ;;  %v10277_v53 = vld [vmem:[#allocation5 + $0x1c04] ss:$8 sps:$4 sm:$0xff]   ;;  %v11052_v54 = vrot.slane %v11046_v8, %v10862_v49 }
 0x311   :  { %7696 = vmatprep.subr.bf16.mxu0 %v10191_v55  ;;  %v11056_v55 = vrot.slane %v11048_v26, %v10862_v49 }
 0x313   :  { %7041 = vmatpush1.bf16.msra.mxu1 %v10186_v27  ;;  %v10271_v27 = vld [vmem:[#allocation5 + $0xc00] ss:$8 sps:$4 sm:$0xff]  }
 0x314   :  { %7697 = vmatpush1.bf16.msra.mxu0 %v10189_v58  ;;  %7042 = vmatprep.subr.bf16.mxu1 %v10194_v37  ;;  %v10275_v58 = vld [vmem:[#allocation5 + $0x1c00] ss:$8 sps:$4 sm:$0xff]   ;;  %v10280_v37 = vld [vmem:[#allocation5 + $0xc14] ss:$8 sps:$4 sm:$0xff]  }
 0x315   :  { %7698 = vmatprep.subr.bf16.mxu0 %v10197_v36  ;;  %v10283_v36 = vld [vmem:[#allocation5 + $0x1c14] ss:$8 sps:$4 sm:$0xff]  }
 0x317   :  { %7043 = vmatpush1.bf16.msra.mxu1 %v10192_v16  ;;  %v1246_v16 = vcombine.high %v11052_v54, %v11052_v54 }
 0x318   :  { %7699 = vmatpush1.bf16.msra.mxu0 %v10195_v59  ;;  %7044 = vmatprep.subr.bf16.mxu1 %v10200_v60  ;;  %v1382_v59 = vcombine.high %v11056_v55, %v11056_v55  ;;  %v10278_v60 = vld [vmem:[#allocation5 + $0xc10] ss:$8 sps:$4 sm:$0xff]  }
 0x319   :  { %7700 = vmatprep.subr.bf16.mxu0 %v10203_v61  ;;  %v10281_v61 = vld [vmem:[#allocation5 + $0x1c10] ss:$8 sps:$4 sm:$0xff]  }
 0x31b   :  { %7045 = vmatpush1.bf16.msra.mxu1 %v10198_v0  ;;  %v10286_v0 = vld [vmem:[#allocation5 + $0xc24] ss:$8 sps:$4 sm:$0xff]  }
 0x31c   :  { %7701 = vmatpush1.bf16.msra.mxu0 %v10201_v1  ;;  %7046 = vmatprep.subr.bf16.mxu1 %v10206_v2  ;;  %v10289_v1 = vld [vmem:[#allocation5 + $0x1c24] ss:$8 sps:$4 sm:$0xff]   ;;  %v10284_v2 = vld [vmem:[#allocation5 + $0xc20] ss:$8 sps:$4 sm:$0xff]  }
 0x31d   :  { %7702 = vmatprep.subr.bf16.mxu0 %v10209_v45  ;;  %v10287_v45 = vld [vmem:[#allocation5 + $0x1c20] ss:$8 sps:$4 sm:$0xff]  }
 0x31f   :  { %7047 = vmatpush1.bf16.msra.mxu1 %v10204_v46  ;;  %v10292_v46 = vld [vmem:[#allocation5 + $0xc34] ss:$8 sps:$4 sm:$0xff]  }
 0x320   :  { %7703 = vmatpush1.bf16.msra.mxu0 %v10207_v3  ;;  %7048 = vmatprep.subr.bf16.mxu1 %v10212_v4  ;;  %v10293_v3 = vld [vmem:[#allocation5 + $0x1c30] ss:$8 sps:$4 sm:$0xff]   ;;  %v10298_v4 = vld [vmem:[#allocation5 + $0xc44] ss:$8 sps:$4 sm:$0xff]  }
 0x321   :  { %7704 = vmatprep.subr.bf16.mxu0 %v10215_v5  ;;  %v10301_v5 = vld [vmem:[#allocation5 + $0x1c44] ss:$8 sps:$4 sm:$0xff]  }
 0x323   :  { %7049 = vmatpush1.bf16.msra.mxu1 %v10210_v6  ;;  %v10296_v6 = vld [vmem:[#allocation5 + $0xc40] ss:$8 sps:$4 sm:$0xff]  }
 0x324   :  { %7705 = vmatpush1.bf16.msra.mxu0 %v10213_v7  ;;  %7050 = vmatprep.subr.bf16.mxu1 %v10218_v30  ;;  %v10299_v7 = vld [vmem:[#allocation5 + $0x1c40] ss:$8 sps:$4 sm:$0xff]   ;;  %v10304_v30 = vld [vmem:[#allocation5 + $0xc54] ss:$8 sps:$4 sm:$0xff]  }
 0x325   :  { %7706 = vmatprep.subr.bf16.mxu0 %v10221_v10  ;;  %v10307_v10 = vld [vmem:[#allocation5 + $0x1c54] ss:$8 sps:$4 sm:$0xff]  }
 0x327   :  { %7051 = vmatpush1.bf16.msra.mxu1 %v10216_v57  ;;  %v10302_v57 = vld [vmem:[#allocation5 + $0xc50] ss:$8 sps:$4 sm:$0xff]  }
 0x328   :  { %7707 = vmatpush1.bf16.msra.mxu0 %v10219_v11  ;;  %7052 = vmatprep.subr.bf16.mxu1 %v10224_v12  ;;  %v10305_v11 = vld [vmem:[#allocation5 + $0x1c50] ss:$8 sps:$4 sm:$0xff]   ;;  %v10310_v12 = vld [vmem:[#allocation5 + $0xc64] ss:$8 sps:$4 sm:$0xff]  }
 0x329   :  { %7708 = vmatprep.subr.bf16.mxu0 %v10227_v13  ;;  %v10313_v13 = vld [vmem:[#allocation5 + $0x1c64] ss:$8 sps:$4 sm:$0xff]  }
 0x32b   :  { %7053 = vmatpush1.bf16.msra.mxu1 %v10222_v18  ;;  %v10308_v18 = vld [vmem:[#allocation5 + $0xc60] ss:$8 sps:$4 sm:$0xff]  }
 0x32c   :  { %7709 = vmatpush1.bf16.msra.mxu0 %v10225_v19  ;;  %7054 = vmatprep.subr.bf16.mxu1 %v10230_v20  ;;  %v10311_v19 = vld [vmem:[#allocation5 + $0x1c60] ss:$8 sps:$4 sm:$0xff]   ;;  %v10316_v20 = vld [vmem:[#allocation5 + $0xc74] ss:$8 sps:$4 sm:$0xff]  }
 0x32d   :  { %7710 = vmatprep.subr.bf16.mxu0 %v10233_v62  ;;  %v10319_v62 = vld [vmem:[#allocation5 + $0x1c74] ss:$8 sps:$4 sm:$0xff]  }
 0x32f   :  { %7055 = vmatpush1.bf16.msra.mxu1 %v10228_v63  ;;  %v10314_v63 = vld [vmem:[#allocation5 + $0xc70] ss:$8 sps:$4 sm:$0xff]  }
 0x330   :  { %7711 = vmatpush1.bf16.msra.mxu0 %v10231_v21  ;;  %7056 = vmatprep.subr.bf16.mxu1 %v10236_v22  ;;  %v10317_v21 = vld [vmem:[#allocation5 + $0x1c70] ss:$8 sps:$4 sm:$0xff]   ;;  %v10322_v22 = vld [vmem:[#allocation5 + $0xc84] ss:$8 sps:$4 sm:$0xff]  }
 0x331   :  { %7712 = vmatprep.subr.bf16.mxu0 %v10239_v23  ;;  %v10325_v23 = vld [vmem:[#allocation5 + $0x1c84] ss:$8 sps:$4 sm:$0xff]  }
 0x333   :  { %7057 = vmatpush1.bf16.msra.mxu1 %v10234_v24  ;;  %v10320_v24 = vld [vmem:[#allocation5 + $0xc80] ss:$8 sps:$4 sm:$0xff]  }
 0x334   :  { %7713 = vmatpush1.bf16.msra.mxu0 %v10237_v25  ;;  %7058 = vmatprep.subr.bf16.mxu1 %v10242_v17  ;;  %v10323_v25 = vld [vmem:[#allocation5 + $0x1c80] ss:$8 sps:$4 sm:$0xff]   ;;  %v10328_v17 = vld [vmem:[#allocation5 + $0xc94] ss:$8 sps:$4 sm:$0xff]  }
 0x335   :  { %7714 = vmatprep.subr.bf16.mxu0 %v10245_v31  ;;  %v10331_v31 = vld [vmem:[#allocation5 + $0x1c94] ss:$8 sps:$4 sm:$0xff]  }
 0x337   :  { %7059 = vmatpush1.bf16.msra.mxu1 %v10240_v9  ;;  %v10326_v9 = vld [vmem:[#allocation5 + $0xc90] ss:$8 sps:$4 sm:$0xff]  }
 0x338   :  { %7715 = vmatpush1.bf16.msra.mxu0 %v10243_v32  ;;  %7060 = vmatprep.subr.bf16.mxu1 %v10248_v33  ;;  %v10329_v32 = vld [vmem:[#allocation5 + $0x1c90] ss:$8 sps:$4 sm:$0xff]   ;;  %v10334_v33 = vld [vmem:[#allocation5 + $0xca4] ss:$8 sps:$4 sm:$0xff]  }
 0x339   :  { %7716 = vmatprep.subr.bf16.mxu0 %v10251_v35  ;;  %v10337_v35 = vld [vmem:[#allocation5 + $0x1ca4] ss:$8 sps:$4 sm:$0xff]  }
 0x33b   :  { %7061 = vmatpush1.bf16.msra.mxu1 %v10246_v38  ;;  %v10332_v38 = vld [vmem:[#allocation5 + $0xca0] ss:$8 sps:$4 sm:$0xff]  }
 0x33c   :  { %7717 = vmatpush1.bf16.msra.mxu0 %v10249_v39  ;;  %7062 = vmatprep.subr.bf16.mxu1 %v10254_v40  ;;  %v10335_v39 = vld [vmem:[#allocation5 + $0x1ca0] ss:$8 sps:$4 sm:$0xff]   ;;  %v10340_v40 = vld [vmem:[#allocation5 + $0xcb4] ss:$8 sps:$4 sm:$0xff]  }
 0x33d   :  { %7718 = vmatprep.subr.bf16.mxu0 %v10257_v14  ;;  %v10343_v14 = vld [vmem:[#allocation5 + $0x1cb4] ss:$8 sps:$4 sm:$0xff]  }
 0x33f   :  { %7063 = vmatpush1.bf16.msra.mxu1 %v10252_v15  ;;  %v10338_v15 = vld [vmem:[#allocation5 + $0xcb0] ss:$8 sps:$4 sm:$0xff]  }
 0x340   :  { %7719 = vmatpush1.bf16.msra.mxu0 %v10255_v41  ;;  %7064 = vmatprep.subr.bf16.mxu1 %v10260_v42  ;;  %v10341_v41 = vld [vmem:[#allocation5 + $0x1cb0] ss:$8 sps:$4 sm:$0xff]   ;;  %v10346_v42 = vld [vmem:[#allocation5 + $0xcc4] ss:$8 sps:$4 sm:$0xff]  }
 0x341   :  { %7720 = vmatprep.subr.bf16.mxu0 %v10263_v44  ;;  %v10349_v44 = vld [vmem:[#allocation5 + $0x1cc4] ss:$8 sps:$4 sm:$0xff]  }
 0x343   :  { %7065 = vmatpush1.bf16.msra.mxu1 %v10258_v47  ;;  %v10344_v47 = vld [vmem:[#allocation5 + $0xcc0] ss:$8 sps:$4 sm:$0xff]  }
 0x344   :  { %7721 = vmatpush1.bf16.msra.mxu0 %v10261_v48  ;;  %7066 = vmatprep.subr.bf16.mxu1 %v10266_v56  ;;  %v10347_v48 = vld [vmem:[#allocation5 + $0x1cc0] ss:$8 sps:$4 sm:$0xff]   ;;  %v10352_v56 = vld [vmem:[#allocation5 + $0xcd4] ss:$8 sps:$4 sm:$0xff]  }
 0x345   :  { %7722 = vmatprep.subr.bf16.mxu0 %v10269_v51  ;;  %v10355_v51 = vld [vmem:[#allocation5 + $0x1cd4] ss:$8 sps:$4 sm:$0xff]  }
 0x347   :  { %7067 = vmatpush1.bf16.msra.mxu1 %v10264_v28  ;;  %v10350_v28 = vld [vmem:[#allocation5 + $0xcd0] ss:$8 sps:$4 sm:$0xff]  }
 0x348   :  { %7723 = vmatpush1.bf16.msra.mxu0 %v10267_v34  ;;  %7077 = vmatprep.subr.bf16.mxu1 %v10273_v52  ;;  %v10353_v34 = vld [vmem:[#allocation5 + $0x1cd0] ss:$8 sps:$4 sm:$0xff]   ;;  %v10358_v52 = vld [vmem:[#allocation5 + $0xce4] ss:$8 sps:$4 sm:$0xff]  }
 0x349   :  { %7733 = vmatprep.subr.bf16.mxu0 %v10277_v53  ;;  %v10361_v53 = vld [vmem:[#allocation5 + $0x1ce4] ss:$8 sps:$4 sm:$0xff]  }
 0x34a   :  { %7069 = vmatmul.mubr.bf16.vlgmr.msra.gmra.mrb[0].mxu1 %v11035_v50  ;;  %v10295_v50 = vld [vmem:[#allocation5 + $0x1c34] ss:$8 sps:$4 sm:$0xff]  }
 0x34b   :  { %7725 = vmatmul.mubr.bf16.vlgmr.msra.gmra.mrb[0].mxu0 %v11038_v29  ;;  %7078 = vmatpush1.bf16.msra.mxu1 %v10271_v27  ;;  %v10290_v29 = vld [vmem:[#allocation5 + $0xc30] ss:$8 sps:$4 sm:$0xff]   ;;  %v10356_v27 = vld [vmem:[#allocation5 + $0xce0] ss:$8 sps:$4 sm:$0xff]  }
 0x34c   :  { %7734 = vmatpush1.bf16.msra.mxu0 %v10275_v58  ;;  %7079 = vmatprep.subr.bf16.mxu1 %v10280_v37  ;;  %v10359_v58 = vld [vmem:[#allocation5 + $0x1ce0] ss:$8 sps:$4 sm:$0xff]   ;;  %v10364_v37 = vld [vmem:[#allocation5 + $0xcf4] ss:$8 sps:$4 sm:$0xff]  }
 0x34d   :  { %7735 = vmatprep.subr.bf16.mxu0 %v10283_v36  ;;  %7109 = vmatprep.mubr.bf16.mxu1 %v1246_v16  ;;  %v10367_v36 = vld [vmem:[#allocation5 + $0x1cf4] ss:$8 sps:$4 sm:$0xff]   ;;  %v1231_v16 = vcombine.high %v11046_v8, %v11046_v8  ;;  %v10368_v8 = vld [vmem:[#allocation5 + $0xd00] ss:$8 sps:$4 sm:$0xff]  }
 0x34e   :  { %7765 = vmatprep.mubr.bf16.mxu0 %v1382_v59  ;;  %v1367_v59 = vcombine.high %v11048_v26, %v11048_v26  ;;  %v10376_v26 = vld [vmem:[#allocation5 + $0xd14] ss:$8 sps:$4 sm:$0xff]  }
 0x34f   :  { %7080 = vmatpush1.bf16.msra.mxu1 %v10278_v60  ;;  %v10362_v60 = vld [vmem:[#allocation5 + $0xcf0] ss:$8 sps:$4 sm:$0xff]  }
 0x350   :  { %7736 = vmatpush1.bf16.msra.mxu0 %v10281_v61  ;;  %7081 = vmatprep.subr.bf16.mxu1 %v10286_v0  ;;  %v10365_v61 = vld [vmem:[#allocation5 + $0x1cf0] ss:$8 sps:$4 sm:$0xff]   ;;  %v10370_v0 = vld [vmem:[#allocation5 + $0xd04] ss:$8 sps:$4 sm:$0xff]  }
 0x351   :  { %7737 = vmatprep.subr.bf16.mxu0 %v10289_v1  ;;  %v10373_v1 = vld [vmem:[#allocation5 + $0x1d04] ss:$8 sps:$4 sm:$0xff]  }
 0x353   :  { %7082 = vmatpush1.bf16.msra.mxu1 %v10284_v2  ;;  %v11069_v2 = vrot.slane %v1231_v16, %v10862_v49  ;;  %v10446_v16 = vld [vmem:[#allocation5 + $0xdd0] ss:$8 sps:$4 sm:$0xff]  }
 0x354   :  { %7738 = vmatpush1.bf16.msra.mxu0 %v10287_v45  ;;  %7083 = vmatprep.subr.bf16.mxu1 %v10292_v46  ;;  %v11072_v45 = vrot.slane %v1367_v59, %v10862_v49  ;;  %v10371_v46 = vld [vmem:[#allocation5 + $0x1d00] ss:$8 sps:$4 sm:$0xff]   ;;  %v10449_v59 = vld [vmem:[#allocation5 + $0x1dd0] ss:$8 sps:$4 sm:$0xff]  }
 0x355   :  { %7739 = vmatprep.subr.bf16.mxu0 %v10295_v50  ;;  %v10379_v50 = vld [vmem:[#allocation5 + $0x1d14] ss:$8 sps:$4 sm:$0xff]  }
 0x357   :  { %7084 = vmatpush1.bf16.msra.mxu1 %v10290_v29  ;;  %v1247_v29 = vcombine.high %v11069_v2, %v11069_v2 }
 0x358   :  { %7740 = vmatpush1.bf16.msra.mxu0 %v10293_v3  ;;  %7085 = vmatprep.subr.bf16.mxu1 %v10298_v4  ;;  %v1383_v3 = vcombine.high %v11072_v45, %v11072_v45  ;;  %v10374_v4 = vld [vmem:[#allocation5 + $0xd10] ss:$8 sps:$4 sm:$0xff]  }
 0x359   :  { %7741 = vmatprep.subr.bf16.mxu0 %v10301_v5  ;;  %v10377_v5 = vld [vmem:[#allocation5 + $0x1d10] ss:$8 sps:$4 sm:$0xff]  }
 0x35b   :  { %7086 = vmatpush1.bf16.msra.mxu1 %v10296_v6  ;;  %v10382_v6 = vld [vmem:[#allocation5 + $0xd24] ss:$8 sps:$4 sm:$0xff]  }
 0x35c   :  { %7742 = vmatpush1.bf16.msra.mxu0 %v10299_v7  ;;  %7087 = vmatprep.subr.bf16.mxu1 %v10304_v30  ;;  %v10385_v7 = vld [vmem:[#allocation5 + $0x1d24] ss:$8 sps:$4 sm:$0xff]   ;;  %v10380_v30 = vld [vmem:[#allocation5 + $0xd20] ss:$8 sps:$4 sm:$0xff]  }
 0x35d   :  { %7743 = vmatprep.subr.bf16.mxu0 %v10307_v10  ;;  %v10383_v10 = vld [vmem:[#allocation5 + $0x1d20] ss:$8 sps:$4 sm:$0xff]  }
 0x35f   :  { %7088 = vmatpush1.bf16.msra.mxu1 %v10302_v57  ;;  %v10388_v57 = vld [vmem:[#allocation5 + $0xd34] ss:$8 sps:$4 sm:$0xff]  }
 0x360   :  { %7744 = vmatpush1.bf16.msra.mxu0 %v10305_v11  ;;  %7089 = vmatprep.subr.bf16.mxu1 %v10310_v12  ;;  %v10389_v11 = vld [vmem:[#allocation5 + $0x1d30] ss:$8 sps:$4 sm:$0xff]   ;;  %v10394_v12 = vld [vmem:[#allocation5 + $0xd44] ss:$8 sps:$4 sm:$0xff]  }
 0x361   :  { %7745 = vmatprep.subr.bf16.mxu0 %v10313_v13  ;;  %v10397_v13 = vld [vmem:[#allocation5 + $0x1d44] ss:$8 sps:$4 sm:$0xff]  }
 0x363   :  { %7090 = vmatpush1.bf16.msra.mxu1 %v10308_v18  ;;  %v10392_v18 = vld [vmem:[#allocation5 + $0xd40] ss:$8 sps:$4 sm:$0xff]  }
 0x364   :  { %7746 = vmatpush1.bf16.msra.mxu0 %v10311_v19  ;;  %7091 = vmatprep.subr.bf16.mxu1 %v10316_v20  ;;  %v10395_v19 = vld [vmem:[#allocation5 + $0x1d40] ss:$8 sps:$4 sm:$0xff]   ;;  %v10400_v20 = vld [vmem:[#allocation5 + $0xd54] ss:$8 sps:$4 sm:$0xff]  }
 0x365   :  { %7747 = vmatprep.subr.bf16.mxu0 %v10319_v62  ;;  %v10403_v62 = vld [vmem:[#allocation5 + $0x1d54] ss:$8 sps:$4 sm:$0xff]  }
 0x367   :  { %7092 = vmatpush1.bf16.msra.mxu1 %v10314_v63  ;;  %v10398_v63 = vld [vmem:[#allocation5 + $0xd50] ss:$8 sps:$4 sm:$0xff]  }
 0x368   :  { %7748 = vmatpush1.bf16.msra.mxu0 %v10317_v21  ;;  %7093 = vmatprep.subr.bf16.mxu1 %v10322_v22  ;;  %v10401_v21 = vld [vmem:[#allocation5 + $0x1d50] ss:$8 sps:$4 sm:$0xff]   ;;  %v10406_v22 = vld [vmem:[#allocation5 + $0xd64] ss:$8 sps:$4 sm:$0xff]  }
 0x369   :  { %7749 = vmatprep.subr.bf16.mxu0 %v10325_v23  ;;  %v10409_v23 = vld [vmem:[#allocation5 + $0x1d64] ss:$8 sps:$4 sm:$0xff]  }
 0x36b   :  { %7094 = vmatpush1.bf16.msra.mxu1 %v10320_v24  ;;  %v10404_v24 = vld [vmem:[#allocation5 + $0xd60] ss:$8 sps:$4 sm:$0xff]  }
 0x36c   :  { %7750 = vmatpush1.bf16.msra.mxu0 %v10323_v25  ;;  %7095 = vmatprep.subr.bf16.mxu1 %v10328_v17  ;;  %v10407_v25 = vld [vmem:[#allocation5 + $0x1d60] ss:$8 sps:$4 sm:$0xff]   ;;  %v10412_v17 = vld [vmem:[#allocation5 + $0xd74] ss:$8 sps:$4 sm:$0xff]  }
 0x36d   :  { %7751 = vmatprep.subr.bf16.mxu0 %v10331_v31  ;;  %v10415_v31 = vld [vmem:[#allocation5 + $0x1d74] ss:$8 sps:$4 sm:$0xff]  }
 0x36f   :  { %7096 = vmatpush1.bf16.msra.mxu1 %v10326_v9  ;;  %v10410_v9 = vld [vmem:[#allocation5 + $0xd70] ss:$8 sps:$4 sm:$0xff]  }
 0x370   :  { %7752 = vmatpush1.bf16.msra.mxu0 %v10329_v32  ;;  %7097 = vmatprep.subr.bf16.mxu1 %v10334_v33  ;;  %v10413_v32 = vld [vmem:[#allocation5 + $0x1d70] ss:$8 sps:$4 sm:$0xff]   ;;  %v10418_v33 = vld [vmem:[#allocation5 + $0xd84] ss:$8 sps:$4 sm:$0xff]  }
 0x371   :  { %7753 = vmatprep.subr.bf16.mxu0 %v10337_v35  ;;  %v10421_v35 = vld [vmem:[#allocation5 + $0x1d84] ss:$8 sps:$4 sm:$0xff]  }
 0x373   :  { %7098 = vmatpush1.bf16.msra.mxu1 %v10332_v38  ;;  %v10416_v38 = vld [vmem:[#allocation5 + $0xd80] ss:$8 sps:$4 sm:$0xff]  }
 0x374   :  { %7754 = vmatpush1.bf16.msra.mxu0 %v10335_v39  ;;  %7099 = vmatprep.subr.bf16.mxu1 %v10340_v40  ;;  %v10419_v39 = vld [vmem:[#allocation5 + $0x1d80] ss:$8 sps:$4 sm:$0xff]   ;;  %v10424_v40 = vld [vmem:[#allocation5 + $0xd94] ss:$8 sps:$4 sm:$0xff]  }
 0x375   :  { %7755 = vmatprep.subr.bf16.mxu0 %v10343_v14  ;;  %v10427_v14 = vld [vmem:[#allocation5 + $0x1d94] ss:$8 sps:$4 sm:$0xff]  }
 0x377   :  { %7100 = vmatpush1.bf16.msra.mxu1 %v10338_v15  ;;  %v10422_v15 = vld [vmem:[#allocation5 + $0xd90] ss:$8 sps:$4 sm:$0xff]  }
 0x378   :  { %7756 = vmatpush1.bf16.msra.mxu0 %v10341_v41  ;;  %7101 = vmatprep.subr.bf16.mxu1 %v10346_v42  ;;  %v10425_v41 = vld [vmem:[#allocation5 + $0x1d90] ss:$8 sps:$4 sm:$0xff]   ;;  %v10430_v42 = vld [vmem:[#allocation5 + $0xda4] ss:$8 sps:$4 sm:$0xff]  }
 0x379   :  { %7757 = vmatprep.subr.bf16.mxu0 %v10349_v44  ;;  %v10433_v44 = vld [vmem:[#allocation5 + $0x1da4] ss:$8 sps:$4 sm:$0xff]  }
 0x37b   :  { %7102 = vmatpush1.bf16.msra.mxu1 %v10344_v47  ;;  %v10428_v47 = vld [vmem:[#allocation5 + $0xda0] ss:$8 sps:$4 sm:$0xff]  }
 0x37c   :  { %7758 = vmatpush1.bf16.msra.mxu0 %v10347_v48  ;;  %7103 = vmatprep.subr.bf16.mxu1 %v10352_v56  ;;  %v10431_v48 = vld [vmem:[#allocation5 + $0x1da0] ss:$8 sps:$4 sm:$0xff]   ;;  %v10436_v56 = vld [vmem:[#allocation5 + $0xdb4] ss:$8 sps:$4 sm:$0xff]  }
 0x37d   :  { %7759 = vmatprep.subr.bf16.mxu0 %v10355_v51  ;;  %v10439_v51 = vld [vmem:[#allocation5 + $0x1db4] ss:$8 sps:$4 sm:$0xff]  }
 0x37f   :  { %7104 = vmatpush1.bf16.msra.mxu1 %v10350_v28  ;;  %v10434_v28 = vld [vmem:[#allocation5 + $0xdb0] ss:$8 sps:$4 sm:$0xff]  }
 0x380   :  { %7760 = vmatpush1.bf16.msra.mxu0 %v10353_v34  ;;  %7105 = vmatprep.subr.bf16.mxu1 %v10358_v52  ;;  %v10437_v34 = vld [vmem:[#allocation5 + $0x1db0] ss:$8 sps:$4 sm:$0xff]   ;;  %v10442_v52 = vld [vmem:[#allocation5 + $0xdc4] ss:$8 sps:$4 sm:$0xff]  }
 0x381   :  { %7761 = vmatprep.subr.bf16.mxu0 %v10361_v53  ;;  %v10445_v53 = vld [vmem:[#allocation5 + $0x1dc4] ss:$8 sps:$4 sm:$0xff]  }
 0x383   :  { %7106 = vmatpush1.bf16.msra.mxu1 %v10356_v27  ;;  %v10440_v27 = vld [vmem:[#allocation5 + $0xdc0] ss:$8 sps:$4 sm:$0xff]  }
 0x384   :  { %7762 = vmatpush1.bf16.msra.mxu0 %v10359_v58  ;;  %7107 = vmatprep.subr.bf16.mxu1 %v10364_v37  ;;  %v10443_v58 = vld [vmem:[#allocation5 + $0x1dc0] ss:$8 sps:$4 sm:$0xff]   ;;  %v10448_v37 = vld [vmem:[#allocation5 + $0xdd4] ss:$8 sps:$4 sm:$0xff]  }
 0x385   :  { %7763 = vmatprep.subr.bf16.mxu0 %v10367_v36  ;;  %v10451_v36 = vld [vmem:[#allocation5 + $0x1dd4] ss:$8 sps:$4 sm:$0xff]  }
 0x387   :  { %7108 = vmatpush1.bf16.msra.mxu1 %v10362_v60  ;;  %v10454_v60 = vld [vmem:[#allocation5 + $0xde4] ss:$8 sps:$4 sm:$0xff]  }
 0x388   :  { %7764 = vmatpush1.bf16.msra.mxu0 %v10365_v61  ;;  %7118 = vmatprep.subr.bf16.mxu1 %v10370_v0  ;;  %v10457_v61 = vld [vmem:[#allocation5 + $0x1de4] ss:$8 sps:$4 sm:$0xff]   ;;  %v10452_v0 = vld [vmem:[#allocation5 + $0xde0] ss:$8 sps:$4 sm:$0xff]  }
 0x389   :  { %7774 = vmatprep.subr.bf16.mxu0 %v10373_v1  ;;  %v10455_v1 = vld [vmem:[#allocation5 + $0x1de0] ss:$8 sps:$4 sm:$0xff]  }
 0x38a   :  { %7110 = vmatmul.mubr.bf16.vlgmr.msra.gmra.mrb[0].mxu1 %v11052_v54  ;;  %v10391_v54 = vld [vmem:[#allocation5 + $0x1d34] ss:$8 sps:$4 sm:$0xff]  }
 0x38b   :  { %7766 = vmatmul.mubr.bf16.vlgmr.msra.gmra.mrb[0].mxu0 %v11056_v55  ;;  %7119 = vmatpush1.bf16.msra.mxu1 %v10368_v8  ;;  %v10386_v55 = vld [vmem:[#allocation5 + $0xd30] ss:$8 sps:$4 sm:$0xff]   ;;  %v10460_v8 = vld [vmem:[#allocation5 + $0xdf4] ss:$8 sps:$4 sm:$0xff]  }
 0x38c   :  { %7775 = vmatpush1.bf16.msra.mxu0 %v10371_v46  ;;  %7120 = vmatprep.subr.bf16.mxu1 %v10376_v26  ;;  %v10463_v46 = vld [vmem:[#allocation5 + $0x1df4] ss:$8 sps:$4 sm:$0xff]  }
 0x38d   :  { %7776 = vmatprep.subr.bf16.mxu0 %v10379_v50  ;;  %7150 = vmatprep.mubr.bf16.mxu1 %v1247_v29  ;;  %v11080_v26 = vld [vmem:[#allocation2 + $0x38] sm:$0xff] }
 0x38e   :  { %7806 = vmatprep.mubr.bf16.mxu0 %v1383_v3  ;;  %v11082_v50 = vld [vmem:[#allocation2 + $0x78] sm:$0xff] }
 0x38f   :  { %7121 = vmatpush1.bf16.msra.mxu1 %v10374_v4  ;;  %v10458_v29 = vld [vmem:[#allocation5 + $0xdf0] ss:$8 sps:$4 sm:$0xff]   ;;  %v10467_v4 = vld [vmem:[#allocation5 + $0xe04] ss:$8 sps:$4 sm:$0xff]  }
 0x390   :  { %7777 = vmatpush1.bf16.msra.mxu0 %v10377_v5  ;;  %7122 = vmatprep.subr.bf16.mxu1 %v10382_v6  ;;  %v10461_v3 = vld [vmem:[#allocation5 + $0x1df0] ss:$8 sps:$4 sm:$0xff]   ;;  %v10471_v5 = vld [vmem:[#allocation5 + $0x1e04] ss:$8 sps:$4 sm:$0xff]   ;;  %v11086_v6 = vrot.slane %v11080_v26, %v10862_v49 }
 0x391   :  { %7778 = vmatprep.subr.bf16.mxu0 %v10385_v7  ;;  %v11090_v7 = vrot.slane %v11082_v50, %v10862_v49 }
 0x393   :  { %7123 = vmatpush1.bf16.msra.mxu1 %v10380_v30  ;;  %v10465_v30 = vld [vmem:[#allocation5 + $0xe00] ss:$8 sps:$4 sm:$0xff]  }
 0x394   :  { %7779 = vmatpush1.bf16.msra.mxu0 %v10383_v10  ;;  %7124 = vmatprep.subr.bf16.mxu1 %v10388_v57  ;;  %v10469_v10 = vld [vmem:[#allocation5 + $0x1e00] ss:$8 sps:$4 sm:$0xff]   ;;  %v10474_v57 = vld [vmem:[#allocation5 + $0xe14] ss:$8 sps:$4 sm:$0xff]  }
 0x395   :  { %7780 = vmatprep.subr.bf16.mxu0 %v10391_v54  ;;  %v10477_v54 = vld [vmem:[#allocation5 + $0x1e14] ss:$8 sps:$4 sm:$0xff]  }
 0x397   :  { %7125 = vmatpush1.bf16.msra.mxu1 %v10386_v55  ;;  %v1263_v55 = vcombine.high %v11086_v6, %v11086_v6 }
 0x398   :  { %7781 = vmatpush1.bf16.msra.mxu0 %v10389_v11  ;;  %7126 = vmatprep.subr.bf16.mxu1 %v10394_v12  ;;  %v1399_v11 = vcombine.high %v11090_v7, %v11090_v7  ;;  %v10472_v12 = vld [vmem:[#allocation5 + $0xe10] ss:$8 sps:$4 sm:$0xff]  }
 0x399   :  { %7782 = vmatprep.subr.bf16.mxu0 %v10397_v13  ;;  %v10475_v13 = vld [vmem:[#allocation5 + $0x1e10] ss:$8 sps:$4 sm:$0xff]  }
 0x39b   :  { %7127 = vmatpush1.bf16.msra.mxu1 %v10392_v18  ;;  %v10480_v18 = vld [vmem:[#allocation5 + $0xe24] ss:$8 sps:$4 sm:$0xff]  }
 0x39c   :  { %7783 = vmatpush1.bf16.msra.mxu0 %v10395_v19  ;;  %7128 = vmatprep.subr.bf16.mxu1 %v10400_v20  ;;  %v10483_v19 = vld [vmem:[#allocation5 + $0x1e24] ss:$8 sps:$4 sm:$0xff]   ;;  %v10478_v20 = vld [vmem:[#allocation5 + $0xe20] ss:$8 sps:$4 sm:$0xff]  }
 0x39d   :  { %7784 = vmatprep.subr.bf16.mxu0 %v10403_v62  ;;  %v10481_v62 = vld [vmem:[#allocation5 + $0x1e20] ss:$8 sps:$4 sm:$0xff]  }
 0x39f   :  { %7129 = vmatpush1.bf16.msra.mxu1 %v10398_v63  ;;  %v10486_v63 = vld [vmem:[#allocation5 + $0xe34] ss:$8 sps:$4 sm:$0xff]  }
 0x3a0   :  { %7785 = vmatpush1.bf16.msra.mxu0 %v10401_v21  ;;  %7130 = vmatprep.subr.bf16.mxu1 %v10406_v22  ;;  %v10487_v21 = vld [vmem:[#allocation5 + $0x1e30] ss:$8 sps:$4 sm:$0xff]   ;;  %v10492_v22 = vld [vmem:[#allocation5 + $0xe44] ss:$8 sps:$4 sm:$0xff]  }
 0x3a1   :  { %7786 = vmatprep.subr.bf16.mxu0 %v10409_v23  ;;  %v10495_v23 = vld [vmem:[#allocation5 + $0x1e44] ss:$8 sps:$4 sm:$0xff]  }
 0x3a3   :  { %7131 = vmatpush1.bf16.msra.mxu1 %v10404_v24  ;;  %v10490_v24 = vld [vmem:[#allocation5 + $0xe40] ss:$8 sps:$4 sm:$0xff]  }
 0x3a4   :  { %7787 = vmatpush1.bf16.msra.mxu0 %v10407_v25  ;;  %7132 = vmatprep.subr.bf16.mxu1 %v10412_v17  ;;  %v10493_v25 = vld [vmem:[#allocation5 + $0x1e40] ss:$8 sps:$4 sm:$0xff]   ;;  %v10498_v17 = vld [vmem:[#allocation5 + $0xe54] ss:$8 sps:$4 sm:$0xff]  }
 0x3a5   :  { %7788 = vmatprep.subr.bf16.mxu0 %v10415_v31  ;;  %v10501_v31 = vld [vmem:[#allocation5 + $0x1e54] ss:$8 sps:$4 sm:$0xff]  }
 0x3a7   :  { %7133 = vmatpush1.bf16.msra.mxu1 %v10410_v9  ;;  %v10496_v9 = vld [vmem:[#allocation5 + $0xe50] ss:$8 sps:$4 sm:$0xff]  }
 0x3a8   :  { %7789 = vmatpush1.bf16.msra.mxu0 %v10413_v32  ;;  %7134 = vmatprep.subr.bf16.mxu1 %v10418_v33  ;;  %v10499_v32 = vld [vmem:[#allocation5 + $0x1e50] ss:$8 sps:$4 sm:$0xff]   ;;  %v10504_v33 = vld [vmem:[#allocation5 + $0xe64] ss:$8 sps:$4 sm:$0xff]  }
 0x3a9   :  { %7790 = vmatprep.subr.bf16.mxu0 %v10421_v35  ;;  %v10507_v35 = vld [vmem:[#allocation5 + $0x1e64] ss:$8 sps:$4 sm:$0xff]  }
 0x3ab   :  { %7135 = vmatpush1.bf16.msra.mxu1 %v10416_v38  ;;  %v10502_v38 = vld [vmem:[#allocation5 + $0xe60] ss:$8 sps:$4 sm:$0xff]  }
 0x3ac   :  { %7791 = vmatpush1.bf16.msra.mxu0 %v10419_v39  ;;  %7136 = vmatprep.subr.bf16.mxu1 %v10424_v40  ;;  %v10505_v39 = vld [vmem:[#allocation5 + $0x1e60] ss:$8 sps:$4 sm:$0xff]   ;;  %v10510_v40 = vld [vmem:[#allocation5 + $0xe74] ss:$8 sps:$4 sm:$0xff]  }
 0x3ad   :  { %7792 = vmatprep.subr.bf16.mxu0 %v10427_v14  ;;  %v10513_v14 = vld [vmem:[#allocation5 + $0x1e74] ss:$8 sps:$4 sm:$0xff]  }
 0x3af   :  { %7137 = vmatpush1.bf16.msra.mxu1 %v10422_v15  ;;  %v10508_v15 = vld [vmem:[#allocation5 + $0xe70] ss:$8 sps:$4 sm:$0xff]  }
 0x3b0   :  { %7793 = vmatpush1.bf16.msra.mxu0 %v10425_v41  ;;  %7138 = vmatprep.subr.bf16.mxu1 %v10430_v42  ;;  %v10511_v41 = vld [vmem:[#allocation5 + $0x1e70] ss:$8 sps:$4 sm:$0xff]   ;;  %v10516_v42 = vld [vmem:[#allocation5 + $0xe84] ss:$8 sps:$4 sm:$0xff]  }
 0x3b1   :  { %7794 = vmatprep.subr.bf16.mxu0 %v10433_v44  ;;  %v10519_v44 = vld [vmem:[#allocation5 + $0x1e84] ss:$8 sps:$4 sm:$0xff]  }
 0x3b3   :  { %7139 = vmatpush1.bf16.msra.mxu1 %v10428_v47  ;;  %v10514_v47 = vld [vmem:[#allocation5 + $0xe80] ss:$8 sps:$4 sm:$0xff]  }
 0x3b4   :  { %7795 = vmatpush1.bf16.msra.mxu0 %v10431_v48  ;;  %7140 = vmatprep.subr.bf16.mxu1 %v10436_v56  ;;  %v10517_v48 = vld [vmem:[#allocation5 + $0x1e80] ss:$8 sps:$4 sm:$0xff]   ;;  %v10522_v56 = vld [vmem:[#allocation5 + $0xe94] ss:$8 sps:$4 sm:$0xff]  }
 0x3b5   :  { %7796 = vmatprep.subr.bf16.mxu0 %v10439_v51  ;;  %v10525_v51 = vld [vmem:[#allocation5 + $0x1e94] ss:$8 sps:$4 sm:$0xff]  }
 0x3b7   :  { %7141 = vmatpush1.bf16.msra.mxu1 %v10434_v28  ;;  %v10520_v28 = vld [vmem:[#allocation5 + $0xe90] ss:$8 sps:$4 sm:$0xff]  }
 0x3b8   :  { %7797 = vmatpush1.bf16.msra.mxu0 %v10437_v34  ;;  %7142 = vmatprep.subr.bf16.mxu1 %v10442_v52  ;;  %v10523_v34 = vld [vmem:[#allocation5 + $0x1e90] ss:$8 sps:$4 sm:$0xff]   ;;  %v10528_v52 = vld [vmem:[#allocation5 + $0xea4] ss:$8 sps:$4 sm:$0xff]  }
 0x3b9   :  { %7798 = vmatprep.subr.bf16.mxu0 %v10445_v53  ;;  %v10531_v53 = vld [vmem:[#allocation5 + $0x1ea4] ss:$8 sps:$4 sm:$0xff]  }
 0x3bb   :  { %7143 = vmatpush1.bf16.msra.mxu1 %v10440_v27  ;;  %v10526_v27 = vld [vmem:[#allocation5 + $0xea0] ss:$8 sps:$4 sm:$0xff]  }
 0x3bc   :  { %7799 = vmatpush1.bf16.msra.mxu0 %v10443_v58  ;;  %7144 = vmatprep.subr.bf16.mxu1 %v10448_v37  ;;  %v10529_v58 = vld [vmem:[#allocation5 + $0x1ea0] ss:$8 sps:$4 sm:$0xff]   ;;  %v10534_v37 = vld [vmem:[#allocation5 + $0xeb4] ss:$8 sps:$4 sm:$0xff]  }
 0x3bd   :  { %7800 = vmatprep.subr.bf16.mxu0 %v10451_v36  ;;  %v10537_v36 = vld [vmem:[#allocation5 + $0x1eb4] ss:$8 sps:$4 sm:$0xff]  }
 0x3bf   :  { %7145 = vmatpush1.bf16.msra.mxu1 %v10446_v16  ;;  %v10532_v16 = vld [vmem:[#allocation5 + $0xeb0] ss:$8 sps:$4 sm:$0xff]  }
 0x3c0   :  { %7801 = vmatpush1.bf16.msra.mxu0 %v10449_v59  ;;  %7146 = vmatprep.subr.bf16.mxu1 %v10454_v60  ;;  %v10535_v59 = vld [vmem:[#allocation5 + $0x1eb0] ss:$8 sps:$4 sm:$0xff]   ;;  %v10540_v60 = vld [vmem:[#allocation5 + $0xec4] ss:$8 sps:$4 sm:$0xff]  }
 0x3c1   :  { %7802 = vmatprep.subr.bf16.mxu0 %v10457_v61  ;;  %v10543_v61 = vld [vmem:[#allocation5 + $0x1ec4] ss:$8 sps:$4 sm:$0xff]  }
 0x3c3   :  { %7147 = vmatpush1.bf16.msra.mxu1 %v10452_v0  ;;  %v10538_v0 = vld [vmem:[#allocation5 + $0xec0] ss:$8 sps:$4 sm:$0xff]  }
 0x3c4   :  { %7803 = vmatpush1.bf16.msra.mxu0 %v10455_v1  ;;  %7148 = vmatprep.subr.bf16.mxu1 %v10460_v8  ;;  %v10541_v1 = vld [vmem:[#allocation5 + $0x1ec0] ss:$8 sps:$4 sm:$0xff]   ;;  %v10546_v8 = vld [vmem:[#allocation5 + $0xed4] ss:$8 sps:$4 sm:$0xff]  }
 0x3c5   :  { %7804 = vmatprep.subr.bf16.mxu0 %v10463_v46  ;;  %v10549_v46 = vld [vmem:[#allocation5 + $0x1ed4] ss:$8 sps:$4 sm:$0xff]  }
 0x3c7   :  { %7149 = vmatpush1.bf16.msra.mxu1 %v10458_v29  ;;  %v10544_v29 = vld [vmem:[#allocation5 + $0xed0] ss:$8 sps:$4 sm:$0xff]  }
 0x3c8   :  { %7805 = vmatpush1.bf16.msra.mxu0 %v10461_v3  ;;  %7159 = vmatprep.subr.bf16.mxu1 %v10467_v4  ;;  %v10547_v3 = vld [vmem:[#allocation5 + $0x1ed0] ss:$8 sps:$4 sm:$0xff]   ;;  %v10552_v4 = vld [vmem:[#allocation5 + $0xee4] ss:$8 sps:$4 sm:$0xff]  }
 0x3c9   :  { %7815 = vmatprep.subr.bf16.mxu0 %v10471_v5  ;;  %v10555_v5 = vld [vmem:[#allocation5 + $0x1ee4] ss:$8 sps:$4 sm:$0xff]  }
 0x3ca   :  { %7151 = vmatmul.mubr.bf16.vlgmr.msra.gmra.mrb[0].mxu1 %v11069_v2  ;;  %v10489_v2 = vld [vmem:[#allocation5 + $0x1e34] ss:$8 sps:$4 sm:$0xff]  }
 0x3cb   :  { %7807 = vmatmul.mubr.bf16.vlgmr.msra.gmra.mrb[0].mxu0 %v11072_v45  ;;  %7160 = vmatpush1.bf16.msra.mxu1 %v10465_v30  ;;  %v10484_v45 = vld [vmem:[#allocation5 + $0xe30] ss:$8 sps:$4 sm:$0xff]   ;;  %v10550_v30 = vld [vmem:[#allocation5 + $0xee0] ss:$8 sps:$4 sm:$0xff]  }
 0x3cc   :  { %7816 = vmatpush1.bf16.msra.mxu0 %v10469_v10  ;;  %7161 = vmatprep.subr.bf16.mxu1 %v10474_v57  ;;  %v10553_v10 = vld [vmem:[#allocation5 + $0x1ee0] ss:$8 sps:$4 sm:$0xff]   ;;  %v10558_v57 = vld [vmem:[#allocation5 + $0xef4] ss:$8 sps:$4 sm:$0xff]  }
 0x3cd   :  { %7817 = vmatprep.subr.bf16.mxu0 %v10477_v54  ;;  %7191 = vmatprep.mubr.bf16.mxu1 %v1263_v55  ;;  %v10561_v54 = vld [vmem:[#allocation5 + $0x1ef4] ss:$8 sps:$4 sm:$0xff]   ;;  %v1248_v55 = vcombine.high %v11080_v26, %v11080_v26  ;;  %v10562_v26 = vld [vmem:[#allocation5 + $0xf00] ss:$8 sps:$4 sm:$0xff]  }
 0x3ce   :  { %7847 = vmatprep.mubr.bf16.mxu0 %v1399_v11  ;;  %v1384_v11 = vcombine.high %v11082_v50, %v11082_v50  ;;  %v10570_v50 = vld [vmem:[#allocation5 + $0xf14] ss:$8 sps:$4 sm:$0xff]  }
 0x3cf   :  { %7162 = vmatpush1.bf16.msra.mxu1 %v10472_v12  ;;  %v10556_v12 = vld [vmem:[#allocation5 + $0xef0] ss:$8 sps:$4 sm:$0xff]  }
 0x3d0   :  { %7818 = vmatpush1.bf16.msra.mxu0 %v10475_v13  ;;  %7163 = vmatprep.subr.bf16.mxu1 %v10480_v18  ;;  %v10559_v13 = vld [vmem:[#allocation5 + $0x1ef0] ss:$8 sps:$4 sm:$0xff]   ;;  %v10564_v18 = vld [vmem:[#allocation5 + $0xf04] ss:$8 sps:$4 sm:$0xff]  }
 0x3d1   :  { %7819 = vmatprep.subr.bf16.mxu0 %v10483_v19  ;;  %v10567_v19 = vld [vmem:[#allocation5 + $0x1f04] ss:$8 sps:$4 sm:$0xff]  }
 0x3d3   :  { %7164 = vmatpush1.bf16.msra.mxu1 %v10478_v20  ;;  %v11103_v20 = vrot.slane %v1248_v55, %v10862_v49  ;;  %v10643_v55 = vld [vmem:[#allocation5 + $0x1fd0] ss:$8 sps:$4 sm:$0xff]  }
 0x3d4   :  { %7820 = vmatpush1.bf16.msra.mxu0 %v10481_v62  ;;  %7165 = vmatprep.subr.bf16.mxu1 %v10486_v63  ;;  %v11106_v62 = vrot.slane %v1384_v11, %v10862_v49  ;;  %v10565_v63 = vld [vmem:[#allocation5 + $0x1f00] ss:$8 sps:$4 sm:$0xff]   ;;  %v10568_v49 = vld [vmem:[#allocation5 + $0xf10] ss:$8 sps:$4 sm:$0xff]   ;;  %v10648_v11 = vld [vmem:[#allocation5 + $0xfe4] ss:$8 sps:$4 sm:$0xff]  }
 0x3d5   :  { %7821 = vmatprep.subr.bf16.mxu0 %v10489_v2  ;;  %v10573_v2 = vld [vmem:[#allocation5 + $0x1f14] ss:$8 sps:$4 sm:$0xff]  }
 0x3d7   :  { %7166 = vmatpush1.bf16.msra.mxu1 %v10484_v45  ;;  %v1264_v45 = vcombine.high %v11103_v20, %v11103_v20 }
 0x3d8   :  { %7822 = vmatpush1.bf16.msra.mxu0 %v10487_v21  ;;  %7167 = vmatprep.subr.bf16.mxu1 %v10492_v22  ;;  %v1400_v21 = vcombine.high %v11106_v62, %v11106_v62  ;;  %v10571_v22 = vld [vmem:[#allocation5 + $0x1f10] ss:$8 sps:$4 sm:$0xff]  }
 0x3d9   :  { %7823 = vmatprep.subr.bf16.mxu0 %v10495_v23  ;;  %v10576_v23 = vld [vmem:[#allocation5 + $0xf24] ss:$8 sps:$4 sm:$0xff]  }
 0x3db   :  { %7168 = vmatpush1.bf16.msra.mxu1 %v10490_v24  ;;  %v10579_v24 = vld [vmem:[#allocation5 + $0x1f24] ss:$8 sps:$4 sm:$0xff]  }
 0x3dc   :  { %7824 = vmatpush1.bf16.msra.mxu0 %v10493_v25  ;;  %7169 = vmatprep.subr.bf16.mxu1 %v10498_v17  ;;  %v10574_v25 = vld [vmem:[#allocation5 + $0xf20] ss:$8 sps:$4 sm:$0xff]  }
 0x3dd   :  { %7825 = vmatprep.subr.bf16.mxu0 %v10501_v31  ;;  %v10577_v17 = vld [vmem:[#allocation5 + $0x1f20] ss:$8 sps:$4 sm:$0xff]   ;;  %v10582_v31 = vld [vmem:[#allocation5 + $0xf34] ss:$8 sps:$4 sm:$0xff]  }
 0x3df   :  { %7170 = vmatpush1.bf16.msra.mxu1 %v10496_v9  ;;  %v10583_v9 = vld [vmem:[#allocation5 + $0x1f30] ss:$8 sps:$4 sm:$0xff]  }
 0x3e0   :  { %7826 = vmatpush1.bf16.msra.mxu0 %v10499_v32  ;;  %7171 = vmatprep.subr.bf16.mxu1 %v10504_v33  ;;  %v10588_v32 = vld [vmem:[#allocation5 + $0xf44] ss:$8 sps:$4 sm:$0xff]  }
 0x3e1   :  { %7827 = vmatprep.subr.bf16.mxu0 %v10507_v35  ;;  %v10591_v33 = vld [vmem:[#allocation5 + $0x1f44] ss:$8 sps:$4 sm:$0xff]   ;;  %v10586_v35 = vld [vmem:[#allocation5 + $0xf40] ss:$8 sps:$4 sm:$0xff]  }
 0x3e3   :  { %7172 = vmatpush1.bf16.msra.mxu1 %v10502_v38  ;;  %v10589_v38 = vld [vmem:[#allocation5 + $0x1f40] ss:$8 sps:$4 sm:$0xff]  }
 0x3e4   :  { %7828 = vmatpush1.bf16.msra.mxu0 %v10505_v39  ;;  %7173 = vmatprep.subr.bf16.mxu1 %v10510_v40  ;;  %v10594_v39 = vld [vmem:[#allocation5 + $0xf54] ss:$8 sps:$4 sm:$0xff]  }
 0x3e5   :  { %7829 = vmatprep.subr.bf16.mxu0 %v10513_v14  ;;  %v10597_v40 = vld [vmem:[#allocation5 + $0x1f54] ss:$8 sps:$4 sm:$0xff]   ;;  %v10592_v14 = vld [vmem:[#allocation5 + $0xf50] ss:$8 sps:$4 sm:$0xff]  }
 0x3e7   :  { %7174 = vmatpush1.bf16.msra.mxu1 %v10508_v15  ;;  %v10595_v15 = vld [vmem:[#allocation5 + $0x1f50] ss:$8 sps:$4 sm:$0xff]  }
 0x3e8   :  { %7830 = vmatpush1.bf16.msra.mxu0 %v10511_v41  ;;  %7175 = vmatprep.subr.bf16.mxu1 %v10516_v42  ;;  %v10600_v41 = vld [vmem:[#allocation5 + $0xf64] ss:$8 sps:$4 sm:$0xff]  }
 0x3e9   :  { %7831 = vmatprep.subr.bf16.mxu0 %v10519_v44  ;;  %v10603_v42 = vld [vmem:[#allocation5 + $0x1f64] ss:$8 sps:$4 sm:$0xff]   ;;  %v10598_v44 = vld [vmem:[#allocation5 + $0xf60] ss:$8 sps:$4 sm:$0xff]  }
 0x3eb   :  { %7176 = vmatpush1.bf16.msra.mxu1 %v10514_v47  ;;  %v10601_v47 = vld [vmem:[#allocation5 + $0x1f60] ss:$8 sps:$4 sm:$0xff]  }
 0x3ec   :  { %7832 = vmatpush1.bf16.msra.mxu0 %v10517_v48  ;;  %7177 = vmatprep.subr.bf16.mxu1 %v10522_v56  ;;  %v10606_v48 = vld [vmem:[#allocation5 + $0xf74] ss:$8 sps:$4 sm:$0xff]  }
 0x3ed   :  { %7833 = vmatprep.subr.bf16.mxu0 %v10525_v51  ;;  %v10609_v56 = vld [vmem:[#allocation5 + $0x1f74] ss:$8 sps:$4 sm:$0xff]   ;;  %v10604_v51 = vld [vmem:[#allocation5 + $0xf70] ss:$8 sps:$4 sm:$0xff]  }
 0x3ef   :  { %7178 = vmatpush1.bf16.msra.mxu1 %v10520_v28  ;;  %v10607_v28 = vld [vmem:[#allocation5 + $0x1f70] ss:$8 sps:$4 sm:$0xff]  }
 0x3f0   :  { %7834 = vmatpush1.bf16.msra.mxu0 %v10523_v34  ;;  %7179 = vmatprep.subr.bf16.mxu1 %v10528_v52  ;;  %v10612_v34 = vld [vmem:[#allocation5 + $0xf84] ss:$8 sps:$4 sm:$0xff]  }
 0x3f1   :  { %7835 = vmatprep.subr.bf16.mxu0 %v10531_v53  ;;  %v10615_v52 = vld [vmem:[#allocation5 + $0x1f84] ss:$8 sps:$4 sm:$0xff]   ;;  %v10610_v53 = vld [vmem:[#allocation5 + $0xf80] ss:$8 sps:$4 sm:$0xff]  }
 0x3f3   :  { %7180 = vmatpush1.bf16.msra.mxu1 %v10526_v27  ;;  %v10613_v27 = vld [vmem:[#allocation5 + $0x1f80] ss:$8 sps:$4 sm:$0xff]  }
 0x3f4   :  { %7836 = vmatpush1.bf16.msra.mxu0 %v10529_v58  ;;  %7181 = vmatprep.subr.bf16.mxu1 %v10534_v37  ;;  %v10618_v58 = vld [vmem:[#allocation5 + $0xf94] ss:$8 sps:$4 sm:$0xff]  }
 0x3f5   :  { %7837 = vmatprep.subr.bf16.mxu0 %v10537_v36  ;;  %v10621_v37 = vld [vmem:[#allocation5 + $0x1f94] ss:$8 sps:$4 sm:$0xff]   ;;  %v10616_v36 = vld [vmem:[#allocation5 + $0xf90] ss:$8 sps:$4 sm:$0xff]  }
 0x3f7   :  { %7182 = vmatpush1.bf16.msra.mxu1 %v10532_v16  ;;  %v10619_v16 = vld [vmem:[#allocation5 + $0x1f90] ss:$8 sps:$4 sm:$0xff]  }
 0x3f8   :  { %7838 = vmatpush1.bf16.msra.mxu0 %v10535_v59  ;;  %7183 = vmatprep.subr.bf16.mxu1 %v10540_v60  ;;  %v10624_v59 = vld [vmem:[#allocation5 + $0xfa4] ss:$8 sps:$4 sm:$0xff]  }
 0x3f9   :  { %7839 = vmatprep.subr.bf16.mxu0 %v10543_v61  ;;  %v10627_v60 = vld [vmem:[#allocation5 + $0x1fa4] ss:$8 sps:$4 sm:$0xff]   ;;  %v10622_v61 = vld [vmem:[#allocation5 + $0xfa0] ss:$8 sps:$4 sm:$0xff]  }
 0x3fb   :  { %7184 = vmatpush1.bf16.msra.mxu1 %v10538_v0  ;;  %v10625_v0 = vld [vmem:[#allocation5 + $0x1fa0] ss:$8 sps:$4 sm:$0xff]  }
 0x3fc   :  { %7840 = vmatpush1.bf16.msra.mxu0 %v10541_v1  ;;  %7185 = vmatprep.subr.bf16.mxu1 %v10546_v8  ;;  %v10630_v1 = vld [vmem:[#allocation5 + $0xfb4] ss:$8 sps:$4 sm:$0xff]  }
 0x3fd   :  { %7841 = vmatprep.subr.bf16.mxu0 %v10549_v46  ;;  %v10633_v8 = vld [vmem:[#allocation5 + $0x1fb4] ss:$8 sps:$4 sm:$0xff]   ;;  %v10628_v46 = vld [vmem:[#allocation5 + $0xfb0] ss:$8 sps:$4 sm:$0xff]  }
 0x3ff   :  { %7186 = vmatpush1.bf16.msra.mxu1 %v10544_v29  ;;  %v10631_v29 = vld [vmem:[#allocation5 + $0x1fb0] ss:$8 sps:$4 sm:$0xff]  }
 0x400   :  { %7842 = vmatpush1.bf16.msra.mxu0 %v10547_v3  ;;  %7187 = vmatprep.subr.bf16.mxu1 %v10552_v4  ;;  %v10636_v3 = vld [vmem:[#allocation5 + $0xfc4] ss:$8 sps:$4 sm:$0xff]  }
 0x401   :  { %7843 = vmatprep.subr.bf16.mxu0 %v10555_v5  ;;  %v10639_v4 = vld [vmem:[#allocation5 + $0x1fc4] ss:$8 sps:$4 sm:$0xff]   ;;  %v10634_v5 = vld [vmem:[#allocation5 + $0xfc0] ss:$8 sps:$4 sm:$0xff]  }
 0x403   :  { %7188 = vmatpush1.bf16.msra.mxu1 %v10550_v30  ;;  %v10637_v30 = vld [vmem:[#allocation5 + $0x1fc0] ss:$8 sps:$4 sm:$0xff]  }
 0x404   :  { %7844 = vmatpush1.bf16.msra.mxu0 %v10553_v10  ;;  %7189 = vmatprep.subr.bf16.mxu1 %v10558_v57  ;;  %v10642_v10 = vld [vmem:[#allocation5 + $0xfd4] ss:$8 sps:$4 sm:$0xff]  }
 0x405   :  { %7845 = vmatprep.subr.bf16.mxu0 %v10561_v54  ;;  %v10645_v57 = vld [vmem:[#allocation5 + $0x1fd4] ss:$8 sps:$4 sm:$0xff]   ;;  %v10640_v54 = vld [vmem:[#allocation5 + $0xfd0] ss:$8 sps:$4 sm:$0xff]  }
 0x407   :  { %7190 = vmatpush1.bf16.msra.mxu1 %v10556_v12  ;;  %v10651_v12 = vld [vmem:[#allocation5 + $0x1fe4] ss:$8 sps:$4 sm:$0xff]  }
 0x408   :  { %7846 = vmatpush1.bf16.msra.mxu0 %v10559_v13  ;;  %7200 = vmatprep.subr.bf16.mxu1 %v10564_v18  ;;  %v10646_v13 = vld [vmem:[#allocation5 + $0xfe0] ss:$8 sps:$4 sm:$0xff]  }
 0x409   :  { %7856 = vmatprep.subr.bf16.mxu0 %v10567_v19  ;;  %v10649_v18 = vld [vmem:[#allocation5 + $0x1fe0] ss:$8 sps:$4 sm:$0xff]   ;;  %v10654_v19 = vld [vmem:[#allocation5 + $0xff4] ss:$8 sps:$4 sm:$0xff]  }
 0x40a   :  { %7192 = vmatmul.mubr.bf16.vlgmr.msra.gmra.mrb[0].mxu1 %v11086_v6  ;;  %v10585_v6 = vld [vmem:[#allocation5 + $0x1f34] ss:$8 sps:$4 sm:$0xff]  }
 0x40b   :  { %7848 = vmatmul.mubr.bf16.vlgmr.msra.gmra.mrb[0].mxu0 %v11090_v7  ;;  %7201 = vmatpush1.bf16.msra.mxu1 %v10562_v26  ;;  %v10580_v7 = vld [vmem:[#allocation5 + $0xf30] ss:$8 sps:$4 sm:$0xff]   ;;  %v10657_v26 = vld [vmem:[#allocation5 + $0x1ff4] ss:$8 sps:$4 sm:$0xff]  }
 0x40c   :  { %7857 = vmatpush1.bf16.msra.mxu0 %v10565_v63  ;;  %7202 = vmatprep.subr.bf16.mxu1 %v10570_v50  ;;  %v10652_v63 = vld [vmem:[#allocation5 + $0xff0] ss:$8 sps:$4 sm:$0xff]  }
 0x40d   :  { %7858 = vmatprep.subr.bf16.mxu0 %v10573_v2  ;;  %7232 = vmatprep.mubr.bf16.mxu1 %v1264_v45  ;;  %v10655_v50 = vld [vmem:[#allocation5 + $0x1ff0] ss:$8 sps:$4 sm:$0xff]   ;;  %v7911_v2 = vsub.s32 0, %v10859_v43  ;;  %v7915_v45 = vsub.s32 1, %v10859_v43 }
 0x40e   :  { %7888 = vmatprep.mubr.bf16.mxu0 %v1400_v21  ;;  %v7907_v21 = vld [vmem:[#allocation7] sm:$0x3] }
 0x40f   :  { %7203 = vmatpush1.bf16.msra.mxu1 %v10568_v49  ;;  %v7920_v49 = vld [vmem:[#allocation8] sm:$0x3] }
 0x410   :  { %7859 = vmatpush1.bf16.msra.mxu0 %v10571_v22  ;;  %7204 = vmatprep.subr.bf16.mxu1 %v10576_v23 }
 0x411   :  { %7860 = vmatprep.subr.bf16.mxu0 %v10579_v24  ;;  %v7912_v24 = vrot.slane %v7907_v21, %v7911_v2 }
 0x413   :  { %7205 = vmatpush1.bf16.msra.mxu1 %v10574_v25  ;;  %v7916_v25 = vrot.slane %v7907_v21, %v7915_v45 }
 0x414   :  { %7861 = vmatpush1.bf16.msra.mxu0 %v10577_v17  ;;  %7206 = vmatprep.subr.bf16.mxu1 %v10582_v31 }
 0x415   :  { %7862 = vmatprep.subr.bf16.mxu0 %v10585_v6 }
 0x417   :  { %7207 = vmatpush1.bf16.msra.mxu1 %v10580_v7 }
 0x418   :  { %7863 = vmatpush1.bf16.msra.mxu0 %v10583_v9  ;;  %7208 = vmatprep.subr.bf16.mxu1 %v10588_v32 }
 0x419   :  { %7864 = vmatprep.subr.bf16.mxu0 %v10591_v33  ;;  %v7925_v33 = vrot.slane %v7920_v49, %v7911_v2 }
 0x41b   :  { %7209 = vmatpush1.bf16.msra.mxu1 %v10586_v35 }
 0x41c   :  { %7865 = vmatpush1.bf16.msra.mxu0 %v10589_v38  ;;  %7210 = vmatprep.subr.bf16.mxu1 %v10594_v39  ;;  %v7917_v39 = vcombine.low %v7912_v24, %v7916_v25 }
 0x41d   :  { %7866 = vmatprep.subr.bf16.mxu0 %v10597_v40 }
 0x41f   :  { %7211 = vmatpush1.bf16.msra.mxu1 %v10592_v14 }
 0x420   :  { %7867 = vmatpush1.bf16.msra.mxu0 %v10595_v15  ;;  %7212 = vmatprep.subr.bf16.mxu1 %v10600_v41 }
 0x421   :  { %7868 = vmatprep.subr.bf16.mxu0 %v10603_v42 }
 0x423   :  { %7213 = vmatpush1.bf16.msra.mxu1 %v10598_v44 }
 0x424   :  { %7869 = vmatpush1.bf16.msra.mxu0 %v10601_v47  ;;  %7214 = vmatprep.subr.bf16.mxu1 %v10606_v48 }
 0x425   :  { %7870 = vmatprep.subr.bf16.mxu0 %v10609_v56 }
 0x427   :  { %7215 = vmatpush1.bf16.msra.mxu1 %v10604_v51 }
 0x428   :  { %7871 = vmatpush1.bf16.msra.mxu0 %v10607_v28  ;;  %7216 = vmatprep.subr.bf16.mxu1 %v10612_v34 }
 0x429   :  { %7872 = vmatprep.subr.bf16.mxu0 %v10615_v52 }
 0x42b   :  { %7217 = vmatpush1.bf16.msra.mxu1 %v10610_v53 }
 0x42c   :  { %7873 = vmatpush1.bf16.msra.mxu0 %v10613_v27  ;;  %7218 = vmatprep.subr.bf16.mxu1 %v10618_v58 }
 0x42d   :  { %7874 = vmatprep.subr.bf16.mxu0 %v10621_v37 }
 0x42f   :  { %7219 = vmatpush1.bf16.msra.mxu1 %v10616_v36 }
 0x430   :  { %7875 = vmatpush1.bf16.msra.mxu0 %v10619_v16  ;;  %7220 = vmatprep.subr.bf16.mxu1 %v10624_v59 }
 0x431   :  { %7876 = vmatprep.subr.bf16.mxu0 %v10627_v60 }
 0x433   :  { %7221 = vmatpush1.bf16.msra.mxu1 %v10622_v61 }
 0x434   :  { %7877 = vmatpush1.bf16.msra.mxu0 %v10625_v0  ;;  %7222 = vmatprep.subr.bf16.mxu1 %v10630_v1 }
 0x435   :  { %7878 = vmatprep.subr.bf16.mxu0 %v10633_v8 }
 0x437   :  { %7223 = vmatpush1.bf16.msra.mxu1 %v10628_v46 }
 0x438   :  { %7879 = vmatpush1.bf16.msra.mxu0 %v10631_v29  ;;  %7224 = vmatprep.subr.bf16.mxu1 %v10636_v3 }
 0x439   :  { %7880 = vmatprep.subr.bf16.mxu0 %v10639_v4 }
 0x43b   :  { %7225 = vmatpush1.bf16.msra.mxu1 %v10634_v5 }
 0x43c   :  { %7881 = vmatpush1.bf16.msra.mxu0 %v10637_v30  ;;  %7226 = vmatprep.subr.bf16.mxu1 %v10642_v10 }
 0x43d   :  { %7882 = vmatprep.subr.bf16.mxu0 %v10645_v57 }
 0x43f   :  { %7227 = vmatpush1.bf16.msra.mxu1 %v10640_v54 }
 0x440   :  { %7883 = vmatpush1.bf16.msra.mxu0 %v10643_v55  ;;  %7228 = vmatprep.subr.bf16.mxu1 %v10648_v11 }
 0x441   :  { %7884 = vmatprep.subr.bf16.mxu0 %v10651_v12 }
 0x443   :  { %7229 = vmatpush1.bf16.msra.mxu1 %v10646_v13 }
 0x444   :  { %7885 = vmatpush1.bf16.msra.mxu0 %v10649_v18  ;;  %7230 = vmatprep.subr.bf16.mxu1 %v10654_v19 }
 0x445   :  { %7886 = vmatprep.subr.bf16.mxu0 %v10657_v26 }
 0x447   :  { %7231 = vmatpush1.bf16.msra.mxu1 %v10652_v63 }
 0x448   :  { %7887 = vmatpush1.bf16.msra.mxu0 %v10655_v50 }
 0x44a   :  { %7233 = vmatmul.mubr.bf16.vlgmr.msra.gmra.mrb[0].mxu1 %v11103_v20  ;;  %v7929_v20 = vrot.slane %v7920_v49, %v7915_v45 }
 0x44b   :  { %7889 = vmatmul.mubr.bf16.vlgmr.msra.gmra.mrb[0].mxu0 %v11106_v62 }
 0x44c   :  { %v7930_v40 = vcombine.low %v7925_v33, %v7929_v20 }
 0x51d   :  { %v7234_v22 = vpop.f32.mrb[0].mxu1 }
 0x51e   :  { %v7890_v23 = vpop.f32.mrb[0].mxu0  ;;  %v7236_v31 = vpop.f32.mrb[1].mxu1 }
 0x51f   :  { %v8977_v17 = vadd.f32 %v7890_v23, %v7234_v22  ;;  %v7892_v6 = vpop.f32.mrb[1].mxu0  ;;  %v7238_v9 = vpop.f32.mrb[2].mxu1 }
 0x520   :  { %v8978_v7 = vadd.f32 %v7892_v6, %v7236_v31  ;;  %v7894_v32 = vpop.f32.mrb[2].mxu0  ;;  %v7239_v35 = vpop.f32.mrb[3].mxu1 }
 0x521   :  { %v7895_v62 = vpop.f32.mrb[3].mxu0 }
 0x522   :  { %v7899_v38 = vcombine.low %v8977_v17, %v8978_v7 }
 0x524   :  { %v7919_v43 = vmul.f32 %v7917_v39, %v7899_v38 }
 0x526   :  { %v7932_v14 = vadd.f32 %v7930_v40, %v7919_v43 }
 0x528   :  { %v7933_v15 = vmax.f32 %v7932_v14, 0.0 }
 0x52a   :  { %v7934_v41 = vmin.f32 %v7933_v15, 6.0 }
 0x52c   :  { %7935 = vst [vmem:[#allocation10] sm:$0xff] %v7934_v41 }
 0x52d   :  { %10759 = shalt.err (!%p10756_p8)
}
 0x52e   :  { %s10760_s1 = scalar_lea.hbm %s11134_s4, 128 }
 0x52f   :  { %p10761_p9 = scmp.ne.s32.totalorder %s11134_s4, %s10760_s1  ;;  %p10764_p10 = scmp.lt.u32.totalorder %s10760_s1, %s11134_s4 }
 0x531   :  { %p10766_p11 = pnand %p10764_p10, %p10761_p9 }
 0x533   :  { %10769 = shalt.err (!%p10766_p11)
}
 0x534   :  { %7945 = dma.vmem_to_hbm [thread:$0]  %s7943_s10, 128, %s11134_s4, [#allocation4]  }
 0x535   :  { %10776 = dma.done.wait [#allocation4], 128  }
 0x536   :  { %10777 = vsyncadd [#allocation4], 4294967168 }
 0x537   :  { %7949 = vsyncpa [#allocation3], 1 }
 0x538   :  { %7950 = vsyncpa [#allocation6], 1 }
 0x539   :  { %7951 = vsyncpa [#allocation9], 1 }
 0x53a   :  { %7952 = vsyncpa [#allocation4], 1 }

</bundles_post_ra>
